<compile_context>
chip_gen: v5e
topology: v5e:2x2
jax: 0.10.0
libtpu: 0.0.40
codegen_flags: <defaults>
</compile_context>

<pallas_src>
import functools
import math

import jax
import jax.numpy as jnp
from jax.experimental import pallas as pl
from jax.experimental.pallas import tpu as pltpu


_LN_EPS = 1e-5
_VMEM_LIMIT = 32 * 1024 * 1024  # explicit scoped-VMEM budget, safe on v5e/v6e/v7x


def _cparams(n_axes=1):
    return pltpu.CompilerParams(
        dimension_semantics=("parallel",) * n_axes,
        vmem_limit_bytes=_VMEM_LIMIT)


def _row_tile(M):
    """Largest 8-aligned row tile <=512 that divides M and leaves >=2 grid blocks
    (so both v7x TensorCores get work). Falls back to a single full block."""
    for tm in (512, 256, 128, 64, 32, 16, 8):
        if M % tm == 0 and M // tm >= 2:
            return tm, M // tm
    return M, 1


def _bf16(x):
    return x.astype(jnp.bfloat16)


def _layernorm(y, g, b):
    # all statistics in f32
    mu = jnp.mean(y, axis=-1, keepdims=True)
    var = jnp.mean((y - mu) ** 2, axis=-1, keepdims=True)
    inv = jax.lax.rsqrt(var + _LN_EPS)
    return (y - mu) * inv * g + b


def _mha_into(ctx_ref, q_all, k_all, v_all, bias, scale, H, Dk, Dv):
    """Multi-head attention; writes per-head context into ctx_ref[:, h*Dv:(h+1)*Dv].

    q_all (Sq, H*Dk), k_all (Sk, H*Dk), v_all (Sk, H*Dv) are f32; bias broadcasts
    against (Sq, Sk).  Scores/softmax stay f32; only MXU operands are cast to bf16.
    """
    # TODO(synk): per-head unrolled loop is fine at toy H/Dk; for large head counts
    #             switch to a head-batched (H, S, Dh) contraction / flash tiling.
    for h in range(H):
        q = q_all[:, h * Dk:(h + 1) * Dk] * scale
        k = k_all[:, h * Dk:(h + 1) * Dk]
        v = v_all[:, h * Dv:(h + 1) * Dv]
        # contract last dims of both operands directly (no explicit K transpose)
        s = jax.lax.dot_general(
            _bf16(q), _bf16(k),
            dimension_numbers=(((1,), (1,)), ((), ())),
            preferred_element_type=jnp.float32) + bias
        m = jnp.max(s, axis=-1, keepdims=True)
        p = jnp.exp(s - m)
        # approx reciprocal (EUP slot): attention rows sum to 1 only to ~1e-3
        p = p * pl.reciprocal(jnp.sum(p, axis=-1, keepdims=True), approx=True)
        ctx_ref[:, h * Dv:(h + 1) * Dv] = jnp.dot(
            _bf16(p), _bf16(v), preferred_element_type=jnp.float32)


# ------------------------------------------------------------------ kernels --

def _self_attn_ln_kernel(x_ref, wqkv_ref, bqkv_ref, wo_ref, bo_ref, bias_ref,
                         g_ref, b_ref, o_ref, ctx_ref, *, scale, H, Dk, Dv):
    x = x_ref[0]                                                    # (S, D) f32
    qkv = jnp.dot(_bf16(x), wqkv_ref[...],
                  preferred_element_type=jnp.float32) + bqkv_ref[...]
    HDk = H * Dk
    _mha_into(ctx_ref, qkv[:, :HDk], qkv[:, HDk:2 * HDk], qkv[:, 2 * HDk:],
              bias_ref[0], scale, H, Dk, Dv)
    # single fused output projection over all heads
    a = jnp.dot(_bf16(ctx_ref[...]), wo_ref[...],
                preferred_element_type=jnp.float32) + bo_ref[...]
    o_ref[0] = _layernorm(a + x, g_ref[...], b_ref[...])


def _cross_attn_ln_kernel(x_ref, m_ref, wq_ref, bq_ref, wkv_ref, bkv_ref,
                          wo_ref, bo_ref, bias_ref, g_ref, b_ref,
                          o_ref, ctx_ref, *, scale, H, Dk, Dv):
    x = x_ref[0]                                                    # (Sq, D)
    mem = m_ref[0]                                                  # (Sk, D)
    q = jnp.dot(_bf16(x), wq_ref[...],
                preferred_element_type=jnp.float32) + bq_ref[...]
    kv = jnp.dot(_bf16(mem), wkv_ref[...],
                 preferred_element_type=jnp.float32) + bkv_ref[...]
    HDk = H * Dk
    _mha_into(ctx_ref, q, kv[:, :HDk], kv[:, HDk:],
              bias_ref[0], scale, H, Dk, Dv)
    a = jnp.dot(_bf16(ctx_ref[...]), wo_ref[...],
                preferred_element_type=jnp.float32) + bo_ref[...]
    o_ref[0] = _layernorm(a + x, g_ref[...], b_ref[...])


def _ffn_ln_kernel(x_ref, w1_ref, b1_ref, w2_ref, b2_ref, g_ref, b_ref, o_ref):
    x = x_ref[...]
    h = jnp.dot(_bf16(x), w1_ref[...],
                preferred_element_type=jnp.float32) + b1_ref[...]
    h = jnp.maximum(h, 0.0)
    f = jnp.dot(_bf16(h), w2_ref[...],
                preferred_element_type=jnp.float32) + b2_ref[...]
    o_ref[...] = _layernorm(f + x, g_ref[...], b_ref[...])


def _embed_proj_kernel(we_ref, pe_ref, w_ref, b_ref, o_ref):
    x = we_ref[0] + pe_ref[...]                                     # (S, E) f32
    o_ref[0] = jnp.dot(_bf16(x), w_ref[...],
                       preferred_element_type=jnp.float32) + b_ref[...]


def _proj_softmax_kernel(x_ref, w_ref, b_ref, o_ref):
    y = jnp.dot(_bf16(x_ref[...]), w_ref[...],
                preferred_element_type=jnp.float32) + b_ref[...]
    m = jnp.max(y, axis=-1, keepdims=True)
    e = jnp.exp(y - m)
    # exact divide: output must be a proper probability distribution
    o_ref[...] = e / jnp.sum(e, axis=-1, keepdims=True)


# ----------------------------------------------------------------- wrappers --

def self_attn_ln(x, p, bias, g, b, cfg):
    B, S, D = x.shape
    H, Dk, Dv = cfg["num_heads"], cfg["dim_keys"], cfg["dim_values"]
    Nqkv = 2 * H * Dk + H * Dv
    Bb, Bq, Sk = bias.shape
    bias_map = (lambda i: (i, 0, 0)) if Bb == B else (lambda i: (0, 0, 0))
    rep2 = lambda i: (0, 0)
    return pl.pallas_call(
        functools.partial(_self_attn_ln_kernel, scale=1.0 / math.sqrt(Dk),
                          H=H, Dk=Dk, Dv=Dv),
        out_shape=jax.ShapeDtypeStruct((B, S, D), jnp.float32),
        grid=(B,),
        in_specs=[pl.BlockSpec((1, S, D), lambda i: (i, 0, 0)),
                  pl.BlockSpec((D, Nqkv), rep2),
                  pl.BlockSpec((1, Nqkv), rep2),
                  pl.BlockSpec((H * Dv, D), rep2),
                  pl.BlockSpec((1, D), rep2),
                  pl.BlockSpec((1, Bq, Sk), bias_map),
                  pl.BlockSpec((1, D), rep2),
                  pl.BlockSpec((1, D), rep2)],
        out_specs=pl.BlockSpec((1, S, D), lambda i: (i, 0, 0)),
        scratch_shapes=[pltpu.VMEM((S, H * Dv), jnp.float32)],
        compiler_params=_cparams(1),
    )(x, p["w_qkv"], p["b_qkv"], p["wo"], p["bo"], bias, g, b)


def cross_attn_ln(x, mem, p, bias, g, b, cfg):
    B, Sq, D = x.shape
    Sk = mem.shape[1]
    H, Dk, Dv = cfg["num_heads"], cfg["dim_keys"], cfg["dim_values"]
    HDk, HDv = H * Dk, H * Dv
    Bb, Bq, Sb = bias.shape
    bias_map = (lambda i: (i, 0, 0)) if Bb == B else (lambda i: (0, 0, 0))
    rep2 = lambda i: (0, 0)
    return pl.pallas_call(
        functools.partial(_cross_attn_ln_kernel, scale=1.0 / math.sqrt(Dk),
                          H=H, Dk=Dk, Dv=Dv),
        out_shape=jax.ShapeDtypeStruct((B, Sq, D), jnp.float32),
        grid=(B,),
        in_specs=[pl.BlockSpec((1, Sq, D), lambda i: (i, 0, 0)),
                  pl.BlockSpec((1, Sk, D), lambda i: (i, 0, 0)),
                  pl.BlockSpec((D, HDk), rep2),
                  pl.BlockSpec((1, HDk), rep2),
                  pl.BlockSpec((D, HDk + HDv), rep2),
                  pl.BlockSpec((1, HDk + HDv), rep2),
                  pl.BlockSpec((HDv, D), rep2),
                  pl.BlockSpec((1, D), rep2),
                  pl.BlockSpec((1, Bq, Sb), bias_map),
                  pl.BlockSpec((1, D), rep2),
                  pl.BlockSpec((1, D), rep2)],
        out_specs=pl.BlockSpec((1, Sq, D), lambda i: (i, 0, 0)),
        scratch_shapes=[pltpu.VMEM((Sq, HDv), jnp.float32)],
        compiler_params=_cparams(1),
    )(x, mem, p["wq"], p["bq"], p["w_kv"], p["b_kv"], p["wo"], p["bo"], bias, g, b)


def ffn_ln(x, p, g, b):
    B, S, D = x.shape
    x2d = x.reshape(B * S, D)                      # contiguous reshape: no copy
    F = p["w1"].shape[1]
    TM, nm = _row_tile(B * S)
    rep2 = lambda i: (0, 0)
    out = pl.pallas_call(
        _ffn_ln_kernel,
        out_shape=jax.ShapeDtypeStruct((B * S, D), jnp.float32),
        grid=(nm,),
        in_specs=[pl.BlockSpec((TM, D), lambda i: (i, 0)),
                  pl.BlockSpec((D, F), rep2),
                  pl.BlockSpec((1, F), rep2),
                  pl.BlockSpec((F, D), rep2),
                  pl.BlockSpec((1, D), rep2),
                  pl.BlockSpec((1, D), rep2),
                  pl.BlockSpec((1, D), rep2)],
        out_specs=pl.BlockSpec((TM, D), lambda i: (i, 0)),
        compiler_params=_cparams(1),
    )(x2d, p["w1"], p["b1"], p["w2"], p["b2"], g, b)
    return out.reshape(B, S, D)


def embed_project(token_emb, pos_emb, w, b):
    """(word_emb[ids] + pos_emb[:S]) @ W + b, fused; grid over batch."""
    B, S, E = token_emb.shape
    D = w.shape[1]
    rep2 = lambda i: (0, 0)
    return pl.pallas_call(
        _embed_proj_kernel,
        out_shape=jax.ShapeDtypeStruct((B, S, D), jnp.float32),
        grid=(B,),
        in_specs=[pl.BlockSpec((1, S, E), lambda i: (i, 0, 0)),
                  pl.BlockSpec((S, E), rep2),      # first S rows of pos_emb
                  pl.BlockSpec((E, D), rep2),
                  pl.BlockSpec((1, D), rep2)],
        out_specs=pl.BlockSpec((1, S, D), lambda i: (i, 0, 0)),
        compiler_params=_cparams(1),
    )(token_emb, pos_emb, w, b)


def out_proj_softmax(x, w, b):
    B, S, D = x.shape
    N = w.shape[1]
    x2d = x.reshape(B * S, D)
    TM, nm = _row_tile(B * S)
    rep2 = lambda i: (0, 0)
    out = pl.pallas_call(
        _proj_softmax_kernel,
        out_shape=jax.ShapeDtypeStruct((B * S, N), jnp.float32),
        grid=(nm,),
        in_specs=[pl.BlockSpec((TM, D), lambda i: (i, 0)),
                  pl.BlockSpec((D, N), rep2),
                  pl.BlockSpec((1, N), rep2)],
        out_specs=pl.BlockSpec((TM, N), lambda i: (i, 0)),
        compiler_params=_cparams(1),
    )(x2d, w, b)
    return out.reshape(B, S, N)


# -------------------------------------------------------------- model glue --

def encoder_layer(x, p, pad_bias, cfg):
    x = self_attn_ln(x, p["attn"], pad_bias, p["ln1_g"], p["ln1_b"], cfg)
    x = ffn_ln(x, p, p["ln2_g"], p["ln2_b"])
    return x


def decoder_layer(x, memory, p, causal_bias, pad_bias, cfg):
    x = self_attn_ln(x, p["self_attn"], causal_bias, p["ln1_g"], p["ln1_b"], cfg)
    x = cross_attn_ln(x, memory, p["cross_attn"], pad_bias, p["ln2_g"], p["ln2_b"], cfg)
    x = ffn_ln(x, p, p["ln3_g"], p["ln3_b"])
    return x


def transformer_forward(params, cfg, input_seq, target):
    # word-embedding gather is XLA glue; positional add + input projection fused
    src_tok = params["word_emb"][input_seq]
    tgt_tok = params["word_emb"][target]
    x_src = embed_project(src_tok, params["pos_emb"], params["in_w"], params["in_b"])
    x_tgt = embed_project(tgt_tok, params["pos_emb"], params["in_w"], params["in_b"])

    # compact additive masks (never materialize (B*H, Sq, Sk)):
    #   pad mask:    (B, 1, S_src)   broadcast over query rows in-kernel
    #   causal mask: (1, S_tgt, S_tgt) shared across the batch
    S_tgt = target.shape[1]
    pad_bias = jnp.where(input_seq == cfg["pad_index"], -1e9,
                         0.0).astype(jnp.float32)[:, None, :]
    causal_bias = jnp.triu(jnp.full((S_tgt, S_tgt), -1e9, jnp.float32), k=1)[None]

    mem = x_src
    for lp in params["encoder"]:
        mem = encoder_layer(mem, lp, pad_bias, cfg)

    y = x_tgt
    for lp in params["decoder"]:
        y = decoder_layer(y, mem, lp, causal_bias, pad_bias, cfg)

    return out_proj_softmax(y, params["out_w"], params["out_b"])


# ---------------------------------------------------------------- init -------

def init_params(key, cfg):
    ks = iter(jax.random.split(key, 1024))

    def dense(din, dout):
        lim = 1.0 / math.sqrt(din)
        w = jax.random.uniform(next(ks), (din, dout), jnp.float32, -lim, lim)
        b = jax.random.uniform(next(ks), (1, dout), jnp.float32, -lim, lim)
        return w.astype(jnp.bfloat16), b      # MXU weights bf16, biases f32

    D, H, Dk, Dv, F = (cfg["dim_model"], cfg["num_heads"], cfg["dim_keys"],
                       cfg["dim_values"], cfg["dim_ff"])

    def self_attn_block():
        wq, bq = dense(D, H * Dk)
        wk, bk = dense(D, H * Dk)
        wv, bv = dense(D, H * Dv)
        wo, bo = dense(H * Dv, D)
        return dict(w_qkv=jnp.concatenate([wq, wk, wv], axis=1),
                    b_qkv=jnp.concatenate([bq, bk, bv], axis=1),
                    wo=wo, bo=bo)

    def cross_attn_block():
        wq, bq = dense(D, H * Dk)
        wk, bk = dense(D, H * Dk)
        wv, bv = dense(D, H * Dv)
        wo, bo = dense(H * Dv, D)
        return dict(wq=wq, bq=bq,
                    w_kv=jnp.concatenate([wk, wv], axis=1),
                    b_kv=jnp.concatenate([bk, bv], axis=1),
                    wo=wo, bo=bo)

    ln = lambda: (jnp.ones((1, D), jnp.float32), jnp.zeros((1, D), jnp.float32))

    def enc_layer():
        w1, b1 = dense(D, F)
        w2, b2 = dense(F, D)
        (g1, be1), (g2, be2) = ln(), ln()
        return dict(attn=self_attn_block(), w1=w1, b1=b1, w2=w2, b2=b2,
                    ln1_g=g1, ln1_b=be1, ln2_g=g2, ln2_b=be2)

    def dec_layer():
        w1, b1 = dense(D, F)
        w2, b2 = dense(F, D)
        (g1, be1), (g2, be2), (g3, be3) = ln(), ln(), ln()
        return dict(self_attn=self_attn_block(), cross_attn=cross_attn_block(),
                    w1=w1, b1=b1, w2=w2, b2=b2,
                    ln1_g=g1, ln1_b=be1, ln2_g=g2, ln2_b=be2, ln3_g=g3, ln3_b=be3)

    word_emb = 0.1 * jax.random.normal(next(ks), (cfg["vocab"], cfg["emb_dim"]),
                                       jnp.float32)

    # deterministic sinusoidal positional embeddings (util.create_positional_emb)
    pos = jnp.arange(cfg["max_seq_len"], dtype=jnp.float32)[:, None]
    i = jnp.arange(cfg["emb_dim"], dtype=jnp.float32)[None, :]
    angle = pos / jnp.power(10000.0, (2.0 * jnp.floor(i / 2.0)) / cfg["emb_dim"])
    pos_emb = jnp.where((jnp.arange(cfg["emb_dim"]) % 2) == 0,
                        jnp.sin(angle), jnp.cos(angle)).astype(jnp.float32)

    in_w, in_b = dense(cfg["emb_dim"], D)
    out_w, out_b = dense(D, cfg["output_size"])

    return dict(word_emb=word_emb, pos_emb=pos_emb,
                in_w=in_w, in_b=in_b, out_w=out_w, out_b=out_b,
                encoder=[enc_layer() for _ in range(cfg["num_layers"])],
                decoder=[dec_layer() for _ in range(cfg["num_layers"])])


# ---------------------------------------------------------------- main -------

if __name__ == "__main__":
    cfg = dict(vocab=50, emb_dim=16, dim_model=32, num_layers=2, num_heads=4,
               dim_keys=8, dim_values=8, dim_ff=64, output_size=16,
               max_seq_len=16, pad_index=0)

    key = jax.random.PRNGKey(0)
    pkey, ikey, tkey = jax.random.split(key, 3)
    params = init_params(pkey, cfg)

    B, S_src, S_tgt = 2, 8, 8
    input_seq = jax.random.randint(ikey, (B, S_src), 1, cfg["vocab"], dtype=jnp.int32)
    input_seq = input_seq.at[1, -2:].set(cfg["pad_index"])   # exercise padding mask
    target = jax.random.randint(tkey, (B, S_tgt), 1, cfg["vocab"], dtype=jnp.int32)

    fwd = jax.jit(functools.partial(transformer_forward, params, cfg))
    out = fwd(input_seq, target)
    jax.block_until_ready(out)

    assert out.shape == (B, S_tgt, cfg["output_size"])
    assert bool(jnp.all(jnp.isfinite(out)))
    # each position is a probability distribution over output_size (exact divide)
    assert bool(jnp.allclose(jnp.sum(out, axis=-1), 1.0, atol=1e-4))
    print("KERNEL_OK")
</pallas_src>

<mosaic_0001>
module attributes {stable_mosaic.version = 11 : i64} {
  func.func @_embed_proj_kernel(%arg0: i32, %arg1: memref<1x8x16xf32, #tpu.memory_space<vmem>>, %arg2: memref<8x16xf32, #tpu.memory_space<vmem>>, %arg3: memref<16x32xbf16, #tpu.memory_space<vmem>>, %arg4: memref<1x32xf32, #tpu.memory_space<vmem>>, %arg5: memref<1x8x32xf32, #tpu.memory_space<vmem>>) attributes {dimension_semantics = [#tpu.dimension_semantics<parallel>], iteration_bounds = array<i64: 2>, scalar_prefetch = 0 : i64, scratch_operands = 0 : i64, tpu.core_type = #tpu.core_type<tc>, window_params = [{transform_indices = @transform_0, window_bounds = array<i64: 1, 8, 16>}, {transform_indices = @transform_1, window_bounds = array<i64: 8, 16>}, {pipeline_mode = #tpu.pipeline_mode<synchronous>, transform_indices = @transform_2, window_bounds = array<i64: 16, 32>}, {pipeline_mode = #tpu.pipeline_mode<synchronous>, transform_indices = @transform_3, window_bounds = array<i64: 1, 32>}, {transform_indices = @transform_4, window_bounds = array<i64: 1, 8, 32>}]} {
    %c0 = arith.constant 0 : index
    %c0_0 = arith.constant 0 : index
    %c0_1 = arith.constant 0 : index
    %0 = vector.load %arg1[%c0, %c0_0, %c0_1] : memref<1x8x16xf32, #tpu.memory_space<vmem>>, vector<1x8x16xf32>
    %1 = vector.shape_cast %0 : vector<1x8x16xf32> to vector<8x16xf32>
    %c0_2 = arith.constant 0 : index
    %c0_3 = arith.constant 0 : index
    %2 = vector.load %arg2[%c0_2, %c0_3] : memref<8x16xf32, #tpu.memory_space<vmem>>, vector<8x16xf32>
    %3 = arith.addf %1, %2 : vector<8x16xf32>
    %4 = arith.truncf %3 : vector<8x16xf32> to vector<8x16xbf16>
    %c0_4 = arith.constant 0 : index
    %c0_5 = arith.constant 0 : index
    %5 = vector.load %arg3[%c0_4, %c0_5] : memref<16x32xbf16, #tpu.memory_space<vmem>>, vector<16x32xbf16>
    %cst = arith.constant dense<0.000000e+00> : vector<8x32xf32>
    %6 = tpu.matmul %4, %5, %cst {dimension_numbers = #tpu.dot_dimension_numbers<[1], [0], [0], [1], [0, 0, 1, 1], [], []>} : vector<8x16xbf16>, vector<16x32xbf16>, vector<8x32xf32> -> vector<8x32xf32>
    %c0_6 = arith.constant 0 : index
    %c0_7 = arith.constant 0 : index
    %7 = vector.load %arg4[%c0_6, %c0_7] : memref<1x32xf32, #tpu.memory_space<vmem>>, vector<1x32xf32>
    %8 = vector.broadcast %7 : vector<1x32xf32> to vector<8x32xf32>
    %9 = arith.addf %6, %8 : vector<8x32xf32>
    %c0_8 = arith.constant 0 : index
    %c0_9 = arith.constant 0 : index
    %c0_10 = arith.constant 0 : index
    %10 = vector.load %arg5[%c0_8, %c0_9, %c0_10] : memref<1x8x32xf32, #tpu.memory_space<vmem>>, vector<1x8x32xf32>
    %11 = vector.shape_cast %10 : vector<1x8x32xf32> to vector<8x32xf32>
    %12 = vector.shape_cast %9 : vector<8x32xf32> to vector<1x8x32xf32>
    tpu.vector_store %arg5[%c0_8, %c0_9, %c0_10], %12 {strides = array<i32>} : memref<1x8x32xf32, #tpu.memory_space<vmem>>, vector<1x8x32xf32>,
    return
  }
  func.func @transform_0(%arg0: i32) -> (i32, i32, i32) {
    %c0_i32 = arith.constant 0 : i32
    %c0_i32_0 = arith.constant 0 : i32
    %c0_i32_1 = arith.constant 0 : i32
    return %arg0, %c0_i32, %c0_i32_0 : i32, i32, i32
  }
  func.func @transform_1(%arg0: i32) -> (i32, i32) {
    %c0_i32 = arith.constant 0 : i32
    %c0_i32_0 = arith.constant 0 : i32
    %c0_i32_1 = arith.constant 0 : i32
    return %c0_i32, %c0_i32_0 : i32, i32
  }
  func.func @transform_2(%arg0: i32) -> (i32, i32) {
    %c0_i32 = arith.constant 0 : i32
    %c0_i32_0 = arith.constant 0 : i32
    %c0_i32_1 = arith.constant 0 : i32
    return %c0_i32, %c0_i32_0 : i32, i32
  }
  func.func @transform_3(%arg0: i32) -> (i32, i32) {
    %c0_i32 = arith.constant 0 : i32
    %c0_i32_0 = arith.constant 0 : i32
    %c0_i32_1 = arith.constant 0 : i32
    return %c0_i32, %c0_i32_0 : i32, i32
  }
  func.func @transform_4(%arg0: i32) -> (i32, i32, i32) {
    %c0_i32 = arith.constant 0 : i32
    %c0_i32_0 = arith.constant 0 : i32
    %c0_i32_1 = arith.constant 0 : i32
    return %arg0, %c0_i32, %c0_i32_0 : i32, i32, i32
  }
}

module attributes {stable_mosaic.version = 11 : i64} {
  func.func @_ffn_ln_kernel(%arg0: i32, %arg1: memref<8x32xf32, #tpu.memory_space<vmem>>, %arg2: memref<32x64xbf16, #tpu.memory_space<vmem>>, %arg3: memref<1x64xf32, #tpu.memory_space<vmem>>, %arg4: memref<64x32xbf16, #tpu.memory_space<vmem>>, %arg5: memref<1x32xf32, #tpu.memory_space<vmem>>, %arg6: memref<1x32xf32, #tpu.memory_space<vmem>>, %arg7: memref<1x32xf32, #tpu.memory_space<vmem>>, %arg8: memref<8x32xf32, #tpu.memory_space<vmem>>) attributes {dimension_semantics = [#tpu.dimension_semantics<parallel>], iteration_bounds = array<i64: 2>, scalar_prefetch = 0 : i64, scratch_operands = 0 : i64, tpu.core_type = #tpu.core_type<tc>, window_params = [{transform_indices = @transform_0, window_bounds = array<i64: 8, 32>}, {pipeline_mode = #tpu.pipeline_mode<synchronous>, transform_indices = @transform_1, window_bounds = array<i64: 32, 64>}, {pipeline_mode = #tpu.pipeline_mode<synchronous>, transform_indices = @transform_2, window_bounds = array<i64: 1, 64>}, {pipeline_mode = #tpu.pipeline_mode<synchronous>, transform_indices = @transform_3, window_bounds = array<i64: 64, 32>}, {pipeline_mode = #tpu.pipeline_mode<synchronous>, transform_indices = @transform_4, window_bounds = array<i64: 1, 32>}, {pipeline_mode = #tpu.pipeline_mode<synchronous>, transform_indices = @transform_5, window_bounds = array<i64: 1, 32>}, {pipeline_mode = #tpu.pipeline_mode<synchronous>, transform_indices = @transform_6, window_bounds = array<i64: 1, 32>}, {transform_indices = @transform_7, window_bounds = array<i64: 8, 32>}]} {
    %c0 = arith.constant 0 : index
    %c0_0 = arith.constant 0 : index
    %0 = vector.load %arg1[%c0, %c0_0] : memref<8x32xf32, #tpu.memory_space<vmem>>, vector<8x32xf32>
    %1 = arith.truncf %0 : vector<8x32xf32> to vector<8x32xbf16>
    %c0_1 = arith.constant 0 : index
    %c0_2 = arith.constant 0 : index
    %2 = vector.load %arg2[%c0_1, %c0_2] : memref<32x64xbf16, #tpu.memory_space<vmem>>, vector<32x64xbf16>
    %cst = arith.constant dense<0.000000e+00> : vector<8x64xf32>
    %3 = tpu.matmul %1, %2, %cst {dimension_numbers = #tpu.dot_dimension_numbers<[1], [0], [0], [1], [0, 0, 1, 1], [], []>} : vector<8x32xbf16>, vector<32x64xbf16>, vector<8x64xf32> -> vector<8x64xf32>
    %c0_3 = arith.constant 0 : index
    %c0_4 = arith.constant 0 : index
    %4 = vector.load %arg3[%c0_3, %c0_4] : memref<1x64xf32, #tpu.memory_space<vmem>>, vector<1x64xf32>
    %5 = vector.broadcast %4 : vector<1x64xf32> to vector<8x64xf32>
    %6 = arith.addf %3, %5 : vector<8x64xf32>
    %cst_5 = arith.constant 0.000000e+00 : f32
    %7 = vector.broadcast %cst_5 : f32 to vector<8x64xf32>
    %8 = arith.maximumf %6, %7 : vector<8x64xf32>
    %9 = arith.truncf %8 : vector<8x64xf32> to vector<8x64xbf16>
    %c0_6 = arith.constant 0 : index
    %c0_7 = arith.constant 0 : index
    %10 = vector.load %arg4[%c0_6, %c0_7] : memref<64x32xbf16, #tpu.memory_space<vmem>>, vector<64x32xbf16>
    %cst_8 = arith.constant dense<0.000000e+00> : vector<8x32xf32>
    %11 = tpu.matmul %9, %10, %cst_8 {dimension_numbers = #tpu.dot_dimension_numbers<[1], [0], [0], [1], [0, 0, 1, 1], [], []>} : vector<8x64xbf16>, vector<64x32xbf16>, vector<8x32xf32> -> vector<8x32xf32>
    %c0_9 = arith.constant 0 : index
    %c0_10 = arith.constant 0 : index
    %12 = vector.load %arg5[%c0_9, %c0_10] : memref<1x32xf32, #tpu.memory_space<vmem>>, vector<1x32xf32>
    %13 = vector.broadcast %12 : vector<1x32xf32> to vector<8x32xf32>
    %14 = arith.addf %11, %13 : vector<8x32xf32>
    %15 = arith.addf %14, %0 : vector<8x32xf32>
    %c0_11 = arith.constant 0 : index
    %c0_12 = arith.constant 0 : index
    %16 = vector.load %arg6[%c0_11, %c0_12] : memref<1x32xf32, #tpu.memory_space<vmem>>, vector<1x32xf32>
    %c0_13 = arith.constant 0 : index
    %c0_14 = arith.constant 0 : index
    %17 = vector.load %arg7[%c0_13, %c0_14] : memref<1x32xf32, #tpu.memory_space<vmem>>, vector<1x32xf32>
    %cst_15 = arith.constant dense<0.000000e+00> : vector<8xf32>
    %18 = vector.multi_reduction <add>, %15, %cst_15 [1] : vector<8x32xf32> to vector<8xf32>
    %19 = vector.shape_cast %18 : vector<8xf32> to vector<8x1xf32>
    %cst_16 = arith.constant 3.200000e+01 : f32
    %20 = vector.broadcast %cst_16 : f32 to vector<8x1xf32>
    %21 = arith.divf %19, %20 : vector<8x1xf32>
    %22 = vector.broadcast %21 : vector<8x1xf32> to vector<8x32xf32>
    %23 = arith.subf %15, %22 : vector<8x32xf32>
    %24 = arith.mulf %23, %23 : vector<8x32xf32>
    %cst_17 = arith.constant dense<0.000000e+00> : vector<8xf32>
    %25 = vector.multi_reduction <add>, %24, %cst_17 [1] : vector<8x32xf32> to vector<8xf32>
    %26 = vector.shape_cast %25 : vector<8xf32> to vector<8x1xf32>
    %cst_18 = arith.constant 3.200000e+01 : f32
    %27 = vector.broadcast %cst_18 : f32 to vector<8x1xf32>
    %28 = arith.divf %26, %27 : vector<8x1xf32>
    %cst_19 = arith.constant 9.99999974E-6 : f32
    %29 = vector.broadcast %cst_19 : f32 to vector<8x1xf32>
    %30 = arith.addf %28, %29 : vector<8x1xf32>
    %31 = math.rsqrt %30 : vector<8x1xf32>
    %32 = vector.broadcast %21 : vector<8x1xf32> to vector<8x32xf32>
    %33 = arith.subf %15, %32 : vector<8x32xf32>
    %34 = vector.broadcast %31 : vector<8x1xf32> to vector<8x32xf32>
    %35 = arith.mulf %33, %34 : vector<8x32xf32>
    %36 = vector.broadcast %16 : vector<1x32xf32> to vector<8x32xf32>
    %37 = arith.mulf %35, %36 : vector<8x32xf32>
    %38 = vector.broadcast %17 : vector<1x32xf32> to vector<8x32xf32>
    %39 = arith.addf %37, %38 : vector<8x32xf32>
    %c0_20 = arith.constant 0 : index
    %c0_21 = arith.constant 0 : index
    %40 = vector.load %arg8[%c0_20, %c0_21] : memref<8x32xf32, #tpu.memory_space<vmem>>, vector<8x32xf32>
    tpu.vector_store %arg8[%c0_20, %c0_21], %39 {strides = array<i32>} : memref<8x32xf32, #tpu.memory_space<vmem>>, vector<8x32xf32>,
    return
  }
  func.func @transform_0(%arg0: i32) -> (i32, i32) {
    %c0_i32 = arith.constant 0 : i32
    %c0_i32_0 = arith.constant 0 : i32
    return %arg0, %c0_i32 : i32, i32
  }
  func.func @transform_1(%arg0: i32) -> (i32, i32) {
    %c0_i32 = arith.constant 0 : i32
    %c0_i32_0 = arith.constant 0 : i32
    %c0_i32_1 = arith.constant 0 : i32
    return %c0_i32, %c0_i32_0 : i32, i32
  }
  func.func @transform_2(%arg0: i32) -> (i32, i32) {
    %c0_i32 = arith.constant 0 : i32
    %c0_i32_0 = arith.constant 0 : i32
    %c0_i32_1 = arith.constant 0 : i32
    return %c0_i32, %c0_i32_0 : i32, i32
  }
  func.func @transform_3(%arg0: i32) -> (i32, i32) {
    %c0_i32 = arith.constant 0 : i32
    %c0_i32_0 = arith.constant 0 : i32
    %c0_i32_1 = arith.constant 0 : i32
    return %c0_i32, %c0_i32_0 : i32, i32
  }
  func.func @transform_4(%arg0: i32) -> (i32, i32) {
    %c0_i32 = arith.constant 0 : i32
    %c0_i32_0 = arith.constant 0 : i32
    %c0_i32_1 = arith.constant 0 : i32
    return %c0_i32, %c0_i32_0 : i32, i32
  }
  func.func @transform_5(%arg0: i32) -> (i32, i32) {
    %c0_i32 = arith.constant 0 : i32
    %c0_i32_0 = arith.constant 0 : i32
    %c0_i32_1 = arith.constant 0 : i32
    return %c0_i32, %c0_i32_0 : i32, i32
  }
  func.func @transform_6(%arg0: i32) -> (i32, i32) {
    %c0_i32 = arith.constant 0 : i32
    %c0_i32_0 = arith.constant 0 : i32
    %c0_i32_1 = arith.constant 0 : i32
    return %c0_i32, %c0_i32_0 : i32, i32
  }
  func.func @transform_7(%arg0: i32) -> (i32, i32) {
    %c0_i32 = arith.constant 0 : i32
    %c0_i32_0 = arith.constant 0 : i32
    return %arg0, %c0_i32 : i32, i32
  }
}

module attributes {stable_mosaic.version = 11 : i64} {
  func.func @_self_attn_ln_kernel(%arg0: i32, %arg1: memref<1x8x32xf32, #tpu.memory_space<vmem>>, %arg2: memref<32x96xbf16, #tpu.memory_space<vmem>>, %arg3: memref<1x96xf32, #tpu.memory_space<vmem>>, %arg4: memref<32x32xbf16, #tpu.memory_space<vmem>>, %arg5: memref<1x32xf32, #tpu.memory_space<vmem>>, %arg6: memref<1x8x8xf32, #tpu.memory_space<vmem>>, %arg7: memref<1x32xf32, #tpu.memory_space<vmem>>, %arg8: memref<1x32xf32, #tpu.memory_space<vmem>>, %arg9: memref<1x8x32xf32, #tpu.memory_space<vmem>>, %arg10: memref<8x32xf32, #tpu.memory_space<vmem>>) attributes {dimension_semantics = [#tpu.dimension_semantics<parallel>], iteration_bounds = array<i64: 2>, scalar_prefetch = 0 : i64, scratch_operands = 1 : i64, tpu.core_type = #tpu.core_type<tc>, window_params = [{transform_indices = @transform_0, window_bounds = array<i64: 1, 8, 32>}, {pipeline_mode = #tpu.pipeline_mode<synchronous>, transform_indices = @transform_1, window_bounds = array<i64: 32, 96>}, {pipeline_mode = #tpu.pipeline_mode<synchronous>, transform_indices = @transform_2, window_bounds = array<i64: 1, 96>}, {pipeline_mode = #tpu.pipeline_mode<synchronous>, transform_indices = @transform_3, window_bounds = array<i64: 32, 32>}, {pipeline_mode = #tpu.pipeline_mode<synchronous>, transform_indices = @transform_4, window_bounds = array<i64: 1, 32>}, {pipeline_mode = #tpu.pipeline_mode<synchronous>, transform_indices = @transform_5, window_bounds = array<i64: 1, 8, 8>}, {pipeline_mode = #tpu.pipeline_mode<synchronous>, transform_indices = @transform_6, window_bounds = array<i64: 1, 32>}, {pipeline_mode = #tpu.pipeline_mode<synchronous>, transform_indices = @transform_7, window_bounds = array<i64: 1, 32>}, {transform_indices = @transform_8, window_bounds = array<i64: 1, 8, 32>}]} {
    %c0 = arith.constant 0 : index
    %c0_0 = arith.constant 0 : index
    %c0_1 = arith.constant 0 : index
    %0 = vector.load %arg1[%c0, %c0_0, %c0_1] : memref<1x8x32xf32, #tpu.memory_space<vmem>>, vector<1x8x32xf32>
    %1 = vector.shape_cast %0 : vector<1x8x32xf32> to vector<8x32xf32>
    %2 = arith.truncf %1 : vector<8x32xf32> to vector<8x32xbf16>
    %c0_2 = arith.constant 0 : index
    %c0_3 = arith.constant 0 : index
    %3 = vector.load %arg2[%c0_2, %c0_3] : memref<32x96xbf16, #tpu.memory_space<vmem>>, vector<32x96xbf16>
    %cst = arith.constant dense<0.000000e+00> : vector<8x96xf32>
    %4 = tpu.matmul %2, %3, %cst {dimension_numbers = #tpu.dot_dimension_numbers<[1], [0], [0], [1], [0, 0, 1, 1], [], []>} : vector<8x32xbf16>, vector<32x96xbf16>, vector<8x96xf32> -> vector<8x96xf32>
    %c0_4 = arith.constant 0 : index
    %c0_5 = arith.constant 0 : index
    %5 = vector.load %arg3[%c0_4, %c0_5] : memref<1x96xf32, #tpu.memory_space<vmem>>, vector<1x96xf32>
    %6 = vector.broadcast %5 : vector<1x96xf32> to vector<8x96xf32>
    %7 = arith.addf %4, %6 : vector<8x96xf32>
    %8 = vector.extract_strided_slice %7 {offsets = [0, 0], sizes = [8, 32], strides = [1, 1]} : vector<8x96xf32> to vector<8x32xf32>
    %9 = vector.extract_strided_slice %7 {offsets = [0, 32], sizes = [8, 32], strides = [1, 1]} : vector<8x96xf32> to vector<8x32xf32>
    %10 = vector.extract_strided_slice %7 {offsets = [0, 64], sizes = [8, 32], strides = [1, 1]} : vector<8x96xf32> to vector<8x32xf32>
    %c0_6 = arith.constant 0 : index
    %c0_7 = arith.constant 0 : index
    %c0_8 = arith.constant 0 : index
    %11 = vector.load %arg6[%c0_6, %c0_7, %c0_8] : memref<1x8x8xf32, #tpu.memory_space<vmem>>, vector<1x8x8xf32>
    %12 = vector.shape_cast %11 : vector<1x8x8xf32> to vector<8x8xf32>
    %13 = vector.extract_strided_slice %8 {offsets = [0, 0], sizes = [8, 8], strides = [1, 1]} : vector<8x32xf32> to vector<8x8xf32>
    %cst_9 = arith.constant 0.353553385 : f32
    %14 = vector.broadcast %cst_9 : f32 to vector<8x8xf32>
    %15 = arith.mulf %13, %14 : vector<8x8xf32>
    %16 = vector.extract_strided_slice %9 {offsets = [0, 0], sizes = [8, 8], strides = [1, 1]} : vector<8x32xf32> to vector<8x8xf32>
    %17 = vector.extract_strided_slice %10 {offsets = [0, 0], sizes = [8, 8], strides = [1, 1]} : vector<8x32xf32> to vector<8x8xf32>
    %18 = arith.truncf %15 : vector<8x8xf32> to vector<8x8xbf16>
    %19 = arith.truncf %16 : vector<8x8xf32> to vector<8x8xbf16>
    %cst_10 = arith.constant dense<0.000000e+00> : vector<8x8xf32>
    %20 = tpu.matmul %18, %19, %cst_10 {dimension_numbers = #tpu.dot_dimension_numbers<[1], [1], [0], [0], [0, 0, 1, 0], [], []>} : vector<8x8xbf16>, vector<8x8xbf16>, vector<8x8xf32> -> vector<8x8xf32>
    %21 = arith.addf %20, %12 : vector<8x8xf32>
    %cst_11 = arith.constant dense<0xFF800000> : vector<8xf32>
    %22 = vector.multi_reduction <maximumf>, %21, %cst_11 [1] : vector<8x8xf32> to vector<8xf32>
    %23 = vector.shape_cast %22 : vector<8xf32> to vector<8x1xf32>
    %24 = vector.broadcast %23 : vector<8x1xf32> to vector<8x8xf32>
    %25 = arith.subf %21, %24 : vector<8x8xf32>
    %26 = math.exp %25 : vector<8x8xf32>
    %cst_12 = arith.constant dense<0.000000e+00> : vector<8xf32>
    %27 = vector.multi_reduction <add>, %26, %cst_12 [1] : vector<8x8xf32> to vector<8xf32>
    %28 = vector.shape_cast %27 : vector<8xf32> to vector<8x1xf32>
    %29 = tpu.reciprocal %28 {approx = true} : vector<8x1xf32> -> vector<8x1xf32>
    %30 = vector.broadcast %29 : vector<8x1xf32> to vector<8x8xf32>
    %31 = arith.mulf %26, %30 : vector<8x8xf32>
    %32 = arith.truncf %31 : vector<8x8xf32> to vector<8x8xbf16>
    %33 = arith.truncf %17 : vector<8x8xf32> to vector<8x8xbf16>
    %cst_13 = arith.constant dense<0.000000e+00> : vector<8x8xf32>
    %34 = tpu.matmul %32, %33, %cst_13 {dimension_numbers = #tpu.dot_dimension_numbers<[1], [0], [0], [1], [0, 0, 1, 1], [], []>} : vector<8x8xbf16>, vector<8x8xbf16>, vector<8x8xf32> -> vector<8x8xf32>
    %c0_14 = arith.constant 0 : index
    %c0_15 = arith.constant 0 : index
    %35 = vector.load %arg10[%c0_14, %c0_15] : memref<8x32xf32, #tpu.memory_space<vmem>>, vector<8x8xf32>
    tpu.vector_store %arg10[%c0_14, %c0_15], %34 {strides = array<i32>} : memref<8x32xf32, #tpu.memory_space<vmem>>, vector<8x8xf32>,
    %36 = vector.extract_strided_slice %8 {offsets = [0, 8], sizes = [8, 8], strides = [1, 1]} : vector<8x32xf32> to vector<8x8xf32>
    %cst_16 = arith.constant 0.353553385 : f32
    %37 = vector.broadcast %cst_16 : f32 to vector<8x8xf32>
    %38 = arith.mulf %36, %37 : vector<8x8xf32>
    %39 = vector.extract_strided_slice %9 {offsets = [0, 8], sizes = [8, 8], strides = [1, 1]} : vector<8x32xf32> to vector<8x8xf32>
    %40 = vector.extract_strided_slice %10 {offsets = [0, 8], sizes = [8, 8], strides = [1, 1]} : vector<8x32xf32> to vector<8x8xf32>
    %41 = arith.truncf %38 : vector<8x8xf32> to vector<8x8xbf16>
    %42 = arith.truncf %39 : vector<8x8xf32> to vector<8x8xbf16>
    %cst_17 = arith.constant dense<0.000000e+00> : vector<8x8xf32>
    %43 = tpu.matmul %41, %42, %cst_17 {dimension_numbers = #tpu.dot_dimension_numbers<[1], [1], [0], [0], [0, 0, 1, 0], [], []>} : vector<8x8xbf16>, vector<8x8xbf16>, vector<8x8xf32> -> vector<8x8xf32>
    %44 = arith.addf %43, %12 : vector<8x8xf32>
    %cst_18 = arith.constant dense<0xFF800000> : vector<8xf32>
    %45 = vector.multi_reduction <maximumf>, %44, %cst_18 [1] : vector<8x8xf32> to vector<8xf32>
    %46 = vector.shape_cast %45 : vector<8xf32> to vector<8x1xf32>
    %47 = vector.broadcast %46 : vector<8x1xf32> to vector<8x8xf32>
    %48 = arith.subf %44, %47 : vector<8x8xf32>
    %49 = math.exp %48 : vector<8x8xf32>
    %cst_19 = arith.constant dense<0.000000e+00> : vector<8xf32>
    %50 = vector.multi_reduction <add>, %49, %cst_19 [1] : vector<8x8xf32> to vector<8xf32>
    %51 = vector.shape_cast %50 : vector<8xf32> to vector<8x1xf32>
    %52 = tpu.reciprocal %51 {approx = true} : vector<8x1xf32> -> vector<8x1xf32>
    %53 = vector.broadcast %52 : vector<8x1xf32> to vector<8x8xf32>
    %54 = arith.mulf %49, %53 : vector<8x8xf32>
    %55 = arith.truncf %54 : vector<8x8xf32> to vector<8x8xbf16>
    %56 = arith.truncf %40 : vector<8x8xf32> to vector<8x8xbf16>
    %cst_20 = arith.constant dense<0.000000e+00> : vector<8x8xf32>
    %57 = tpu.matmul %55, %56, %cst_20 {dimension_numbers = #tpu.dot_dimension_numbers<[1], [0], [0], [1], [0, 0, 1, 1], [], []>} : vector<8x8xbf16>, vector<8x8xbf16>, vector<8x8xf32> -> vector<8x8xf32>
    %c0_21 = arith.constant 0 : index
    %c8 = arith.constant 8 : index
    %58 = vector.load %arg10[%c0_21, %c8] : memref<8x32xf32, #tpu.memory_space<vmem>>, vector<8x8xf32>
    tpu.vector_store %arg10[%c0_21, %c8], %57 {strides = array<i32>} : memref<8x32xf32, #tpu.memory_space<vmem>>, vector<8x8xf32>,
    %59 = vector.extract_strided_slice %8 {offsets = [0, 16], sizes = [8, 8], strides = [1, 1]} : vector<8x32xf32> to vector<8x8xf32>
    %cst_22 = arith.constant 0.353553385 : f32
    %60 = vector.broadcast %cst_22 : f32 to vector<8x8xf32>
    %61 = arith.mulf %59, %60 : vector<8x8xf32>
    %62 = vector.extract_strided_slice %9 {offsets = [0, 16], sizes = [8, 8], strides = [1, 1]} : vector<8x32xf32> to vector<8x8xf32>
    %63 = vector.extract_strided_slice %10 {offsets = [0, 16], sizes = [8, 8], strides = [1, 1]} : vector<8x32xf32> to vector<8x8xf32>
    %64 = arith.truncf %61 : vector<8x8xf32> to vector<8x8xbf16>
    %65 = arith.truncf %62 : vector<8x8xf32> to vector<8x8xbf16>
    %cst_23 = arith.constant dense<0.000000e+00> : vector<8x8xf32>
    %66 = tpu.matmul %64, %65, %cst_23 {dimension_numbers = #tpu.dot_dimension_numbers<[1], [1], [0], [0], [0, 0, 1, 0], [], []>} : vector<8x8xbf16>, vector<8x8xbf16>, vector<8x8xf32> -> vector<8x8xf32>
    %67 = arith.addf %66, %12 : vector<8x8xf32>
    %cst_24 = arith.constant dense<0xFF800000> : vector<8xf32>
    %68 = vector.multi_reduction <maximumf>, %67, %cst_24 [1] : vector<8x8xf32> to vector<8xf32>
    %69 = vector.shape_cast %68 : vector<8xf32> to vector<8x1xf32>
    %70 = vector.broadcast %69 : vector<8x1xf32> to vector<8x8xf32>
    %71 = arith.subf %67, %70 : vector<8x8xf32>
    %72 = math.exp %71 : vector<8x8xf32>
    %cst_25 = arith.constant dense<0.000000e+00> : vector<8xf32>
    %73 = vector.multi_reduction <add>, %72, %cst_25 [1] : vector<8x8xf32> to vector<8xf32>
    %74 = vector.shape_cast %73 : vector<8xf32> to vector<8x1xf32>
    %75 = tpu.reciprocal %74 {approx = true} : vector<8x1xf32> -> vector<8x1xf32>
    %76 = vector.broadcast %75 : vector<8x1xf32> to vector<8x8xf32>
    %77 = arith.mulf %72, %76 : vector<8x8xf32>
    %78 = arith.truncf %77 : vector<8x8xf32> to vector<8x8xbf16>
    %79 = arith.truncf %63 : vector<8x8xf32> to vector<8x8xbf16>
    %cst_26 = arith.constant dense<0.000000e+00> : vector<8x8xf32>
    %80 = tpu.matmul %78, %79, %cst_26 {dimension_numbers = #tpu.dot_dimension_numbers<[1], [0], [0], [1], [0, 0, 1, 1], [], []>} : vector<8x8xbf16>, vector<8x8xbf16>, vector<8x8xf32> -> vector<8x8xf32>
    %c0_27 = arith.constant 0 : index
    %c16 = arith.constant 16 : index
    %81 = vector.load %arg10[%c0_27, %c16] : memref<8x32xf32, #tpu.memory_space<vmem>>, vector<8x8xf32>
    tpu.vector_store %arg10[%c0_27, %c16], %80 {strides = array<i32>} : memref<8x32xf32, #tpu.memory_space<vmem>>, vector<8x8xf32>,
    %82 = vector.extract_strided_slice %8 {offsets = [0, 24], sizes = [8, 8], strides = [1, 1]} : vector<8x32xf32> to vector<8x8xf32>
    %cst_28 = arith.constant 0.353553385 : f32
    %83 = vector.broadcast %cst_28 : f32 to vector<8x8xf32>
    %84 = arith.mulf %82, %83 : vector<8x8xf32>
    %85 = vector.extract_strided_slice %9 {offsets = [0, 24], sizes = [8, 8], strides = [1, 1]} : vector<8x32xf32> to vector<8x8xf32>
    %86 = vector.extract_strided_slice %10 {offsets = [0, 24], sizes = [8, 8], strides = [1, 1]} : vector<8x32xf32> to vector<8x8xf32>
    %87 = arith.truncf %84 : vector<8x8xf32> to vector<8x8xbf16>
    %88 = arith.truncf %85 : vector<8x8xf32> to vector<8x8xbf16>
    %cst_29 = arith.constant dense<0.000000e+00> : vector<8x8xf32>
    %89 = tpu.matmul %87, %88, %cst_29 {dimension_numbers = #tpu.dot_dimension_numbers<[1], [1], [0], [0], [0, 0, 1, 0], [], []>} : vector<8x8xbf16>, vector<8x8xbf16>, vector<8x8xf32> -> vector<8x8xf32>
    %90 = arith.addf %89, %12 : vector<8x8xf32>
    %cst_30 = arith.constant dense<0xFF800000> : vector<8xf32>
    %91 = vector.multi_reduction <maximumf>, %90, %cst_30 [1] : vector<8x8xf32> to vector<8xf32>
    %92 = vector.shape_cast %91 : vector<8xf32> to vector<8x1xf32>
    %93 = vector.broadcast %92 : vector<8x1xf32> to vector<8x8xf32>
    %94 = arith.subf %90, %93 : vector<8x8xf32>
    %95 = math.exp %94 : vector<8x8xf32>
    %cst_31 = arith.constant dense<0.000000e+00> : vector<8xf32>
    %96 = vector.multi_reduction <add>, %95, %cst_31 [1] : vector<8x8xf32> to vector<8xf32>
    %97 = vector.shape_cast %96 : vector<8xf32> to vector<8x1xf32>
    %98 = tpu.reciprocal %97 {approx = true} : vector<8x1xf32> -> vector<8x1xf32>
    %99 = vector.broadcast %98 : vector<8x1xf32> to vector<8x8xf32>
    %100 = arith.mulf %95, %99 : vector<8x8xf32>
    %101 = arith.truncf %100 : vector<8x8xf32> to vector<8x8xbf16>
    %102 = arith.truncf %86 : vector<8x8xf32> to vector<8x8xbf16>
    %cst_32 = arith.constant dense<0.000000e+00> : vector<8x8xf32>
    %103 = tpu.matmul %101, %102, %cst_32 {dimension_numbers = #tpu.dot_dimension_numbers<[1], [0], [0], [1], [0, 0, 1, 1], [], []>} : vector<8x8xbf16>, vector<8x8xbf16>, vector<8x8xf32> -> vector<8x8xf32>
    %c0_33 = arith.constant 0 : index
    %c24 = arith.constant 24 : index
    %104 = vector.load %arg10[%c0_33, %c24] : memref<8x32xf32, #tpu.memory_space<vmem>>, vector<8x8xf32>
    tpu.vector_store %arg10[%c0_33, %c24], %103 {strides = array<i32>} : memref<8x32xf32, #tpu.memory_space<vmem>>, vector<8x8xf32>,
    %c0_34 = arith.constant 0 : index
    %c0_35 = arith.constant 0 : index
    %105 = vector.load %arg10[%c0_34, %c0_35] : memref<8x32xf32, #tpu.memory_space<vmem>>, vector<8x32xf32>
    %106 = arith.truncf %105 : vector<8x32xf32> to vector<8x32xbf16>
    %c0_36 = arith.constant 0 : index
    %c0_37 = arith.constant 0 : index
    %107 = vector.load %arg4[%c0_36, %c0_37] : memref<32x32xbf16, #tpu.memory_space<vmem>>, vector<32x32xbf16>
    %cst_38 = arith.constant dense<0.000000e+00> : vector<8x32xf32>
    %108 = tpu.matmul %106, %107, %cst_38 {dimension_numbers = #tpu.dot_dimension_numbers<[1], [0], [0], [1], [0, 0, 1, 1], [], []>} : vector<8x32xbf16>, vector<32x32xbf16>, vector<8x32xf32> -> vector<8x32xf32>
    %c0_39 = arith.constant 0 : index
    %c0_40 = arith.constant 0 : index
    %109 = vector.load %arg5[%c0_39, %c0_40] : memref<1x32xf32, #tpu.memory_space<vmem>>, vector<1x32xf32>
    %110 = vector.broadcast %109 : vector<1x32xf32> to vector<8x32xf32>
    %111 = arith.addf %108, %110 : vector<8x32xf32>
    %112 = arith.addf %111, %1 : vector<8x32xf32>
    %c0_41 = arith.constant 0 : index
    %c0_42 = arith.constant 0 : index
    %113 = vector.load %arg7[%c0_41, %c0_42] : memref<1x32xf32, #tpu.memory_space<vmem>>, vector<1x32xf32>
    %c0_43 = arith.constant 0 : index
    %c0_44 = arith.constant 0 : index
    %114 = vector.load %arg8[%c0_43, %c0_44] : memref<1x32xf32, #tpu.memory_space<vmem>>, vector<1x32xf32>
    %cst_45 = arith.constant dense<0.000000e+00> : vector<8xf32>
    %115 = vector.multi_reduction <add>, %112, %cst_45 [1] : vector<8x32xf32> to vector<8xf32>
    %116 = vector.shape_cast %115 : vector<8xf32> to vector<8x1xf32>
    %cst_46 = arith.constant 3.200000e+01 : f32
    %117 = vector.broadcast %cst_46 : f32 to vector<8x1xf32>
    %118 = arith.divf %116, %117 : vector<8x1xf32>
    %119 = vector.broadcast %118 : vector<8x1xf32> to vector<8x32xf32>
    %120 = arith.subf %112, %119 : vector<8x32xf32>
    %121 = arith.mulf %120, %120 : vector<8x32xf32>
    %cst_47 = arith.constant dense<0.000000e+00> : vector<8xf32>
    %122 = vector.multi_reduction <add>, %121, %cst_47 [1] : vector<8x32xf32> to vector<8xf32>
    %123 = vector.shape_cast %122 : vector<8xf32> to vector<8x1xf32>
    %cst_48 = arith.constant 3.200000e+01 : f32
    %124 = vector.broadcast %cst_48 : f32 to vector<8x1xf32>
    %125 = arith.divf %123, %124 : vector<8x1xf32>
    %cst_49 = arith.constant 9.99999974E-6 : f32
    %126 = vector.broadcast %cst_49 : f32 to vector<8x1xf32>
    %127 = arith.addf %125, %126 : vector<8x1xf32>
    %128 = math.rsqrt %127 : vector<8x1xf32>
    %129 = vector.broadcast %118 : vector<8x1xf32> to vector<8x32xf32>
    %130 = arith.subf %112, %129 : vector<8x32xf32>
    %131 = vector.broadcast %128 : vector<8x1xf32> to vector<8x32xf32>
    %132 = arith.mulf %130, %131 : vector<8x32xf32>
    %133 = vector.broadcast %113 : vector<1x32xf32> to vector<8x32xf32>
    %134 = arith.mulf %132, %133 : vector<8x32xf32>
    %135 = vector.broadcast %114 : vector<1x32xf32> to vector<8x32xf32>
    %136 = arith.addf %134, %135 : vector<8x32xf32>
    %c0_50 = arith.constant 0 : index
    %c0_51 = arith.constant 0 : index
    %c0_52 = arith.constant 0 : index
    %137 = vector.load %arg9[%c0_50, %c0_51, %c0_52] : memref<1x8x32xf32, #tpu.memory_space<vmem>>, vector<1x8x32xf32>
    %138 = vector.shape_cast %137 : vector<1x8x32xf32> to vector<8x32xf32>
    %139 = vector.shape_cast %136 : vector<8x32xf32> to vector<1x8x32xf32>
    tpu.vector_store %arg9[%c0_50, %c0_51, %c0_52], %139 {strides = array<i32>} : memref<1x8x32xf32, #tpu.memory_space<vmem>>, vector<1x8x32xf32>,
    return
  }
  func.func @transform_0(%arg0: i32) -> (i32, i32, i32) {
    %c0_i32 = arith.constant 0 : i32
    %c0_i32_0 = arith.constant 0 : i32
    %c0_i32_1 = arith.constant 0 : i32
    return %arg0, %c0_i32, %c0_i32_0 : i32, i32, i32
  }
  func.func @transform_1(%arg0: i32) -> (i32, i32) {
    %c0_i32 = arith.constant 0 : i32
    %c0_i32_0 = arith.constant 0 : i32
    %c0_i32_1 = arith.constant 0 : i32
    return %c0_i32, %c0_i32_0 : i32, i32
  }
  func.func @transform_2(%arg0: i32) -> (i32, i32) {
    %c0_i32 = arith.constant 0 : i32
    %c0_i32_0 = arith.constant 0 : i32
    %c0_i32_1 = arith.constant 0 : i32
    return %c0_i32, %c0_i32_0 : i32, i32
  }
  func.func @transform_3(%arg0: i32) -> (i32, i32) {
    %c0_i32 = arith.constant 0 : i32
    %c0_i32_0 = arith.constant 0 : i32
    %c0_i32_1 = arith.constant 0 : i32
    return %c0_i32, %c0_i32_0 : i32, i32
  }
  func.func @transform_4(%arg0: i32) -> (i32, i32) {
    %c0_i32 = arith.constant 0 : i32
    %c0_i32_0 = arith.constant 0 : i32
    %c0_i32_1 = arith.constant 0 : i32
    return %c0_i32, %c0_i32_0 : i32, i32
  }
  func.func @transform_5(%arg0: i32) -> (i32, i32, i32) {
    %c0_i32 = arith.constant 0 : i32
    %c0_i32_0 = arith.constant 0 : i32
    %c0_i32_1 = arith.constant 0 : i32
    %c0_i32_2 = arith.constant 0 : i32
    return %c0_i32, %c0_i32_0, %c0_i32_1 : i32, i32, i32
  }
  func.func @transform_6(%arg0: i32) -> (i32, i32) {
    %c0_i32 = arith.constant 0 : i32
    %c0_i32_0 = arith.constant 0 : i32
    %c0_i32_1 = arith.constant 0 : i32
    return %c0_i32, %c0_i32_0 : i32, i32
  }
  func.func @transform_7(%arg0: i32) -> (i32, i32) {
    %c0_i32 = arith.constant 0 : i32
    %c0_i32_0 = arith.constant 0 : i32
    %c0_i32_1 = arith.constant 0 : i32
    return %c0_i32, %c0_i32_0 : i32, i32
  }
  func.func @transform_8(%arg0: i32) -> (i32, i32, i32) {
    %c0_i32 = arith.constant 0 : i32
    %c0_i32_0 = arith.constant 0 : i32
    %c0_i32_1 = arith.constant 0 : i32
    return %arg0, %c0_i32, %c0_i32_0 : i32, i32, i32
  }
}

module attributes {stable_mosaic.version = 11 : i64} {
  func.func @_self_attn_ln_kernel(%arg0: i32, %arg1: memref<1x8x32xf32, #tpu.memory_space<vmem>>, %arg2: memref<32x96xbf16, #tpu.memory_space<vmem>>, %arg3: memref<1x96xf32, #tpu.memory_space<vmem>>, %arg4: memref<32x32xbf16, #tpu.memory_space<vmem>>, %arg5: memref<1x32xf32, #tpu.memory_space<vmem>>, %arg6: memref<1x1x8xf32, #tpu.memory_space<vmem>>, %arg7: memref<1x32xf32, #tpu.memory_space<vmem>>, %arg8: memref<1x32xf32, #tpu.memory_space<vmem>>, %arg9: memref<1x8x32xf32, #tpu.memory_space<vmem>>, %arg10: memref<8x32xf32, #tpu.memory_space<vmem>>) attributes {dimension_semantics = [#tpu.dimension_semantics<parallel>], iteration_bounds = array<i64: 2>, scalar_prefetch = 0 : i64, scratch_operands = 1 : i64, tpu.core_type = #tpu.core_type<tc>, window_params = [{transform_indices = @transform_0, window_bounds = array<i64: 1, 8, 32>}, {pipeline_mode = #tpu.pipeline_mode<synchronous>, transform_indices = @transform_1, window_bounds = array<i64: 32, 96>}, {pipeline_mode = #tpu.pipeline_mode<synchronous>, transform_indices = @transform_2, window_bounds = array<i64: 1, 96>}, {pipeline_mode = #tpu.pipeline_mode<synchronous>, transform_indices = @transform_3, window_bounds = array<i64: 32, 32>}, {pipeline_mode = #tpu.pipeline_mode<synchronous>, transform_indices = @transform_4, window_bounds = array<i64: 1, 32>}, {transform_indices = @transform_5, window_bounds = array<i64: 1, 1, 8>}, {pipeline_mode = #tpu.pipeline_mode<synchronous>, transform_indices = @transform_6, window_bounds = array<i64: 1, 32>}, {pipeline_mode = #tpu.pipeline_mode<synchronous>, transform_indices = @transform_7, window_bounds = array<i64: 1, 32>}, {transform_indices = @transform_8, window_bounds = array<i64: 1, 8, 32>}]} {
    %c0 = arith.constant 0 : index
    %c0_0 = arith.constant 0 : index
    %c0_1 = arith.constant 0 : index
    %0 = vector.load %arg1[%c0, %c0_0, %c0_1] : memref<1x8x32xf32, #tpu.memory_space<vmem>>, vector<1x8x32xf32>
    %1 = vector.shape_cast %0 : vector<1x8x32xf32> to vector<8x32xf32>
    %2 = arith.truncf %1 : vector<8x32xf32> to vector<8x32xbf16>
    %c0_2 = arith.constant 0 : index
    %c0_3 = arith.constant 0 : index
    %3 = vector.load %arg2[%c0_2, %c0_3] : memref<32x96xbf16, #tpu.memory_space<vmem>>, vector<32x96xbf16>
    %cst = arith.constant dense<0.000000e+00> : vector<8x96xf32>
    %4 = tpu.matmul %2, %3, %cst {dimension_numbers = #tpu.dot_dimension_numbers<[1], [0], [0], [1], [0, 0, 1, 1], [], []>} : vector<8x32xbf16>, vector<32x96xbf16>, vector<8x96xf32> -> vector<8x96xf32>
    %c0_4 = arith.constant 0 : index
    %c0_5 = arith.constant 0 : index
    %5 = vector.load %arg3[%c0_4, %c0_5] : memref<1x96xf32, #tpu.memory_space<vmem>>, vector<1x96xf32>
    %6 = vector.broadcast %5 : vector<1x96xf32> to vector<8x96xf32>
    %7 = arith.addf %4, %6 : vector<8x96xf32>
    %8 = vector.extract_strided_slice %7 {offsets = [0, 0], sizes = [8, 32], strides = [1, 1]} : vector<8x96xf32> to vector<8x32xf32>
    %9 = vector.extract_strided_slice %7 {offsets = [0, 32], sizes = [8, 32], strides = [1, 1]} : vector<8x96xf32> to vector<8x32xf32>
    %10 = vector.extract_strided_slice %7 {offsets = [0, 64], sizes = [8, 32], strides = [1, 1]} : vector<8x96xf32> to vector<8x32xf32>
    %c0_6 = arith.constant 0 : index
    %c0_7 = arith.constant 0 : index
    %c0_8 = arith.constant 0 : index
    %11 = vector.load %arg6[%c0_6, %c0_7, %c0_8] : memref<1x1x8xf32, #tpu.memory_space<vmem>>, vector<1x1x8xf32>
    %12 = vector.shape_cast %11 : vector<1x1x8xf32> to vector<1x8xf32>
    %13 = vector.extract_strided_slice %8 {offsets = [0, 0], sizes = [8, 8], strides = [1, 1]} : vector<8x32xf32> to vector<8x8xf32>
    %cst_9 = arith.constant 0.353553385 : f32
    %14 = vector.broadcast %cst_9 : f32 to vector<8x8xf32>
    %15 = arith.mulf %13, %14 : vector<8x8xf32>
    %16 = vector.extract_strided_slice %9 {offsets = [0, 0], sizes = [8, 8], strides = [1, 1]} : vector<8x32xf32> to vector<8x8xf32>
    %17 = vector.extract_strided_slice %10 {offsets = [0, 0], sizes = [8, 8], strides = [1, 1]} : vector<8x32xf32> to vector<8x8xf32>
    %18 = arith.truncf %15 : vector<8x8xf32> to vector<8x8xbf16>
    %19 = arith.truncf %16 : vector<8x8xf32> to vector<8x8xbf16>
    %cst_10 = arith.constant dense<0.000000e+00> : vector<8x8xf32>
    %20 = tpu.matmul %18, %19, %cst_10 {dimension_numbers = #tpu.dot_dimension_numbers<[1], [1], [0], [0], [0, 0, 1, 0], [], []>} : vector<8x8xbf16>, vector<8x8xbf16>, vector<8x8xf32> -> vector<8x8xf32>
    %21 = vector.broadcast %12 : vector<1x8xf32> to vector<8x8xf32>
    %22 = arith.addf %20, %21 : vector<8x8xf32>
    %cst_11 = arith.constant dense<0xFF800000> : vector<8xf32>
    %23 = vector.multi_reduction <maximumf>, %22, %cst_11 [1] : vector<8x8xf32> to vector<8xf32>
    %24 = vector.shape_cast %23 : vector<8xf32> to vector<8x1xf32>
    %25 = vector.broadcast %24 : vector<8x1xf32> to vector<8x8xf32>
    %26 = arith.subf %22, %25 : vector<8x8xf32>
    %27 = math.exp %26 : vector<8x8xf32>
    %cst_12 = arith.constant dense<0.000000e+00> : vector<8xf32>
    %28 = vector.multi_reduction <add>, %27, %cst_12 [1] : vector<8x8xf32> to vector<8xf32>
    %29 = vector.shape_cast %28 : vector<8xf32> to vector<8x1xf32>
    %30 = tpu.reciprocal %29 {approx = true} : vector<8x1xf32> -> vector<8x1xf32>
    %31 = vector.broadcast %30 : vector<8x1xf32> to vector<8x8xf32>
    %32 = arith.mulf %27, %31 : vector<8x8xf32>
    %33 = arith.truncf %32 : vector<8x8xf32> to vector<8x8xbf16>
    %34 = arith.truncf %17 : vector<8x8xf32> to vector<8x8xbf16>
    %cst_13 = arith.constant dense<0.000000e+00> : vector<8x8xf32>
    %35 = tpu.matmul %33, %34, %cst_13 {dimension_numbers = #tpu.dot_dimension_numbers<[1], [0], [0], [1], [0, 0, 1, 1], [], []>} : vector<8x8xbf16>, vector<8x8xbf16>, vector<8x8xf32> -> vector<8x8xf32>
    %c0_14 = arith.constant 0 : index
    %c0_15 = arith.constant 0 : index
    %36 = vector.load %arg10[%c0_14, %c0_15] : memref<8x32xf32, #tpu.memory_space<vmem>>, vector<8x8xf32>
    tpu.vector_store %arg10[%c0_14, %c0_15], %35 {strides = array<i32>} : memref<8x32xf32, #tpu.memory_space<vmem>>, vector<8x8xf32>,
    %37 = vector.extract_strided_slice %8 {offsets = [0, 8], sizes = [8, 8], strides = [1, 1]} : vector<8x32xf32> to vector<8x8xf32>
    %cst_16 = arith.constant 0.353553385 : f32
    %38 = vector.broadcast %cst_16 : f32 to vector<8x8xf32>
    %39 = arith.mulf %37, %38 : vector<8x8xf32>
    %40 = vector.extract_strided_slice %9 {offsets = [0, 8], sizes = [8, 8], strides = [1, 1]} : vector<8x32xf32> to vector<8x8xf32>
    %41 = vector.extract_strided_slice %10 {offsets = [0, 8], sizes = [8, 8], strides = [1, 1]} : vector<8x32xf32> to vector<8x8xf32>
    %42 = arith.truncf %39 : vector<8x8xf32> to vector<8x8xbf16>
    %43 = arith.truncf %40 : vector<8x8xf32> to vector<8x8xbf16>
    %cst_17 = arith.constant dense<0.000000e+00> : vector<8x8xf32>
    %44 = tpu.matmul %42, %43, %cst_17 {dimension_numbers = #tpu.dot_dimension_numbers<[1], [1], [0], [0], [0, 0, 1, 0], [], []>} : vector<8x8xbf16>, vector<8x8xbf16>, vector<8x8xf32> -> vector<8x8xf32>
    %45 = vector.broadcast %12 : vector<1x8xf32> to vector<8x8xf32>
    %46 = arith.addf %44, %45 : vector<8x8xf32>
    %cst_18 = arith.constant dense<0xFF800000> : vector<8xf32>
    %47 = vector.multi_reduction <maximumf>, %46, %cst_18 [1] : vector<8x8xf32> to vector<8xf32>
    %48 = vector.shape_cast %47 : vector<8xf32> to vector<8x1xf32>
    %49 = vector.broadcast %48 : vector<8x1xf32> to vector<8x8xf32>
    %50 = arith.subf %46, %49 : vector<8x8xf32>
    %51 = math.exp %50 : vector<8x8xf32>
    %cst_19 = arith.constant dense<0.000000e+00> : vector<8xf32>
    %52 = vector.multi_reduction <add>, %51, %cst_19 [1] : vector<8x8xf32> to vector<8xf32>
    %53 = vector.shape_cast %52 : vector<8xf32> to vector<8x1xf32>
    %54 = tpu.reciprocal %53 {approx = true} : vector<8x1xf32> -> vector<8x1xf32>
    %55 = vector.broadcast %54 : vector<8x1xf32> to vector<8x8xf32>
    %56 = arith.mulf %51, %55 : vector<8x8xf32>
    %57 = arith.truncf %56 : vector<8x8xf32> to vector<8x8xbf16>
    %58 = arith.truncf %41 : vector<8x8xf32> to vector<8x8xbf16>
    %cst_20 = arith.constant dense<0.000000e+00> : vector<8x8xf32>
    %59 = tpu.matmul %57, %58, %cst_20 {dimension_numbers = #tpu.dot_dimension_numbers<[1], [0], [0], [1], [0, 0, 1, 1], [], []>} : vector<8x8xbf16>, vector<8x8xbf16>, vector<8x8xf32> -> vector<8x8xf32>
    %c0_21 = arith.constant 0 : index
    %c8 = arith.constant 8 : index
    %60 = vector.load %arg10[%c0_21, %c8] : memref<8x32xf32, #tpu.memory_space<vmem>>, vector<8x8xf32>
    tpu.vector_store %arg10[%c0_21, %c8], %59 {strides = array<i32>} : memref<8x32xf32, #tpu.memory_space<vmem>>, vector<8x8xf32>,
    %61 = vector.extract_strided_slice %8 {offsets = [0, 16], sizes = [8, 8], strides = [1, 1]} : vector<8x32xf32> to vector<8x8xf32>
    %cst_22 = arith.constant 0.353553385 : f32
    %62 = vector.broadcast %cst_22 : f32 to vector<8x8xf32>
    %63 = arith.mulf %61, %62 : vector<8x8xf32>
    %64 = vector.extract_strided_slice %9 {offsets = [0, 16], sizes = [8, 8], strides = [1, 1]} : vector<8x32xf32> to vector<8x8xf32>
    %65 = vector.extract_strided_slice %10 {offsets = [0, 16], sizes = [8, 8], strides = [1, 1]} : vector<8x32xf32> to vector<8x8xf32>
    %66 = arith.truncf %63 : vector<8x8xf32> to vector<8x8xbf16>
    %67 = arith.truncf %64 : vector<8x8xf32> to vector<8x8xbf16>
    %cst_23 = arith.constant dense<0.000000e+00> : vector<8x8xf32>
    %68 = tpu.matmul %66, %67, %cst_23 {dimension_numbers = #tpu.dot_dimension_numbers<[1], [1], [0], [0], [0, 0, 1, 0], [], []>} : vector<8x8xbf16>, vector<8x8xbf16>, vector<8x8xf32> -> vector<8x8xf32>
    %69 = vector.broadcast %12 : vector<1x8xf32> to vector<8x8xf32>
    %70 = arith.addf %68, %69 : vector<8x8xf32>
    %cst_24 = arith.constant dense<0xFF800000> : vector<8xf32>
    %71 = vector.multi_reduction <maximumf>, %70, %cst_24 [1] : vector<8x8xf32> to vector<8xf32>
    %72 = vector.shape_cast %71 : vector<8xf32> to vector<8x1xf32>
    %73 = vector.broadcast %72 : vector<8x1xf32> to vector<8x8xf32>
    %74 = arith.subf %70, %73 : vector<8x8xf32>
    %75 = math.exp %74 : vector<8x8xf32>
    %cst_25 = arith.constant dense<0.000000e+00> : vector<8xf32>
    %76 = vector.multi_reduction <add>, %75, %cst_25 [1] : vector<8x8xf32> to vector<8xf32>
    %77 = vector.shape_cast %76 : vector<8xf32> to vector<8x1xf32>
    %78 = tpu.reciprocal %77 {approx = true} : vector<8x1xf32> -> vector<8x1xf32>
    %79 = vector.broadcast %78 : vector<8x1xf32> to vector<8x8xf32>
    %80 = arith.mulf %75, %79 : vector<8x8xf32>
    %81 = arith.truncf %80 : vector<8x8xf32> to vector<8x8xbf16>
    %82 = arith.truncf %65 : vector<8x8xf32> to vector<8x8xbf16>
    %cst_26 = arith.constant dense<0.000000e+00> : vector<8x8xf32>
    %83 = tpu.matmul %81, %82, %cst_26 {dimension_numbers = #tpu.dot_dimension_numbers<[1], [0], [0], [1], [0, 0, 1, 1], [], []>} : vector<8x8xbf16>, vector<8x8xbf16>, vector<8x8xf32> -> vector<8x8xf32>
    %c0_27 = arith.constant 0 : index
    %c16 = arith.constant 16 : index
    %84 = vector.load %arg10[%c0_27, %c16] : memref<8x32xf32, #tpu.memory_space<vmem>>, vector<8x8xf32>
    tpu.vector_store %arg10[%c0_27, %c16], %83 {strides = array<i32>} : memref<8x32xf32, #tpu.memory_space<vmem>>, vector<8x8xf32>,
    %85 = vector.extract_strided_slice %8 {offsets = [0, 24], sizes = [8, 8], strides = [1, 1]} : vector<8x32xf32> to vector<8x8xf32>
    %cst_28 = arith.constant 0.353553385 : f32
    %86 = vector.broadcast %cst_28 : f32 to vector<8x8xf32>
    %87 = arith.mulf %85, %86 : vector<8x8xf32>
    %88 = vector.extract_strided_slice %9 {offsets = [0, 24], sizes = [8, 8], strides = [1, 1]} : vector<8x32xf32> to vector<8x8xf32>
    %89 = vector.extract_strided_slice %10 {offsets = [0, 24], sizes = [8, 8], strides = [1, 1]} : vector<8x32xf32> to vector<8x8xf32>
    %90 = arith.truncf %87 : vector<8x8xf32> to vector<8x8xbf16>
    %91 = arith.truncf %88 : vector<8x8xf32> to vector<8x8xbf16>
    %cst_29 = arith.constant dense<0.000000e+00> : vector<8x8xf32>
    %92 = tpu.matmul %90, %91, %cst_29 {dimension_numbers = #tpu.dot_dimension_numbers<[1], [1], [0], [0], [0, 0, 1, 0], [], []>} : vector<8x8xbf16>, vector<8x8xbf16>, vector<8x8xf32> -> vector<8x8xf32>
    %93 = vector.broadcast %12 : vector<1x8xf32> to vector<8x8xf32>
    %94 = arith.addf %92, %93 : vector<8x8xf32>
    %cst_30 = arith.constant dense<0xFF800000> : vector<8xf32>
    %95 = vector.multi_reduction <maximumf>, %94, %cst_30 [1] : vector<8x8xf32> to vector<8xf32>
    %96 = vector.shape_cast %95 : vector<8xf32> to vector<8x1xf32>
    %97 = vector.broadcast %96 : vector<8x1xf32> to vector<8x8xf32>
    %98 = arith.subf %94, %97 : vector<8x8xf32>
    %99 = math.exp %98 : vector<8x8xf32>
    %cst_31 = arith.constant dense<0.000000e+00> : vector<8xf32>
    %100 = vector.multi_reduction <add>, %99, %cst_31 [1] : vector<8x8xf32> to vector<8xf32>
    %101 = vector.shape_cast %100 : vector<8xf32> to vector<8x1xf32>
    %102 = tpu.reciprocal %101 {approx = true} : vector<8x1xf32> -> vector<8x1xf32>
    %103 = vector.broadcast %102 : vector<8x1xf32> to vector<8x8xf32>
    %104 = arith.mulf %99, %103 : vector<8x8xf32>
    %105 = arith.truncf %104 : vector<8x8xf32> to vector<8x8xbf16>
    %106 = arith.truncf %89 : vector<8x8xf32> to vector<8x8xbf16>
    %cst_32 = arith.constant dense<0.000000e+00> : vector<8x8xf32>
    %107 = tpu.matmul %105, %106, %cst_32 {dimension_numbers = #tpu.dot_dimension_numbers<[1], [0], [0], [1], [0, 0, 1, 1], [], []>} : vector<8x8xbf16>, vector<8x8xbf16>, vector<8x8xf32> -> vector<8x8xf32>
    %c0_33 = arith.constant 0 : index
    %c24 = arith.constant 24 : index
    %108 = vector.load %arg10[%c0_33, %c24] : memref<8x32xf32, #tpu.memory_space<vmem>>, vector<8x8xf32>
    tpu.vector_store %arg10[%c0_33, %c24], %107 {strides = array<i32>} : memref<8x32xf32, #tpu.memory_space<vmem>>, vector<8x8xf32>,
    %c0_34 = arith.constant 0 : index
    %c0_35 = arith.constant 0 : index
    %109 = vector.load %arg10[%c0_34, %c0_35] : memref<8x32xf32, #tpu.memory_space<vmem>>, vector<8x32xf32>
    %110 = arith.truncf %109 : vector<8x32xf32> to vector<8x32xbf16>
    %c0_36 = arith.constant 0 : index
    %c0_37 = arith.constant 0 : index
    %111 = vector.load %arg4[%c0_36, %c0_37] : memref<32x32xbf16, #tpu.memory_space<vmem>>, vector<32x32xbf16>
    %cst_38 = arith.constant dense<0.000000e+00> : vector<8x32xf32>
    %112 = tpu.matmul %110, %111, %cst_38 {dimension_numbers = #tpu.dot_dimension_numbers<[1], [0], [0], [1], [0, 0, 1, 1], [], []>} : vector<8x32xbf16>, vector<32x32xbf16>, vector<8x32xf32> -> vector<8x32xf32>
    %c0_39 = arith.constant 0 : index
    %c0_40 = arith.constant 0 : index
    %113 = vector.load %arg5[%c0_39, %c0_40] : memref<1x32xf32, #tpu.memory_space<vmem>>, vector<1x32xf32>
    %114 = vector.broadcast %113 : vector<1x32xf32> to vector<8x32xf32>
    %115 = arith.addf %112, %114 : vector<8x32xf32>
    %116 = arith.addf %115, %1 : vector<8x32xf32>
    %c0_41 = arith.constant 0 : index
    %c0_42 = arith.constant 0 : index
    %117 = vector.load %arg7[%c0_41, %c0_42] : memref<1x32xf32, #tpu.memory_space<vmem>>, vector<1x32xf32>
    %c0_43 = arith.constant 0 : index
    %c0_44 = arith.constant 0 : index
    %118 = vector.load %arg8[%c0_43, %c0_44] : memref<1x32xf32, #tpu.memory_space<vmem>>, vector<1x32xf32>
    %cst_45 = arith.constant dense<0.000000e+00> : vector<8xf32>
    %119 = vector.multi_reduction <add>, %116, %cst_45 [1] : vector<8x32xf32> to vector<8xf32>
    %120 = vector.shape_cast %119 : vector<8xf32> to vector<8x1xf32>
    %cst_46 = arith.constant 3.200000e+01 : f32
    %121 = vector.broadcast %cst_46 : f32 to vector<8x1xf32>
    %122 = arith.divf %120, %121 : vector<8x1xf32>
    %123 = vector.broadcast %122 : vector<8x1xf32> to vector<8x32xf32>
    %124 = arith.subf %116, %123 : vector<8x32xf32>
    %125 = arith.mulf %124, %124 : vector<8x32xf32>
    %cst_47 = arith.constant dense<0.000000e+00> : vector<8xf32>
    %126 = vector.multi_reduction <add>, %125, %cst_47 [1] : vector<8x32xf32> to vector<8xf32>
    %127 = vector.shape_cast %126 : vector<8xf32> to vector<8x1xf32>
    %cst_48 = arith.constant 3.200000e+01 : f32
    %128 = vector.broadcast %cst_48 : f32 to vector<8x1xf32>
    %129 = arith.divf %127, %128 : vector<8x1xf32>
    %cst_49 = arith.constant 9.99999974E-6 : f32
    %130 = vector.broadcast %cst_49 : f32 to vector<8x1xf32>
    %131 = arith.addf %129, %130 : vector<8x1xf32>
    %132 = math.rsqrt %131 : vector<8x1xf32>
    %133 = vector.broadcast %122 : vector<8x1xf32> to vector<8x32xf32>
    %134 = arith.subf %116, %133 : vector<8x32xf32>
    %135 = vector.broadcast %132 : vector<8x1xf32> to vector<8x32xf32>
    %136 = arith.mulf %134, %135 : vector<8x32xf32>
    %137 = vector.broadcast %117 : vector<1x32xf32> to vector<8x32xf32>
    %138 = arith.mulf %136, %137 : vector<8x32xf32>
    %139 = vector.broadcast %118 : vector<1x32xf32> to vector<8x32xf32>
    %140 = arith.addf %138, %139 : vector<8x32xf32>
    %c0_50 = arith.constant 0 : index
    %c0_51 = arith.constant 0 : index
    %c0_52 = arith.constant 0 : index
    %141 = vector.load %arg9[%c0_50, %c0_51, %c0_52] : memref<1x8x32xf32, #tpu.memory_space<vmem>>, vector<1x8x32xf32>
    %142 = vector.shape_cast %141 : vector<1x8x32xf32> to vector<8x32xf32>
    %143 = vector.shape_cast %140 : vector<8x32xf32> to vector<1x8x32xf32>
    tpu.vector_store %arg9[%c0_50, %c0_51, %c0_52], %143 {strides = array<i32>} : memref<1x8x32xf32, #tpu.memory_space<vmem>>, vector<1x8x32xf32>,
    return
  }
  func.func @transform_0(%arg0: i32) -> (i32, i32, i32) {
    %c0_i32 = arith.constant 0 : i32
    %c0_i32_0 = arith.constant 0 : i32
    %c0_i32_1 = arith.constant 0 : i32
    return %arg0, %c0_i32, %c0_i32_0 : i32, i32, i32
  }
  func.func @transform_1(%arg0: i32) -> (i32, i32) {
    %c0_i32 = arith.constant 0 : i32
    %c0_i32_0 = arith.constant 0 : i32
    %c0_i32_1 = arith.constant 0 : i32
    return %c0_i32, %c0_i32_0 : i32, i32
  }
  func.func @transform_2(%arg0: i32) -> (i32, i32) {
    %c0_i32 = arith.constant 0 : i32
    %c0_i32_0 = arith.constant 0 : i32
    %c0_i32_1 = arith.constant 0 : i32
    return %c0_i32, %c0_i32_0 : i32, i32
  }
  func.func @transform_3(%arg0: i32) -> (i32, i32) {
    %c0_i32 = arith.constant 0 : i32
    %c0_i32_0 = arith.constant 0 : i32
    %c0_i32_1 = arith.constant 0 : i32
    return %c0_i32, %c0_i32_0 : i32, i32
  }
  func.func @transform_4(%arg0: i32) -> (i32, i32) {
    %c0_i32 = arith.constant 0 : i32
    %c0_i32_0 = arith.constant 0 : i32
    %c0_i32_1 = arith.constant 0 : i32
    return %c0_i32, %c0_i32_0 : i32, i32
  }
  func.func @transform_5(%arg0: i32) -> (i32, i32, i32) {
    %c0_i32 = arith.constant 0 : i32
    %c0_i32_0 = arith.constant 0 : i32
    %c0_i32_1 = arith.constant 0 : i32
    return %arg0, %c0_i32, %c0_i32_0 : i32, i32, i32
  }
  func.func @transform_6(%arg0: i32) -> (i32, i32) {
    %c0_i32 = arith.constant 0 : i32
    %c0_i32_0 = arith.constant 0 : i32
    %c0_i32_1 = arith.constant 0 : i32
    return %c0_i32, %c0_i32_0 : i32, i32
  }
  func.func @transform_7(%arg0: i32) -> (i32, i32) {
    %c0_i32 = arith.constant 0 : i32
    %c0_i32_0 = arith.constant 0 : i32
    %c0_i32_1 = arith.constant 0 : i32
    return %c0_i32, %c0_i32_0 : i32, i32
  }
  func.func @transform_8(%arg0: i32) -> (i32, i32, i32) {
    %c0_i32 = arith.constant 0 : i32
    %c0_i32_0 = arith.constant 0 : i32
    %c0_i32_1 = arith.constant 0 : i32
    return %arg0, %c0_i32, %c0_i32_0 : i32, i32, i32
  }
}

module attributes {stable_mosaic.version = 11 : i64} {
  func.func @_ffn_ln_kernel(%arg0: i32, %arg1: memref<8x32xf32, #tpu.memory_space<vmem>>, %arg2: memref<32x64xbf16, #tpu.memory_space<vmem>>, %arg3: memref<1x64xf32, #tpu.memory_space<vmem>>, %arg4: memref<64x32xbf16, #tpu.memory_space<vmem>>, %arg5: memref<1x32xf32, #tpu.memory_space<vmem>>, %arg6: memref<1x32xf32, #tpu.memory_space<vmem>>, %arg7: memref<1x32xf32, #tpu.memory_space<vmem>>, %arg8: memref<8x32xf32, #tpu.memory_space<vmem>>) attributes {dimension_semantics = [#tpu.dimension_semantics<parallel>], iteration_bounds = array<i64: 2>, scalar_prefetch = 0 : i64, scratch_operands = 0 : i64, tpu.core_type = #tpu.core_type<tc>, window_params = [{transform_indices = @transform_0, window_bounds = array<i64: 8, 32>}, {pipeline_mode = #tpu.pipeline_mode<synchronous>, transform_indices = @transform_1, window_bounds = array<i64: 32, 64>}, {pipeline_mode = #tpu.pipeline_mode<synchronous>, transform_indices = @transform_2, window_bounds = array<i64: 1, 64>}, {pipeline_mode = #tpu.pipeline_mode<synchronous>, transform_indices = @transform_3, window_bounds = array<i64: 64, 32>}, {pipeline_mode = #tpu.pipeline_mode<synchronous>, transform_indices = @transform_4, window_bounds = array<i64: 1, 32>}, {pipeline_mode = #tpu.pipeline_mode<synchronous>, transform_indices = @transform_5, window_bounds = array<i64: 1, 32>}, {pipeline_mode = #tpu.pipeline_mode<synchronous>, transform_indices = @transform_6, window_bounds = array<i64: 1, 32>}, {transform_indices = @transform_7, window_bounds = array<i64: 8, 32>}]} {
    %c0 = arith.constant 0 : index
    %c0_0 = arith.constant 0 : index
    %0 = vector.load %arg1[%c0, %c0_0] : memref<8x32xf32, #tpu.memory_space<vmem>>, vector<8x32xf32>
    %1 = arith.truncf %0 : vector<8x32xf32> to vector<8x32xbf16>
    %c0_1 = arith.constant 0 : index
    %c0_2 = arith.constant 0 : index
    %2 = vector.load %arg2[%c0_1, %c0_2] : memref<32x64xbf16, #tpu.memory_space<vmem>>, vector<32x64xbf16>
    %cst = arith.constant dense<0.000000e+00> : vector<8x64xf32>
    %3 = tpu.matmul %1, %2, %cst {dimension_numbers = #tpu.dot_dimension_numbers<[1], [0], [0], [1], [0, 0, 1, 1], [], []>} : vector<8x32xbf16>, vector<32x64xbf16>, vector<8x64xf32> -> vector<8x64xf32>
    %c0_3 = arith.constant 0 : index
    %c0_4 = arith.constant 0 : index
    %4 = vector.load %arg3[%c0_3, %c0_4] : memref<1x64xf32, #tpu.memory_space<vmem>>, vector<1x64xf32>
    %5 = vector.broadcast %4 : vector<1x64xf32> to vector<8x64xf32>
    %6 = arith.addf %3, %5 : vector<8x64xf32>
    %cst_5 = arith.constant 0.000000e+00 : f32
    %7 = vector.broadcast %cst_5 : f32 to vector<8x64xf32>
    %8 = arith.maximumf %6, %7 : vector<8x64xf32>
    %9 = arith.truncf %8 : vector<8x64xf32> to vector<8x64xbf16>
    %c0_6 = arith.constant 0 : index
    %c0_7 = arith.constant 0 : index
    %10 = vector.load %arg4[%c0_6, %c0_7] : memref<64x32xbf16, #tpu.memory_space<vmem>>, vector<64x32xbf16>
    %cst_8 = arith.constant dense<0.000000e+00> : vector<8x32xf32>
    %11 = tpu.matmul %9, %10, %cst_8 {dimension_numbers = #tpu.dot_dimension_numbers<[1], [0], [0], [1], [0, 0, 1, 1], [], []>} : vector<8x64xbf16>, vector<64x32xbf16>, vector<8x32xf32> -> vector<8x32xf32>
    %c0_9 = arith.constant 0 : index
    %c0_10 = arith.constant 0 : index
    %12 = vector.load %arg5[%c0_9, %c0_10] : memref<1x32xf32, #tpu.memory_space<vmem>>, vector<1x32xf32>
    %13 = vector.broadcast %12 : vector<1x32xf32> to vector<8x32xf32>
    %14 = arith.addf %11, %13 : vector<8x32xf32>
    %15 = arith.addf %14, %0 : vector<8x32xf32>
    %c0_11 = arith.constant 0 : index
    %c0_12 = arith.constant 0 : index
    %16 = vector.load %arg6[%c0_11, %c0_12] : memref<1x32xf32, #tpu.memory_space<vmem>>, vector<1x32xf32>
    %c0_13 = arith.constant 0 : index
    %c0_14 = arith.constant 0 : index
    %17 = vector.load %arg7[%c0_13, %c0_14] : memref<1x32xf32, #tpu.memory_space<vmem>>, vector<1x32xf32>
    %cst_15 = arith.constant dense<0.000000e+00> : vector<8xf32>
    %18 = vector.multi_reduction <add>, %15, %cst_15 [1] : vector<8x32xf32> to vector<8xf32>
    %19 = vector.shape_cast %18 : vector<8xf32> to vector<8x1xf32>
    %cst_16 = arith.constant 3.200000e+01 : f32
    %20 = vector.broadcast %cst_16 : f32 to vector<8x1xf32>
    %21 = arith.divf %19, %20 : vector<8x1xf32>
    %22 = vector.broadcast %21 : vector<8x1xf32> to vector<8x32xf32>
    %23 = arith.subf %15, %22 : vector<8x32xf32>
    %24 = arith.mulf %23, %23 : vector<8x32xf32>
    %cst_17 = arith.constant dense<0.000000e+00> : vector<8xf32>
    %25 = vector.multi_reduction <add>, %24, %cst_17 [1] : vector<8x32xf32> to vector<8xf32>
    %26 = vector.shape_cast %25 : vector<8xf32> to vector<8x1xf32>
    %cst_18 = arith.constant 3.200000e+01 : f32
    %27 = vector.broadcast %cst_18 : f32 to vector<8x1xf32>
    %28 = arith.divf %26, %27 : vector<8x1xf32>
    %cst_19 = arith.constant 9.99999974E-6 : f32
    %29 = vector.broadcast %cst_19 : f32 to vector<8x1xf32>
    %30 = arith.addf %28, %29 : vector<8x1xf32>
    %31 = math.rsqrt %30 : vector<8x1xf32>
    %32 = vector.broadcast %21 : vector<8x1xf32> to vector<8x32xf32>
    %33 = arith.subf %15, %32 : vector<8x32xf32>
    %34 = vector.broadcast %31 : vector<8x1xf32> to vector<8x32xf32>
    %35 = arith.mulf %33, %34 : vector<8x32xf32>
    %36 = vector.broadcast %16 : vector<1x32xf32> to vector<8x32xf32>
    %37 = arith.mulf %35, %36 : vector<8x32xf32>
    %38 = vector.broadcast %17 : vector<1x32xf32> to vector<8x32xf32>
    %39 = arith.addf %37, %38 : vector<8x32xf32>
    %c0_20 = arith.constant 0 : index
    %c0_21 = arith.constant 0 : index
    %40 = vector.load %arg8[%c0_20, %c0_21] : memref<8x32xf32, #tpu.memory_space<vmem>>, vector<8x32xf32>
    tpu.vector_store %arg8[%c0_20, %c0_21], %39 {strides = array<i32>} : memref<8x32xf32, #tpu.memory_space<vmem>>, vector<8x32xf32>,
    return
  }
  func.func @transform_0(%arg0: i32) -> (i32, i32) {
    %c0_i32 = arith.constant 0 : i32
    %c0_i32_0 = arith.constant 0 : i32
    return %arg0, %c0_i32 : i32, i32
  }
  func.func @transform_1(%arg0: i32) -> (i32, i32) {
    %c0_i32 = arith.constant 0 : i32
    %c0_i32_0 = arith.constant 0 : i32
    %c0_i32_1 = arith.constant 0 : i32
    return %c0_i32, %c0_i32_0 : i32, i32
  }
  func.func @transform_2(%arg0: i32) -> (i32, i32) {
    %c0_i32 = arith.constant 0 : i32
    %c0_i32_0 = arith.constant 0 : i32
    %c0_i32_1 = arith.constant 0 : i32
    return %c0_i32, %c0_i32_0 : i32, i32
  }
  func.func @transform_3(%arg0: i32) -> (i32, i32) {
    %c0_i32 = arith.constant 0 : i32
    %c0_i32_0 = arith.constant 0 : i32
    %c0_i32_1 = arith.constant 0 : i32
    return %c0_i32, %c0_i32_0 : i32, i32
  }
  func.func @transform_4(%arg0: i32) -> (i32, i32) {
    %c0_i32 = arith.constant 0 : i32
    %c0_i32_0 = arith.constant 0 : i32
    %c0_i32_1 = arith.constant 0 : i32
    return %c0_i32, %c0_i32_0 : i32, i32
  }
  func.func @transform_5(%arg0: i32) -> (i32, i32) {
    %c0_i32 = arith.constant 0 : i32
    %c0_i32_0 = arith.constant 0 : i32
    %c0_i32_1 = arith.constant 0 : i32
    return %c0_i32, %c0_i32_0 : i32, i32
  }
  func.func @transform_6(%arg0: i32) -> (i32, i32) {
    %c0_i32 = arith.constant 0 : i32
    %c0_i32_0 = arith.constant 0 : i32
    %c0_i32_1 = arith.constant 0 : i32
    return %c0_i32, %c0_i32_0 : i32, i32
  }
  func.func @transform_7(%arg0: i32) -> (i32, i32) {
    %c0_i32 = arith.constant 0 : i32
    %c0_i32_0 = arith.constant 0 : i32
    return %arg0, %c0_i32 : i32, i32
  }
}

module attributes {stable_mosaic.version = 11 : i64} {
  func.func @_self_attn_ln_kernel(%arg0: i32, %arg1: memref<1x8x32xf32, #tpu.memory_space<vmem>>, %arg2: memref<32x96xbf16, #tpu.memory_space<vmem>>, %arg3: memref<1x96xf32, #tpu.memory_space<vmem>>, %arg4: memref<32x32xbf16, #tpu.memory_space<vmem>>, %arg5: memref<1x32xf32, #tpu.memory_space<vmem>>, %arg6: memref<1x8x8xf32, #tpu.memory_space<vmem>>, %arg7: memref<1x32xf32, #tpu.memory_space<vmem>>, %arg8: memref<1x32xf32, #tpu.memory_space<vmem>>, %arg9: memref<1x8x32xf32, #tpu.memory_space<vmem>>, %arg10: memref<8x32xf32, #tpu.memory_space<vmem>>) attributes {dimension_semantics = [#tpu.dimension_semantics<parallel>], iteration_bounds = array<i64: 2>, scalar_prefetch = 0 : i64, scratch_operands = 1 : i64, tpu.core_type = #tpu.core_type<tc>, window_params = [{transform_indices = @transform_0, window_bounds = array<i64: 1, 8, 32>}, {pipeline_mode = #tpu.pipeline_mode<synchronous>, transform_indices = @transform_1, window_bounds = array<i64: 32, 96>}, {pipeline_mode = #tpu.pipeline_mode<synchronous>, transform_indices = @transform_2, window_bounds = array<i64: 1, 96>}, {pipeline_mode = #tpu.pipeline_mode<synchronous>, transform_indices = @transform_3, window_bounds = array<i64: 32, 32>}, {pipeline_mode = #tpu.pipeline_mode<synchronous>, transform_indices = @transform_4, window_bounds = array<i64: 1, 32>}, {pipeline_mode = #tpu.pipeline_mode<synchronous>, transform_indices = @transform_5, window_bounds = array<i64: 1, 8, 8>}, {pipeline_mode = #tpu.pipeline_mode<synchronous>, transform_indices = @transform_6, window_bounds = array<i64: 1, 32>}, {pipeline_mode = #tpu.pipeline_mode<synchronous>, transform_indices = @transform_7, window_bounds = array<i64: 1, 32>}, {transform_indices = @transform_8, window_bounds = array<i64: 1, 8, 32>}]} {
    %c0 = arith.constant 0 : index
    %c0_0 = arith.constant 0 : index
    %c0_1 = arith.constant 0 : index
    %0 = vector.load %arg1[%c0, %c0_0, %c0_1] : memref<1x8x32xf32, #tpu.memory_space<vmem>>, vector<1x8x32xf32>
    %1 = vector.shape_cast %0 : vector<1x8x32xf32> to vector<8x32xf32>
    %2 = arith.truncf %1 : vector<8x32xf32> to vector<8x32xbf16>
    %c0_2 = arith.constant 0 : index
    %c0_3 = arith.constant 0 : index
    %3 = vector.load %arg2[%c0_2, %c0_3] : memref<32x96xbf16, #tpu.memory_space<vmem>>, vector<32x96xbf16>
    %cst = arith.constant dense<0.000000e+00> : vector<8x96xf32>
    %4 = tpu.matmul %2, %3, %cst {dimension_numbers = #tpu.dot_dimension_numbers<[1], [0], [0], [1], [0, 0, 1, 1], [], []>} : vector<8x32xbf16>, vector<32x96xbf16>, vector<8x96xf32> -> vector<8x96xf32>
    %c0_4 = arith.constant 0 : index
    %c0_5 = arith.constant 0 : index
    %5 = vector.load %arg3[%c0_4, %c0_5] : memref<1x96xf32, #tpu.memory_space<vmem>>, vector<1x96xf32>
    %6 = vector.broadcast %5 : vector<1x96xf32> to vector<8x96xf32>
    %7 = arith.addf %4, %6 : vector<8x96xf32>
    %8 = vector.extract_strided_slice %7 {offsets = [0, 0], sizes = [8, 32], strides = [1, 1]} : vector<8x96xf32> to vector<8x32xf32>
    %9 = vector.extract_strided_slice %7 {offsets = [0, 32], sizes = [8, 32], strides = [1, 1]} : vector<8x96xf32> to vector<8x32xf32>
    %10 = vector.extract_strided_slice %7 {offsets = [0, 64], sizes = [8, 32], strides = [1, 1]} : vector<8x96xf32> to vector<8x32xf32>
    %c0_6 = arith.constant 0 : index
    %c0_7 = arith.constant 0 : index
    %c0_8 = arith.constant 0 : index
    %11 = vector.load %arg6[%c0_6, %c0_7, %c0_8] : memref<1x8x8xf32, #tpu.memory_space<vmem>>, vector<1x8x8xf32>
    %12 = vector.shape_cast %11 : vector<1x8x8xf32> to vector<8x8xf32>
    %13 = vector.extract_strided_slice %8 {offsets = [0, 0], sizes = [8, 8], strides = [1, 1]} : vector<8x32xf32> to vector<8x8xf32>
    %cst_9 = arith.constant 0.353553385 : f32
    %14 = vector.broadcast %cst_9 : f32 to vector<8x8xf32>
    %15 = arith.mulf %13, %14 : vector<8x8xf32>
    %16 = vector.extract_strided_slice %9 {offsets = [0, 0], sizes = [8, 8], strides = [1, 1]} : vector<8x32xf32> to vector<8x8xf32>
    %17 = vector.extract_strided_slice %10 {offsets = [0, 0], sizes = [8, 8], strides = [1, 1]} : vector<8x32xf32> to vector<8x8xf32>
    %18 = arith.truncf %15 : vector<8x8xf32> to vector<8x8xbf16>
    %19 = arith.truncf %16 : vector<8x8xf32> to vector<8x8xbf16>
    %cst_10 = arith.constant dense<0.000000e+00> : vector<8x8xf32>
    %20 = tpu.matmul %18, %19, %cst_10 {dimension_numbers = #tpu.dot_dimension_numbers<[1], [1], [0], [0], [0, 0, 1, 0], [], []>} : vector<8x8xbf16>, vector<8x8xbf16>, vector<8x8xf32> -> vector<8x8xf32>
    %21 = arith.addf %20, %12 : vector<8x8xf32>
    %cst_11 = arith.constant dense<0xFF800000> : vector<8xf32>
    %22 = vector.multi_reduction <maximumf>, %21, %cst_11 [1] : vector<8x8xf32> to vector<8xf32>
    %23 = vector.shape_cast %22 : vector<8xf32> to vector<8x1xf32>
    %24 = vector.broadcast %23 : vector<8x1xf32> to vector<8x8xf32>
    %25 = arith.subf %21, %24 : vector<8x8xf32>
    %26 = math.exp %25 : vector<8x8xf32>
    %cst_12 = arith.constant dense<0.000000e+00> : vector<8xf32>
    %27 = vector.multi_reduction <add>, %26, %cst_12 [1] : vector<8x8xf32> to vector<8xf32>
    %28 = vector.shape_cast %27 : vector<8xf32> to vector<8x1xf32>
    %29 = tpu.reciprocal %28 {approx = true} : vector<8x1xf32> -> vector<8x1xf32>
    %30 = vector.broadcast %29 : vector<8x1xf32> to vector<8x8xf32>
    %31 = arith.mulf %26, %30 : vector<8x8xf32>
    %32 = arith.truncf %31 : vector<8x8xf32> to vector<8x8xbf16>
    %33 = arith.truncf %17 : vector<8x8xf32> to vector<8x8xbf16>
    %cst_13 = arith.constant dense<0.000000e+00> : vector<8x8xf32>
    %34 = tpu.matmul %32, %33, %cst_13 {dimension_numbers = #tpu.dot_dimension_numbers<[1], [0], [0], [1], [0, 0, 1, 1], [], []>} : vector<8x8xbf16>, vector<8x8xbf16>, vector<8x8xf32> -> vector<8x8xf32>
    %c0_14 = arith.constant 0 : index
    %c0_15 = arith.constant 0 : index
    %35 = vector.load %arg10[%c0_14, %c0_15] : memref<8x32xf32, #tpu.memory_space<vmem>>, vector<8x8xf32>
    tpu.vector_store %arg10[%c0_14, %c0_15], %34 {strides = array<i32>} : memref<8x32xf32, #tpu.memory_space<vmem>>, vector<8x8xf32>,
    %36 = vector.extract_strided_slice %8 {offsets = [0, 8], sizes = [8, 8], strides = [1, 1]} : vector<8x32xf32> to vector<8x8xf32>
    %cst_16 = arith.constant 0.353553385 : f32
    %37 = vector.broadcast %cst_16 : f32 to vector<8x8xf32>
    %38 = arith.mulf %36, %37 : vector<8x8xf32>
    %39 = vector.extract_strided_slice %9 {offsets = [0, 8], sizes = [8, 8], strides = [1, 1]} : vector<8x32xf32> to vector<8x8xf32>
    %40 = vector.extract_strided_slice %10 {offsets = [0, 8], sizes = [8, 8], strides = [1, 1]} : vector<8x32xf32> to vector<8x8xf32>
    %41 = arith.truncf %38 : vector<8x8xf32> to vector<8x8xbf16>
    %42 = arith.truncf %39 : vector<8x8xf32> to vector<8x8xbf16>
    %cst_17 = arith.constant dense<0.000000e+00> : vector<8x8xf32>
    %43 = tpu.matmul %41, %42, %cst_17 {dimension_numbers = #tpu.dot_dimension_numbers<[1], [1], [0], [0], [0, 0, 1, 0], [], []>} : vector<8x8xbf16>, vector<8x8xbf16>, vector<8x8xf32> -> vector<8x8xf32>
    %44 = arith.addf %43, %12 : vector<8x8xf32>
    %cst_18 = arith.constant dense<0xFF800000> : vector<8xf32>
    %45 = vector.multi_reduction <maximumf>, %44, %cst_18 [1] : vector<8x8xf32> to vector<8xf32>
    %46 = vector.shape_cast %45 : vector<8xf32> to vector<8x1xf32>
    %47 = vector.broadcast %46 : vector<8x1xf32> to vector<8x8xf32>
    %48 = arith.subf %44, %47 : vector<8x8xf32>
    %49 = math.exp %48 : vector<8x8xf32>
    %cst_19 = arith.constant dense<0.000000e+00> : vector<8xf32>
    %50 = vector.multi_reduction <add>, %49, %cst_19 [1] : vector<8x8xf32> to vector<8xf32>
    %51 = vector.shape_cast %50 : vector<8xf32> to vector<8x1xf32>
    %52 = tpu.reciprocal %51 {approx = true} : vector<8x1xf32> -> vector<8x1xf32>
    %53 = vector.broadcast %52 : vector<8x1xf32> to vector<8x8xf32>
    %54 = arith.mulf %49, %53 : vector<8x8xf32>
    %55 = arith.truncf %54 : vector<8x8xf32> to vector<8x8xbf16>
    %56 = arith.truncf %40 : vector<8x8xf32> to vector<8x8xbf16>
    %cst_20 = arith.constant dense<0.000000e+00> : vector<8x8xf32>
    %57 = tpu.matmul %55, %56, %cst_20 {dimension_numbers = #tpu.dot_dimension_numbers<[1], [0], [0], [1], [0, 0, 1, 1], [], []>} : vector<8x8xbf16>, vector<8x8xbf16>, vector<8x8xf32> -> vector<8x8xf32>
    %c0_21 = arith.constant 0 : index
    %c8 = arith.constant 8 : index
    %58 = vector.load %arg10[%c0_21, %c8] : memref<8x32xf32, #tpu.memory_space<vmem>>, vector<8x8xf32>
    tpu.vector_store %arg10[%c0_21, %c8], %57 {strides = array<i32>} : memref<8x32xf32, #tpu.memory_space<vmem>>, vector<8x8xf32>,
    %59 = vector.extract_strided_slice %8 {offsets = [0, 16], sizes = [8, 8], strides = [1, 1]} : vector<8x32xf32> to vector<8x8xf32>
    %cst_22 = arith.constant 0.353553385 : f32
    %60 = vector.broadcast %cst_22 : f32 to vector<8x8xf32>
    %61 = arith.mulf %59, %60 : vector<8x8xf32>
    %62 = vector.extract_strided_slice %9 {offsets = [0, 16], sizes = [8, 8], strides = [1, 1]} : vector<8x32xf32> to vector<8x8xf32>
    %63 = vector.extract_strided_slice %10 {offsets = [0, 16], sizes = [8, 8], strides = [1, 1]} : vector<8x32xf32> to vector<8x8xf32>
    %64 = arith.truncf %61 : vector<8x8xf32> to vector<8x8xbf16>
    %65 = arith.truncf %62 : vector<8x8xf32> to vector<8x8xbf16>
    %cst_23 = arith.constant dense<0.000000e+00> : vector<8x8xf32>
    %66 = tpu.matmul %64, %65, %cst_23 {dimension_numbers = #tpu.dot_dimension_numbers<[1], [1], [0], [0], [0, 0, 1, 0], [], []>} : vector<8x8xbf16>, vector<8x8xbf16>, vector<8x8xf32> -> vector<8x8xf32>
    %67 = arith.addf %66, %12 : vector<8x8xf32>
    %cst_24 = arith.constant dense<0xFF800000> : vector<8xf32>
    %68 = vector.multi_reduction <maximumf>, %67, %cst_24 [1] : vector<8x8xf32> to vector<8xf32>
    %69 = vector.shape_cast %68 : vector<8xf32> to vector<8x1xf32>
    %70 = vector.broadcast %69 : vector<8x1xf32> to vector<8x8xf32>
    %71 = arith.subf %67, %70 : vector<8x8xf32>
    %72 = math.exp %71 : vector<8x8xf32>
    %cst_25 = arith.constant dense<0.000000e+00> : vector<8xf32>
    %73 = vector.multi_reduction <add>, %72, %cst_25 [1] : vector<8x8xf32> to vector<8xf32>
    %74 = vector.shape_cast %73 : vector<8xf32> to vector<8x1xf32>
    %75 = tpu.reciprocal %74 {approx = true} : vector<8x1xf32> -> vector<8x1xf32>
    %76 = vector.broadcast %75 : vector<8x1xf32> to vector<8x8xf32>
    %77 = arith.mulf %72, %76 : vector<8x8xf32>
    %78 = arith.truncf %77 : vector<8x8xf32> to vector<8x8xbf16>
    %79 = arith.truncf %63 : vector<8x8xf32> to vector<8x8xbf16>
    %cst_26 = arith.constant dense<0.000000e+00> : vector<8x8xf32>
    %80 = tpu.matmul %78, %79, %cst_26 {dimension_numbers = #tpu.dot_dimension_numbers<[1], [0], [0], [1], [0, 0, 1, 1], [], []>} : vector<8x8xbf16>, vector<8x8xbf16>, vector<8x8xf32> -> vector<8x8xf32>
    %c0_27 = arith.constant 0 : index
    %c16 = arith.constant 16 : index
    %81 = vector.load %arg10[%c0_27, %c16] : memref<8x32xf32, #tpu.memory_space<vmem>>, vector<8x8xf32>
    tpu.vector_store %arg10[%c0_27, %c16], %80 {strides = array<i32>} : memref<8x32xf32, #tpu.memory_space<vmem>>, vector<8x8xf32>,
    %82 = vector.extract_strided_slice %8 {offsets = [0, 24], sizes = [8, 8], strides = [1, 1]} : vector<8x32xf32> to vector<8x8xf32>
    %cst_28 = arith.constant 0.353553385 : f32
    %83 = vector.broadcast %cst_28 : f32 to vector<8x8xf32>
    %84 = arith.mulf %82, %83 : vector<8x8xf32>
    %85 = vector.extract_strided_slice %9 {offsets = [0, 24], sizes = [8, 8], strides = [1, 1]} : vector<8x32xf32> to vector<8x8xf32>
    %86 = vector.extract_strided_slice %10 {offsets = [0, 24], sizes = [8, 8], strides = [1, 1]} : vector<8x32xf32> to vector<8x8xf32>
    %87 = arith.truncf %84 : vector<8x8xf32> to vector<8x8xbf16>
    %88 = arith.truncf %85 : vector<8x8xf32> to vector<8x8xbf16>
    %cst_29 = arith.constant dense<0.000000e+00> : vector<8x8xf32>
    %89 = tpu.matmul %87, %88, %cst_29 {dimension_numbers = #tpu.dot_dimension_numbers<[1], [1], [0], [0], [0, 0, 1, 0], [], []>} : vector<8x8xbf16>, vector<8x8xbf16>, vector<8x8xf32> -> vector<8x8xf32>
    %90 = arith.addf %89, %12 : vector<8x8xf32>
    %cst_30 = arith.constant dense<0xFF800000> : vector<8xf32>
    %91 = vector.multi_reduction <maximumf>, %90, %cst_30 [1] : vector<8x8xf32> to vector<8xf32>
    %92 = vector.shape_cast %91 : vector<8xf32> to vector<8x1xf32>
    %93 = vector.broadcast %92 : vector<8x1xf32> to vector<8x8xf32>
    %94 = arith.subf %90, %93 : vector<8x8xf32>
    %95 = math.exp %94 : vector<8x8xf32>
    %cst_31 = arith.constant dense<0.000000e+00> : vector<8xf32>
    %96 = vector.multi_reduction <add>, %95, %cst_31 [1] : vector<8x8xf32> to vector<8xf32>
    %97 = vector.shape_cast %96 : vector<8xf32> to vector<8x1xf32>
    %98 = tpu.reciprocal %97 {approx = true} : vector<8x1xf32> -> vector<8x1xf32>
    %99 = vector.broadcast %98 : vector<8x1xf32> to vector<8x8xf32>
    %100 = arith.mulf %95, %99 : vector<8x8xf32>
    %101 = arith.truncf %100 : vector<8x8xf32> to vector<8x8xbf16>
    %102 = arith.truncf %86 : vector<8x8xf32> to vector<8x8xbf16>
    %cst_32 = arith.constant dense<0.000000e+00> : vector<8x8xf32>
    %103 = tpu.matmul %101, %102, %cst_32 {dimension_numbers = #tpu.dot_dimension_numbers<[1], [0], [0], [1], [0, 0, 1, 1], [], []>} : vector<8x8xbf16>, vector<8x8xbf16>, vector<8x8xf32> -> vector<8x8xf32>
    %c0_33 = arith.constant 0 : index
    %c24 = arith.constant 24 : index
    %104 = vector.load %arg10[%c0_33, %c24] : memref<8x32xf32, #tpu.memory_space<vmem>>, vector<8x8xf32>
    tpu.vector_store %arg10[%c0_33, %c24], %103 {strides = array<i32>} : memref<8x32xf32, #tpu.memory_space<vmem>>, vector<8x8xf32>,
    %c0_34 = arith.constant 0 : index
    %c0_35 = arith.constant 0 : index
    %105 = vector.load %arg10[%c0_34, %c0_35] : memref<8x32xf32, #tpu.memory_space<vmem>>, vector<8x32xf32>
    %106 = arith.truncf %105 : vector<8x32xf32> to vector<8x32xbf16>
    %c0_36 = arith.constant 0 : index
    %c0_37 = arith.constant 0 : index
    %107 = vector.load %arg4[%c0_36, %c0_37] : memref<32x32xbf16, #tpu.memory_space<vmem>>, vector<32x32xbf16>
    %cst_38 = arith.constant dense<0.000000e+00> : vector<8x32xf32>
    %108 = tpu.matmul %106, %107, %cst_38 {dimension_numbers = #tpu.dot_dimension_numbers<[1], [0], [0], [1], [0, 0, 1, 1], [], []>} : vector<8x32xbf16>, vector<32x32xbf16>, vector<8x32xf32> -> vector<8x32xf32>
    %c0_39 = arith.constant 0 : index
    %c0_40 = arith.constant 0 : index
    %109 = vector.load %arg5[%c0_39, %c0_40] : memref<1x32xf32, #tpu.memory_space<vmem>>, vector<1x32xf32>
    %110 = vector.broadcast %109 : vector<1x32xf32> to vector<8x32xf32>
    %111 = arith.addf %108, %110 : vector<8x32xf32>
    %112 = arith.addf %111, %1 : vector<8x32xf32>
    %c0_41 = arith.constant 0 : index
    %c0_42 = arith.constant 0 : index
    %113 = vector.load %arg7[%c0_41, %c0_42] : memref<1x32xf32, #tpu.memory_space<vmem>>, vector<1x32xf32>
    %c0_43 = arith.constant 0 : index
    %c0_44 = arith.constant 0 : index
    %114 = vector.load %arg8[%c0_43, %c0_44] : memref<1x32xf32, #tpu.memory_space<vmem>>, vector<1x32xf32>
    %cst_45 = arith.constant dense<0.000000e+00> : vector<8xf32>
    %115 = vector.multi_reduction <add>, %112, %cst_45 [1] : vector<8x32xf32> to vector<8xf32>
    %116 = vector.shape_cast %115 : vector<8xf32> to vector<8x1xf32>
    %cst_46 = arith.constant 3.200000e+01 : f32
    %117 = vector.broadcast %cst_46 : f32 to vector<8x1xf32>
    %118 = arith.divf %116, %117 : vector<8x1xf32>
    %119 = vector.broadcast %118 : vector<8x1xf32> to vector<8x32xf32>
    %120 = arith.subf %112, %119 : vector<8x32xf32>
    %121 = arith.mulf %120, %120 : vector<8x32xf32>
    %cst_47 = arith.constant dense<0.000000e+00> : vector<8xf32>
    %122 = vector.multi_reduction <add>, %121, %cst_47 [1] : vector<8x32xf32> to vector<8xf32>
    %123 = vector.shape_cast %122 : vector<8xf32> to vector<8x1xf32>
    %cst_48 = arith.constant 3.200000e+01 : f32
    %124 = vector.broadcast %cst_48 : f32 to vector<8x1xf32>
    %125 = arith.divf %123, %124 : vector<8x1xf32>
    %cst_49 = arith.constant 9.99999974E-6 : f32
    %126 = vector.broadcast %cst_49 : f32 to vector<8x1xf32>
    %127 = arith.addf %125, %126 : vector<8x1xf32>
    %128 = math.rsqrt %127 : vector<8x1xf32>
    %129 = vector.broadcast %118 : vector<8x1xf32> to vector<8x32xf32>
    %130 = arith.subf %112, %129 : vector<8x32xf32>
    %131 = vector.broadcast %128 : vector<8x1xf32> to vector<8x32xf32>
    %132 = arith.mulf %130, %131 : vector<8x32xf32>
    %133 = vector.broadcast %113 : vector<1x32xf32> to vector<8x32xf32>
    %134 = arith.mulf %132, %133 : vector<8x32xf32>
    %135 = vector.broadcast %114 : vector<1x32xf32> to vector<8x32xf32>
    %136 = arith.addf %134, %135 : vector<8x32xf32>
    %c0_50 = arith.constant 0 : index
    %c0_51 = arith.constant 0 : index
    %c0_52 = arith.constant 0 : index
    %137 = vector.load %arg9[%c0_50, %c0_51, %c0_52] : memref<1x8x32xf32, #tpu.memory_space<vmem>>, vector<1x8x32xf32>
    %138 = vector.shape_cast %137 : vector<1x8x32xf32> to vector<8x32xf32>
    %139 = vector.shape_cast %136 : vector<8x32xf32> to vector<1x8x32xf32>
    tpu.vector_store %arg9[%c0_50, %c0_51, %c0_52], %139 {strides = array<i32>} : memref<1x8x32xf32, #tpu.memory_space<vmem>>, vector<1x8x32xf32>,
    return
  }
  func.func @transform_0(%arg0: i32) -> (i32, i32, i32) {
    %c0_i32 = arith.constant 0 : i32
    %c0_i32_0 = arith.constant 0 : i32
    %c0_i32_1 = arith.constant 0 : i32
    return %arg0, %c0_i32, %c0_i32_0 : i32, i32, i32
  }
  func.func @transform_1(%arg0: i32) -> (i32, i32) {
    %c0_i32 = arith.constant 0 : i32
    %c0_i32_0 = arith.constant 0 : i32
    %c0_i32_1 = arith.constant 0 : i32
    return %c0_i32, %c0_i32_0 : i32, i32
  }
  func.func @transform_2(%arg0: i32) -> (i32, i32) {
    %c0_i32 = arith.constant 0 : i32
    %c0_i32_0 = arith.constant 0 : i32
    %c0_i32_1 = arith.constant 0 : i32
    return %c0_i32, %c0_i32_0 : i32, i32
  }
  func.func @transform_3(%arg0: i32) -> (i32, i32) {
    %c0_i32 = arith.constant 0 : i32
    %c0_i32_0 = arith.constant 0 : i32
    %c0_i32_1 = arith.constant 0 : i32
    return %c0_i32, %c0_i32_0 : i32, i32
  }
  func.func @transform_4(%arg0: i32) -> (i32, i32) {
    %c0_i32 = arith.constant 0 : i32
    %c0_i32_0 = arith.constant 0 : i32
    %c0_i32_1 = arith.constant 0 : i32
    return %c0_i32, %c0_i32_0 : i32, i32
  }
  func.func @transform_5(%arg0: i32) -> (i32, i32, i32) {
    %c0_i32 = arith.constant 0 : i32
    %c0_i32_0 = arith.constant 0 : i32
    %c0_i32_1 = arith.constant 0 : i32
    %c0_i32_2 = arith.constant 0 : i32
    return %c0_i32, %c0_i32_0, %c0_i32_1 : i32, i32, i32
  }
  func.func @transform_6(%arg0: i32) -> (i32, i32) {
    %c0_i32 = arith.constant 0 : i32
    %c0_i32_0 = arith.constant 0 : i32
    %c0_i32_1 = arith.constant 0 : i32
    return %c0_i32, %c0_i32_0 : i32, i32
  }
  func.func @transform_7(%arg0: i32) -> (i32, i32) {
    %c0_i32 = arith.constant 0 : i32
    %c0_i32_0 = arith.constant 0 : i32
    %c0_i32_1 = arith.constant 0 : i32
    return %c0_i32, %c0_i32_0 : i32, i32
  }
  func.func @transform_8(%arg0: i32) -> (i32, i32, i32) {
    %c0_i32 = arith.constant 0 : i32
    %c0_i32_0 = arith.constant 0 : i32
    %c0_i32_1 = arith.constant 0 : i32
    return %arg0, %c0_i32, %c0_i32_0 : i32, i32, i32
  }
}

module attributes {stable_mosaic.version = 11 : i64} {
  func.func @_cross_attn_ln_kernel(%arg0: i32, %arg1: memref<1x8x32xf32, #tpu.memory_space<vmem>>, %arg2: memref<1x8x32xf32, #tpu.memory_space<vmem>>, %arg3: memref<32x32xbf16, #tpu.memory_space<vmem>>, %arg4: memref<1x32xf32, #tpu.memory_space<vmem>>, %arg5: memref<32x64xbf16, #tpu.memory_space<vmem>>, %arg6: memref<1x64xf32, #tpu.memory_space<vmem>>, %arg7: memref<32x32xbf16, #tpu.memory_space<vmem>>, %arg8: memref<1x32xf32, #tpu.memory_space<vmem>>, %arg9: memref<1x1x8xf32, #tpu.memory_space<vmem>>, %arg10: memref<1x32xf32, #tpu.memory_space<vmem>>, %arg11: memref<1x32xf32, #tpu.memory_space<vmem>>, %arg12: memref<1x8x32xf32, #tpu.memory_space<vmem>>, %arg13: memref<8x32xf32, #tpu.memory_space<vmem>>) attributes {dimension_semantics = [#tpu.dimension_semantics<parallel>], iteration_bounds = array<i64: 2>, scalar_prefetch = 0 : i64, scratch_operands = 1 : i64, tpu.core_type = #tpu.core_type<tc>, window_params = [{transform_indices = @transform_0, window_bounds = array<i64: 1, 8, 32>}, {transform_indices = @transform_1, window_bounds = array<i64: 1, 8, 32>}, {pipeline_mode = #tpu.pipeline_mode<synchronous>, transform_indices = @transform_2, window_bounds = array<i64: 32, 32>}, {pipeline_mode = #tpu.pipeline_mode<synchronous>, transform_indices = @transform_3, window_bounds = array<i64: 1, 32>}, {pipeline_mode = #tpu.pipeline_mode<synchronous>, transform_indices = @transform_4, window_bounds = array<i64: 32, 64>}, {pipeline_mode = #tpu.pipeline_mode<synchronous>, transform_indices = @transform_5, window_bounds = array<i64: 1, 64>}, {pipeline_mode = #tpu.pipeline_mode<synchronous>, transform_indices = @transform_6, window_bounds = array<i64: 32, 32>}, {pipeline_mode = #tpu.pipeline_mode<synchronous>, transform_indices = @transform_7, window_bounds = array<i64: 1, 32>}, {transform_indices = @transform_8, window_bounds = array<i64: 1, 1, 8>}, {pipeline_mode = #tpu.pipeline_mode<synchronous>, transform_indices = @transform_9, window_bounds = array<i64: 1, 32>}, {pipeline_mode = #tpu.pipeline_mode<synchronous>, transform_indices = @transform_10, window_bounds = array<i64: 1, 32>}, {transform_indices = @transform_11, window_bounds = array<i64: 1, 8, 32>}]} {
    %c0 = arith.constant 0 : index
    %c0_0 = arith.constant 0 : index
    %c0_1 = arith.constant 0 : index
    %0 = vector.load %arg1[%c0, %c0_0, %c0_1] : memref<1x8x32xf32, #tpu.memory_space<vmem>>, vector<1x8x32xf32>
    %1 = vector.shape_cast %0 : vector<1x8x32xf32> to vector<8x32xf32>
    %c0_2 = arith.constant 0 : index
    %c0_3 = arith.constant 0 : index
    %c0_4 = arith.constant 0 : index
    %2 = vector.load %arg2[%c0_2, %c0_3, %c0_4] : memref<1x8x32xf32, #tpu.memory_space<vmem>>, vector<1x8x32xf32>
    %3 = vector.shape_cast %2 : vector<1x8x32xf32> to vector<8x32xf32>
    %4 = arith.truncf %1 : vector<8x32xf32> to vector<8x32xbf16>
    %c0_5 = arith.constant 0 : index
    %c0_6 = arith.constant 0 : index
    %5 = vector.load %arg3[%c0_5, %c0_6] : memref<32x32xbf16, #tpu.memory_space<vmem>>, vector<32x32xbf16>
    %cst = arith.constant dense<0.000000e+00> : vector<8x32xf32>
    %6 = tpu.matmul %4, %5, %cst {dimension_numbers = #tpu.dot_dimension_numbers<[1], [0], [0], [1], [0, 0, 1, 1], [], []>} : vector<8x32xbf16>, vector<32x32xbf16>, vector<8x32xf32> -> vector<8x32xf32>
    %c0_7 = arith.constant 0 : index
    %c0_8 = arith.constant 0 : index
    %7 = vector.load %arg4[%c0_7, %c0_8] : memref<1x32xf32, #tpu.memory_space<vmem>>, vector<1x32xf32>
    %8 = vector.broadcast %7 : vector<1x32xf32> to vector<8x32xf32>
    %9 = arith.addf %6, %8 : vector<8x32xf32>
    %10 = arith.truncf %3 : vector<8x32xf32> to vector<8x32xbf16>
    %c0_9 = arith.constant 0 : index
    %c0_10 = arith.constant 0 : index
    %11 = vector.load %arg5[%c0_9, %c0_10] : memref<32x64xbf16, #tpu.memory_space<vmem>>, vector<32x64xbf16>
    %cst_11 = arith.constant dense<0.000000e+00> : vector<8x64xf32>
    %12 = tpu.matmul %10, %11, %cst_11 {dimension_numbers = #tpu.dot_dimension_numbers<[1], [0], [0], [1], [0, 0, 1, 1], [], []>} : vector<8x32xbf16>, vector<32x64xbf16>, vector<8x64xf32> -> vector<8x64xf32>
    %c0_12 = arith.constant 0 : index
    %c0_13 = arith.constant 0 : index
    %13 = vector.load %arg6[%c0_12, %c0_13] : memref<1x64xf32, #tpu.memory_space<vmem>>, vector<1x64xf32>
    %14 = vector.broadcast %13 : vector<1x64xf32> to vector<8x64xf32>
    %15 = arith.addf %12, %14 : vector<8x64xf32>
    %16 = vector.extract_strided_slice %15 {offsets = [0, 0], sizes = [8, 32], strides = [1, 1]} : vector<8x64xf32> to vector<8x32xf32>
    %17 = vector.extract_strided_slice %15 {offsets = [0, 32], sizes = [8, 32], strides = [1, 1]} : vector<8x64xf32> to vector<8x32xf32>
    %c0_14 = arith.constant 0 : index
    %c0_15 = arith.constant 0 : index
    %c0_16 = arith.constant 0 : index
    %18 = vector.load %arg9[%c0_14, %c0_15, %c0_16] : memref<1x1x8xf32, #tpu.memory_space<vmem>>, vector<1x1x8xf32>
    %19 = vector.shape_cast %18 : vector<1x1x8xf32> to vector<1x8xf32>
    %20 = vector.extract_strided_slice %9 {offsets = [0, 0], sizes = [8, 8], strides = [1, 1]} : vector<8x32xf32> to vector<8x8xf32>
    %cst_17 = arith.constant 0.353553385 : f32
    %21 = vector.broadcast %cst_17 : f32 to vector<8x8xf32>
    %22 = arith.mulf %20, %21 : vector<8x8xf32>
    %23 = vector.extract_strided_slice %16 {offsets = [0, 0], sizes = [8, 8], strides = [1, 1]} : vector<8x32xf32> to vector<8x8xf32>
    %24 = vector.extract_strided_slice %17 {offsets = [0, 0], sizes = [8, 8], strides = [1, 1]} : vector<8x32xf32> to vector<8x8xf32>
    %25 = arith.truncf %22 : vector<8x8xf32> to vector<8x8xbf16>
    %26 = arith.truncf %23 : vector<8x8xf32> to vector<8x8xbf16>
    %cst_18 = arith.constant dense<0.000000e+00> : vector<8x8xf32>
    %27 = tpu.matmul %25, %26, %cst_18 {dimension_numbers = #tpu.dot_dimension_numbers<[1], [1], [0], [0], [0, 0, 1, 0], [], []>} : vector<8x8xbf16>, vector<8x8xbf16>, vector<8x8xf32> -> vector<8x8xf32>
    %28 = vector.broadcast %19 : vector<1x8xf32> to vector<8x8xf32>
    %29 = arith.addf %27, %28 : vector<8x8xf32>
    %cst_19 = arith.constant dense<0xFF800000> : vector<8xf32>
    %30 = vector.multi_reduction <maximumf>, %29, %cst_19 [1] : vector<8x8xf32> to vector<8xf32>
    %31 = vector.shape_cast %30 : vector<8xf32> to vector<8x1xf32>
    %32 = vector.broadcast %31 : vector<8x1xf32> to vector<8x8xf32>
    %33 = arith.subf %29, %32 : vector<8x8xf32>
    %34 = math.exp %33 : vector<8x8xf32>
    %cst_20 = arith.constant dense<0.000000e+00> : vector<8xf32>
    %35 = vector.multi_reduction <add>, %34, %cst_20 [1] : vector<8x8xf32> to vector<8xf32>
    %36 = vector.shape_cast %35 : vector<8xf32> to vector<8x1xf32>
    %37 = tpu.reciprocal %36 {approx = true} : vector<8x1xf32> -> vector<8x1xf32>
    %38 = vector.broadcast %37 : vector<8x1xf32> to vector<8x8xf32>
    %39 = arith.mulf %34, %38 : vector<8x8xf32>
    %40 = arith.truncf %39 : vector<8x8xf32> to vector<8x8xbf16>
    %41 = arith.truncf %24 : vector<8x8xf32> to vector<8x8xbf16>
    %cst_21 = arith.constant dense<0.000000e+00> : vector<8x8xf32>
    %42 = tpu.matmul %40, %41, %cst_21 {dimension_numbers = #tpu.dot_dimension_numbers<[1], [0], [0], [1], [0, 0, 1, 1], [], []>} : vector<8x8xbf16>, vector<8x8xbf16>, vector<8x8xf32> -> vector<8x8xf32>
    %c0_22 = arith.constant 0 : index
    %c0_23 = arith.constant 0 : index
    %43 = vector.load %arg13[%c0_22, %c0_23] : memref<8x32xf32, #tpu.memory_space<vmem>>, vector<8x8xf32>
    tpu.vector_store %arg13[%c0_22, %c0_23], %42 {strides = array<i32>} : memref<8x32xf32, #tpu.memory_space<vmem>>, vector<8x8xf32>,
    %44 = vector.extract_strided_slice %9 {offsets = [0, 8], sizes = [8, 8], strides = [1, 1]} : vector<8x32xf32> to vector<8x8xf32>
    %cst_24 = arith.constant 0.353553385 : f32
    %45 = vector.broadcast %cst_24 : f32 to vector<8x8xf32>
    %46 = arith.mulf %44, %45 : vector<8x8xf32>
    %47 = vector.extract_strided_slice %16 {offsets = [0, 8], sizes = [8, 8], strides = [1, 1]} : vector<8x32xf32> to vector<8x8xf32>
    %48 = vector.extract_strided_slice %17 {offsets = [0, 8], sizes = [8, 8], strides = [1, 1]} : vector<8x32xf32> to vector<8x8xf32>
    %49 = arith.truncf %46 : vector<8x8xf32> to vector<8x8xbf16>
    %50 = arith.truncf %47 : vector<8x8xf32> to vector<8x8xbf16>
    %cst_25 = arith.constant dense<0.000000e+00> : vector<8x8xf32>
    %51 = tpu.matmul %49, %50, %cst_25 {dimension_numbers = #tpu.dot_dimension_numbers<[1], [1], [0], [0], [0, 0, 1, 0], [], []>} : vector<8x8xbf16>, vector<8x8xbf16>, vector<8x8xf32> -> vector<8x8xf32>
    %52 = vector.broadcast %19 : vector<1x8xf32> to vector<8x8xf32>
    %53 = arith.addf %51, %52 : vector<8x8xf32>
    %cst_26 = arith.constant dense<0xFF800000> : vector<8xf32>
    %54 = vector.multi_reduction <maximumf>, %53, %cst_26 [1] : vector<8x8xf32> to vector<8xf32>
    %55 = vector.shape_cast %54 : vector<8xf32> to vector<8x1xf32>
    %56 = vector.broadcast %55 : vector<8x1xf32> to vector<8x8xf32>
    %57 = arith.subf %53, %56 : vector<8x8xf32>
    %58 = math.exp %57 : vector<8x8xf32>
    %cst_27 = arith.constant dense<0.000000e+00> : vector<8xf32>
    %59 = vector.multi_reduction <add>, %58, %cst_27 [1] : vector<8x8xf32> to vector<8xf32>
    %60 = vector.shape_cast %59 : vector<8xf32> to vector<8x1xf32>
    %61 = tpu.reciprocal %60 {approx = true} : vector<8x1xf32> -> vector<8x1xf32>
    %62 = vector.broadcast %61 : vector<8x1xf32> to vector<8x8xf32>
    %63 = arith.mulf %58, %62 : vector<8x8xf32>
    %64 = arith.truncf %63 : vector<8x8xf32> to vector<8x8xbf16>
    %65 = arith.truncf %48 : vector<8x8xf32> to vector<8x8xbf16>
    %cst_28 = arith.constant dense<0.000000e+00> : vector<8x8xf32>
    %66 = tpu.matmul %64, %65, %cst_28 {dimension_numbers = #tpu.dot_dimension_numbers<[1], [0], [0], [1], [0, 0, 1, 1], [], []>} : vector<8x8xbf16>, vector<8x8xbf16>, vector<8x8xf32> -> vector<8x8xf32>
    %c0_29 = arith.constant 0 : index
    %c8 = arith.constant 8 : index
    %67 = vector.load %arg13[%c0_29, %c8] : memref<8x32xf32, #tpu.memory_space<vmem>>, vector<8x8xf32>
    tpu.vector_store %arg13[%c0_29, %c8], %66 {strides = array<i32>} : memref<8x32xf32, #tpu.memory_space<vmem>>, vector<8x8xf32>,
    %68 = vector.extract_strided_slice %9 {offsets = [0, 16], sizes = [8, 8], strides = [1, 1]} : vector<8x32xf32> to vector<8x8xf32>
    %cst_30 = arith.constant 0.353553385 : f32
    %69 = vector.broadcast %cst_30 : f32 to vector<8x8xf32>
    %70 = arith.mulf %68, %69 : vector<8x8xf32>
    %71 = vector.extract_strided_slice %16 {offsets = [0, 16], sizes = [8, 8], strides = [1, 1]} : vector<8x32xf32> to vector<8x8xf32>
    %72 = vector.extract_strided_slice %17 {offsets = [0, 16], sizes = [8, 8], strides = [1, 1]} : vector<8x32xf32> to vector<8x8xf32>
    %73 = arith.truncf %70 : vector<8x8xf32> to vector<8x8xbf16>
    %74 = arith.truncf %71 : vector<8x8xf32> to vector<8x8xbf16>
    %cst_31 = arith.constant dense<0.000000e+00> : vector<8x8xf32>
    %75 = tpu.matmul %73, %74, %cst_31 {dimension_numbers = #tpu.dot_dimension_numbers<[1], [1], [0], [0], [0, 0, 1, 0], [], []>} : vector<8x8xbf16>, vector<8x8xbf16>, vector<8x8xf32> -> vector<8x8xf32>
    %76 = vector.broadcast %19 : vector<1x8xf32> to vector<8x8xf32>
    %77 = arith.addf %75, %76 : vector<8x8xf32>
    %cst_32 = arith.constant dense<0xFF800000> : vector<8xf32>
    %78 = vector.multi_reduction <maximumf>, %77, %cst_32 [1] : vector<8x8xf32> to vector<8xf32>
    %79 = vector.shape_cast %78 : vector<8xf32> to vector<8x1xf32>
    %80 = vector.broadcast %79 : vector<8x1xf32> to vector<8x8xf32>
    %81 = arith.subf %77, %80 : vector<8x8xf32>
    %82 = math.exp %81 : vector<8x8xf32>
    %cst_33 = arith.constant dense<0.000000e+00> : vector<8xf32>
    %83 = vector.multi_reduction <add>, %82, %cst_33 [1] : vector<8x8xf32> to vector<8xf32>
    %84 = vector.shape_cast %83 : vector<8xf32> to vector<8x1xf32>
    %85 = tpu.reciprocal %84 {approx = true} : vector<8x1xf32> -> vector<8x1xf32>
    %86 = vector.broadcast %85 : vector<8x1xf32> to vector<8x8xf32>
    %87 = arith.mulf %82, %86 : vector<8x8xf32>
    %88 = arith.truncf %87 : vector<8x8xf32> to vector<8x8xbf16>
    %89 = arith.truncf %72 : vector<8x8xf32> to vector<8x8xbf16>
    %cst_34 = arith.constant dense<0.000000e+00> : vector<8x8xf32>
    %90 = tpu.matmul %88, %89, %cst_34 {dimension_numbers = #tpu.dot_dimension_numbers<[1], [0], [0], [1], [0, 0, 1, 1], [], []>} : vector<8x8xbf16>, vector<8x8xbf16>, vector<8x8xf32> -> vector<8x8xf32>
    %c0_35 = arith.constant 0 : index
    %c16 = arith.constant 16 : index
    %91 = vector.load %arg13[%c0_35, %c16] : memref<8x32xf32, #tpu.memory_space<vmem>>, vector<8x8xf32>
    tpu.vector_store %arg13[%c0_35, %c16], %90 {strides = array<i32>} : memref<8x32xf32, #tpu.memory_space<vmem>>, vector<8x8xf32>,
    %92 = vector.extract_strided_slice %9 {offsets = [0, 24], sizes = [8, 8], strides = [1, 1]} : vector<8x32xf32> to vector<8x8xf32>
    %cst_36 = arith.constant 0.353553385 : f32
    %93 = vector.broadcast %cst_36 : f32 to vector<8x8xf32>
    %94 = arith.mulf %92, %93 : vector<8x8xf32>
    %95 = vector.extract_strided_slice %16 {offsets = [0, 24], sizes = [8, 8], strides = [1, 1]} : vector<8x32xf32> to vector<8x8xf32>
    %96 = vector.extract_strided_slice %17 {offsets = [0, 24], sizes = [8, 8], strides = [1, 1]} : vector<8x32xf32> to vector<8x8xf32>
    %97 = arith.truncf %94 : vector<8x8xf32> to vector<8x8xbf16>
    %98 = arith.truncf %95 : vector<8x8xf32> to vector<8x8xbf16>
    %cst_37 = arith.constant dense<0.000000e+00> : vector<8x8xf32>
    %99 = tpu.matmul %97, %98, %cst_37 {dimension_numbers = #tpu.dot_dimension_numbers<[1], [1], [0], [0], [0, 0, 1, 0], [], []>} : vector<8x8xbf16>, vector<8x8xbf16>, vector<8x8xf32> -> vector<8x8xf32>
    %100 = vector.broadcast %19 : vector<1x8xf32> to vector<8x8xf32>
    %101 = arith.addf %99, %100 : vector<8x8xf32>
    %cst_38 = arith.constant dense<0xFF800000> : vector<8xf32>
    %102 = vector.multi_reduction <maximumf>, %101, %cst_38 [1] : vector<8x8xf32> to vector<8xf32>
    %103 = vector.shape_cast %102 : vector<8xf32> to vector<8x1xf32>
    %104 = vector.broadcast %103 : vector<8x1xf32> to vector<8x8xf32>
    %105 = arith.subf %101, %104 : vector<8x8xf32>
    %106 = math.exp %105 : vector<8x8xf32>
    %cst_39 = arith.constant dense<0.000000e+00> : vector<8xf32>
    %107 = vector.multi_reduction <add>, %106, %cst_39 [1] : vector<8x8xf32> to vector<8xf32>
    %108 = vector.shape_cast %107 : vector<8xf32> to vector<8x1xf32>
    %109 = tpu.reciprocal %108 {approx = true} : vector<8x1xf32> -> vector<8x1xf32>
    %110 = vector.broadcast %109 : vector<8x1xf32> to vector<8x8xf32>
    %111 = arith.mulf %106, %110 : vector<8x8xf32>
    %112 = arith.truncf %111 : vector<8x8xf32> to vector<8x8xbf16>
    %113 = arith.truncf %96 : vector<8x8xf32> to vector<8x8xbf16>
    %cst_40 = arith.constant dense<0.000000e+00> : vector<8x8xf32>
    %114 = tpu.matmul %112, %113, %cst_40 {dimension_numbers = #tpu.dot_dimension_numbers<[1], [0], [0], [1], [0, 0, 1, 1], [], []>} : vector<8x8xbf16>, vector<8x8xbf16>, vector<8x8xf32> -> vector<8x8xf32>
    %c0_41 = arith.constant 0 : index
    %c24 = arith.constant 24 : index
    %115 = vector.load %arg13[%c0_41, %c24] : memref<8x32xf32, #tpu.memory_space<vmem>>, vector<8x8xf32>
    tpu.vector_store %arg13[%c0_41, %c24], %114 {strides = array<i32>} : memref<8x32xf32, #tpu.memory_space<vmem>>, vector<8x8xf32>,
    %c0_42 = arith.constant 0 : index
    %c0_43 = arith.constant 0 : index
    %116 = vector.load %arg13[%c0_42, %c0_43] : memref<8x32xf32, #tpu.memory_space<vmem>>, vector<8x32xf32>
    %117 = arith.truncf %116 : vector<8x32xf32> to vector<8x32xbf16>
    %c0_44 = arith.constant 0 : index
    %c0_45 = arith.constant 0 : index
    %118 = vector.load %arg7[%c0_44, %c0_45] : memref<32x32xbf16, #tpu.memory_space<vmem>>, vector<32x32xbf16>
    %cst_46 = arith.constant dense<0.000000e+00> : vector<8x32xf32>
    %119 = tpu.matmul %117, %118, %cst_46 {dimension_numbers = #tpu.dot_dimension_numbers<[1], [0], [0], [1], [0, 0, 1, 1], [], []>} : vector<8x32xbf16>, vector<32x32xbf16>, vector<8x32xf32> -> vector<8x32xf32>
    %c0_47 = arith.constant 0 : index
    %c0_48 = arith.constant 0 : index
    %120 = vector.load %arg8[%c0_47, %c0_48] : memref<1x32xf32, #tpu.memory_space<vmem>>, vector<1x32xf32>
    %121 = vector.broadcast %120 : vector<1x32xf32> to vector<8x32xf32>
    %122 = arith.addf %119, %121 : vector<8x32xf32>
    %123 = arith.addf %122, %1 : vector<8x32xf32>
    %c0_49 = arith.constant 0 : index
    %c0_50 = arith.constant 0 : index
    %124 = vector.load %arg10[%c0_49, %c0_50] : memref<1x32xf32, #tpu.memory_space<vmem>>, vector<1x32xf32>
    %c0_51 = arith.constant 0 : index
    %c0_52 = arith.constant 0 : index
    %125 = vector.load %arg11[%c0_51, %c0_52] : memref<1x32xf32, #tpu.memory_space<vmem>>, vector<1x32xf32>
    %cst_53 = arith.constant dense<0.000000e+00> : vector<8xf32>
    %126 = vector.multi_reduction <add>, %123, %cst_53 [1] : vector<8x32xf32> to vector<8xf32>
    %127 = vector.shape_cast %126 : vector<8xf32> to vector<8x1xf32>
    %cst_54 = arith.constant 3.200000e+01 : f32
    %128 = vector.broadcast %cst_54 : f32 to vector<8x1xf32>
    %129 = arith.divf %127, %128 : vector<8x1xf32>
    %130 = vector.broadcast %129 : vector<8x1xf32> to vector<8x32xf32>
    %131 = arith.subf %123, %130 : vector<8x32xf32>
    %132 = arith.mulf %131, %131 : vector<8x32xf32>
    %cst_55 = arith.constant dense<0.000000e+00> : vector<8xf32>
    %133 = vector.multi_reduction <add>, %132, %cst_55 [1] : vector<8x32xf32> to vector<8xf32>
    %134 = vector.shape_cast %133 : vector<8xf32> to vector<8x1xf32>
    %cst_56 = arith.constant 3.200000e+01 : f32
    %135 = vector.broadcast %cst_56 : f32 to vector<8x1xf32>
    %136 = arith.divf %134, %135 : vector<8x1xf32>
    %cst_57 = arith.constant 9.99999974E-6 : f32
    %137 = vector.broadcast %cst_57 : f32 to vector<8x1xf32>
    %138 = arith.addf %136, %137 : vector<8x1xf32>
    %139 = math.rsqrt %138 : vector<8x1xf32>
    %140 = vector.broadcast %129 : vector<8x1xf32> to vector<8x32xf32>
    %141 = arith.subf %123, %140 : vector<8x32xf32>
    %142 = vector.broadcast %139 : vector<8x1xf32> to vector<8x32xf32>
    %143 = arith.mulf %141, %142 : vector<8x32xf32>
    %144 = vector.broadcast %124 : vector<1x32xf32> to vector<8x32xf32>
    %145 = arith.mulf %143, %144 : vector<8x32xf32>
    %146 = vector.broadcast %125 : vector<1x32xf32> to vector<8x32xf32>
    %147 = arith.addf %145, %146 : vector<8x32xf32>
    %c0_58 = arith.constant 0 : index
    %c0_59 = arith.constant 0 : index
    %c0_60 = arith.constant 0 : index
    %148 = vector.load %arg12[%c0_58, %c0_59, %c0_60] : memref<1x8x32xf32, #tpu.memory_space<vmem>>, vector<1x8x32xf32>
    %149 = vector.shape_cast %148 : vector<1x8x32xf32> to vector<8x32xf32>
    %150 = vector.shape_cast %147 : vector<8x32xf32> to vector<1x8x32xf32>
    tpu.vector_store %arg12[%c0_58, %c0_59, %c0_60], %150 {strides = array<i32>} : memref<1x8x32xf32, #tpu.memory_space<vmem>>, vector<1x8x32xf32>,
    return
  }
  func.func @transform_0(%arg0: i32) -> (i32, i32, i32) {
    %c0_i32 = arith.constant 0 : i32
    %c0_i32_0 = arith.constant 0 : i32
    %c0_i32_1 = arith.constant 0 : i32
    return %arg0, %c0_i32, %c0_i32_0 : i32, i32, i32
  }
  func.func @transform_1(%arg0: i32) -> (i32, i32, i32) {
    %c0_i32 = arith.constant 0 : i32
    %c0_i32_0 = arith.constant 0 : i32
    %c0_i32_1 = arith.constant 0 : i32
    return %arg0, %c0_i32, %c0_i32_0 : i32, i32, i32
  }
  func.func @transform_2(%arg0: i32) -> (i32, i32) {
    %c0_i32 = arith.constant 0 : i32
    %c0_i32_0 = arith.constant 0 : i32
    %c0_i32_1 = arith.constant 0 : i32
    return %c0_i32, %c0_i32_0 : i32, i32
  }
  func.func @transform_3(%arg0: i32) -> (i32, i32) {
    %c0_i32 = arith.constant 0 : i32
    %c0_i32_0 = arith.constant 0 : i32
    %c0_i32_1 = arith.constant 0 : i32
    return %c0_i32, %c0_i32_0 : i32, i32
  }
  func.func @transform_4(%arg0: i32) -> (i32, i32) {
    %c0_i32 = arith.constant 0 : i32
    %c0_i32_0 = arith.constant 0 : i32
    %c0_i32_1 = arith.constant 0 : i32
    return %c0_i32, %c0_i32_0 : i32, i32
  }
  func.func @transform_5(%arg0: i32) -> (i32, i32) {
    %c0_i32 = arith.constant 0 : i32
    %c0_i32_0 = arith.constant 0 : i32
    %c0_i32_1 = arith.constant 0 : i32
    return %c0_i32, %c0_i32_0 : i32, i32
  }
  func.func @transform_6(%arg0: i32) -> (i32, i32) {
    %c0_i32 = arith.constant 0 : i32
    %c0_i32_0 = arith.constant 0 : i32
    %c0_i32_1 = arith.constant 0 : i32
    return %c0_i32, %c0_i32_0 : i32, i32
  }
  func.func @transform_7(%arg0: i32) -> (i32, i32) {
    %c0_i32 = arith.constant 0 : i32
    %c0_i32_0 = arith.constant 0 : i32
    %c0_i32_1 = arith.constant 0 : i32
    return %c0_i32, %c0_i32_0 : i32, i32
  }
  func.func @transform_8(%arg0: i32) -> (i32, i32, i32) {
    %c0_i32 = arith.constant 0 : i32
    %c0_i32_0 = arith.constant 0 : i32
    %c0_i32_1 = arith.constant 0 : i32
    return %arg0, %c0_i32, %c0_i32_0 : i32, i32, i32
  }
  func.func @transform_9(%arg0: i32) -> (i32, i32) {
    %c0_i32 = arith.constant 0 : i32
    %c0_i32_0 = arith.constant 0 : i32
    %c0_i32_1 = arith.constant 0 : i32
    return %c0_i32, %c0_i32_0 : i32, i32
  }
  func.func @transform_10(%arg0: i32) -> (i32, i32) {
    %c0_i32 = arith.constant 0 : i32
    %c0_i32_0 = arith.constant 0 : i32
    %c0_i32_1 = arith.constant 0 : i32
    return %c0_i32, %c0_i32_0 : i32, i32
  }
  func.func @transform_11(%arg0: i32) -> (i32, i32, i32) {
    %c0_i32 = arith.constant 0 : i32
    %c0_i32_0 = arith.constant 0 : i32
    %c0_i32_1 = arith.constant 0 : i32
    return %arg0, %c0_i32, %c0_i32_0 : i32, i32, i32
  }
}

module attributes {stable_mosaic.version = 11 : i64} {
  func.func @_ffn_ln_kernel(%arg0: i32, %arg1: memref<8x32xf32, #tpu.memory_space<vmem>>, %arg2: memref<32x64xbf16, #tpu.memory_space<vmem>>, %arg3: memref<1x64xf32, #tpu.memory_space<vmem>>, %arg4: memref<64x32xbf16, #tpu.memory_space<vmem>>, %arg5: memref<1x32xf32, #tpu.memory_space<vmem>>, %arg6: memref<1x32xf32, #tpu.memory_space<vmem>>, %arg7: memref<1x32xf32, #tpu.memory_space<vmem>>, %arg8: memref<8x32xf32, #tpu.memory_space<vmem>>) attributes {dimension_semantics = [#tpu.dimension_semantics<parallel>], iteration_bounds = array<i64: 2>, scalar_prefetch = 0 : i64, scratch_operands = 0 : i64, tpu.core_type = #tpu.core_type<tc>, window_params = [{transform_indices = @transform_0, window_bounds = array<i64: 8, 32>}, {pipeline_mode = #tpu.pipeline_mode<synchronous>, transform_indices = @transform_1, window_bounds = array<i64: 32, 64>}, {pipeline_mode = #tpu.pipeline_mode<synchronous>, transform_indices = @transform_2, window_bounds = array<i64: 1, 64>}, {pipeline_mode = #tpu.pipeline_mode<synchronous>, transform_indices = @transform_3, window_bounds = array<i64: 64, 32>}, {pipeline_mode = #tpu.pipeline_mode<synchronous>, transform_indices = @transform_4, window_bounds = array<i64: 1, 32>}, {pipeline_mode = #tpu.pipeline_mode<synchronous>, transform_indices = @transform_5, window_bounds = array<i64: 1, 32>}, {pipeline_mode = #tpu.pipeline_mode<synchronous>, transform_indices = @transform_6, window_bounds = array<i64: 1, 32>}, {transform_indices = @transform_7, window_bounds = array<i64: 8, 32>}]} {
    %c0 = arith.constant 0 : index
    %c0_0 = arith.constant 0 : index
    %0 = vector.load %arg1[%c0, %c0_0] : memref<8x32xf32, #tpu.memory_space<vmem>>, vector<8x32xf32>
    %1 = arith.truncf %0 : vector<8x32xf32> to vector<8x32xbf16>
    %c0_1 = arith.constant 0 : index
    %c0_2 = arith.constant 0 : index
    %2 = vector.load %arg2[%c0_1, %c0_2] : memref<32x64xbf16, #tpu.memory_space<vmem>>, vector<32x64xbf16>
    %cst = arith.constant dense<0.000000e+00> : vector<8x64xf32>
    %3 = tpu.matmul %1, %2, %cst {dimension_numbers = #tpu.dot_dimension_numbers<[1], [0], [0], [1], [0, 0, 1, 1], [], []>} : vector<8x32xbf16>, vector<32x64xbf16>, vector<8x64xf32> -> vector<8x64xf32>
    %c0_3 = arith.constant 0 : index
    %c0_4 = arith.constant 0 : index
    %4 = vector.load %arg3[%c0_3, %c0_4] : memref<1x64xf32, #tpu.memory_space<vmem>>, vector<1x64xf32>
    %5 = vector.broadcast %4 : vector<1x64xf32> to vector<8x64xf32>
    %6 = arith.addf %3, %5 : vector<8x64xf32>
    %cst_5 = arith.constant 0.000000e+00 : f32
    %7 = vector.broadcast %cst_5 : f32 to vector<8x64xf32>
    %8 = arith.maximumf %6, %7 : vector<8x64xf32>
    %9 = arith.truncf %8 : vector<8x64xf32> to vector<8x64xbf16>
    %c0_6 = arith.constant 0 : index
    %c0_7 = arith.constant 0 : index
    %10 = vector.load %arg4[%c0_6, %c0_7] : memref<64x32xbf16, #tpu.memory_space<vmem>>, vector<64x32xbf16>
    %cst_8 = arith.constant dense<0.000000e+00> : vector<8x32xf32>
    %11 = tpu.matmul %9, %10, %cst_8 {dimension_numbers = #tpu.dot_dimension_numbers<[1], [0], [0], [1], [0, 0, 1, 1], [], []>} : vector<8x64xbf16>, vector<64x32xbf16>, vector<8x32xf32> -> vector<8x32xf32>
    %c0_9 = arith.constant 0 : index
    %c0_10 = arith.constant 0 : index
    %12 = vector.load %arg5[%c0_9, %c0_10] : memref<1x32xf32, #tpu.memory_space<vmem>>, vector<1x32xf32>
    %13 = vector.broadcast %12 : vector<1x32xf32> to vector<8x32xf32>
    %14 = arith.addf %11, %13 : vector<8x32xf32>
    %15 = arith.addf %14, %0 : vector<8x32xf32>
    %c0_11 = arith.constant 0 : index
    %c0_12 = arith.constant 0 : index
    %16 = vector.load %arg6[%c0_11, %c0_12] : memref<1x32xf32, #tpu.memory_space<vmem>>, vector<1x32xf32>
    %c0_13 = arith.constant 0 : index
    %c0_14 = arith.constant 0 : index
    %17 = vector.load %arg7[%c0_13, %c0_14] : memref<1x32xf32, #tpu.memory_space<vmem>>, vector<1x32xf32>
    %cst_15 = arith.constant dense<0.000000e+00> : vector<8xf32>
    %18 = vector.multi_reduction <add>, %15, %cst_15 [1] : vector<8x32xf32> to vector<8xf32>
    %19 = vector.shape_cast %18 : vector<8xf32> to vector<8x1xf32>
    %cst_16 = arith.constant 3.200000e+01 : f32
    %20 = vector.broadcast %cst_16 : f32 to vector<8x1xf32>
    %21 = arith.divf %19, %20 : vector<8x1xf32>
    %22 = vector.broadcast %21 : vector<8x1xf32> to vector<8x32xf32>
    %23 = arith.subf %15, %22 : vector<8x32xf32>
    %24 = arith.mulf %23, %23 : vector<8x32xf32>
    %cst_17 = arith.constant dense<0.000000e+00> : vector<8xf32>
    %25 = vector.multi_reduction <add>, %24, %cst_17 [1] : vector<8x32xf32> to vector<8xf32>
    %26 = vector.shape_cast %25 : vector<8xf32> to vector<8x1xf32>
    %cst_18 = arith.constant 3.200000e+01 : f32
    %27 = vector.broadcast %cst_18 : f32 to vector<8x1xf32>
    %28 = arith.divf %26, %27 : vector<8x1xf32>
    %cst_19 = arith.constant 9.99999974E-6 : f32
    %29 = vector.broadcast %cst_19 : f32 to vector<8x1xf32>
    %30 = arith.addf %28, %29 : vector<8x1xf32>
    %31 = math.rsqrt %30 : vector<8x1xf32>
    %32 = vector.broadcast %21 : vector<8x1xf32> to vector<8x32xf32>
    %33 = arith.subf %15, %32 : vector<8x32xf32>
    %34 = vector.broadcast %31 : vector<8x1xf32> to vector<8x32xf32>
    %35 = arith.mulf %33, %34 : vector<8x32xf32>
    %36 = vector.broadcast %16 : vector<1x32xf32> to vector<8x32xf32>
    %37 = arith.mulf %35, %36 : vector<8x32xf32>
    %38 = vector.broadcast %17 : vector<1x32xf32> to vector<8x32xf32>
    %39 = arith.addf %37, %38 : vector<8x32xf32>
    %c0_20 = arith.constant 0 : index
    %c0_21 = arith.constant 0 : index
    %40 = vector.load %arg8[%c0_20, %c0_21] : memref<8x32xf32, #tpu.memory_space<vmem>>, vector<8x32xf32>
    tpu.vector_store %arg8[%c0_20, %c0_21], %39 {strides = array<i32>} : memref<8x32xf32, #tpu.memory_space<vmem>>, vector<8x32xf32>,
    return
  }
  func.func @transform_0(%arg0: i32) -> (i32, i32) {
    %c0_i32 = arith.constant 0 : i32
    %c0_i32_0 = arith.constant 0 : i32
    return %arg0, %c0_i32 : i32, i32
  }
  func.func @transform_1(%arg0: i32) -> (i32, i32) {
    %c0_i32 = arith.constant 0 : i32
    %c0_i32_0 = arith.constant 0 : i32
    %c0_i32_1 = arith.constant 0 : i32
    return %c0_i32, %c0_i32_0 : i32, i32
  }
  func.func @transform_2(%arg0: i32) -> (i32, i32) {
    %c0_i32 = arith.constant 0 : i32
    %c0_i32_0 = arith.constant 0 : i32
    %c0_i32_1 = arith.constant 0 : i32
    return %c0_i32, %c0_i32_0 : i32, i32
  }
  func.func @transform_3(%arg0: i32) -> (i32, i32) {
    %c0_i32 = arith.constant 0 : i32
    %c0_i32_0 = arith.constant 0 : i32
    %c0_i32_1 = arith.constant 0 : i32
    return %c0_i32, %c0_i32_0 : i32, i32
  }
  func.func @transform_4(%arg0: i32) -> (i32, i32) {
    %c0_i32 = arith.constant 0 : i32
    %c0_i32_0 = arith.constant 0 : i32
    %c0_i32_1 = arith.constant 0 : i32
    return %c0_i32, %c0_i32_0 : i32, i32
  }
  func.func @transform_5(%arg0: i32) -> (i32, i32) {
    %c0_i32 = arith.constant 0 : i32
    %c0_i32_0 = arith.constant 0 : i32
    %c0_i32_1 = arith.constant 0 : i32
    return %c0_i32, %c0_i32_0 : i32, i32
  }
  func.func @transform_6(%arg0: i32) -> (i32, i32) {
    %c0_i32 = arith.constant 0 : i32
    %c0_i32_0 = arith.constant 0 : i32
    %c0_i32_1 = arith.constant 0 : i32
    return %c0_i32, %c0_i32_0 : i32, i32
  }
  func.func @transform_7(%arg0: i32) -> (i32, i32) {
    %c0_i32 = arith.constant 0 : i32
    %c0_i32_0 = arith.constant 0 : i32
    return %arg0, %c0_i32 : i32, i32
  }
}

module attributes {stable_mosaic.version = 11 : i64} {
  func.func @_cross_attn_ln_kernel(%arg0: i32, %arg1: memref<1x8x32xf32, #tpu.memory_space<vmem>>, %arg2: memref<1x8x32xf32, #tpu.memory_space<vmem>>, %arg3: memref<32x32xbf16, #tpu.memory_space<vmem>>, %arg4: memref<1x32xf32, #tpu.memory_space<vmem>>, %arg5: memref<32x64xbf16, #tpu.memory_space<vmem>>, %arg6: memref<1x64xf32, #tpu.memory_space<vmem>>, %arg7: memref<32x32xbf16, #tpu.memory_space<vmem>>, %arg8: memref<1x32xf32, #tpu.memory_space<vmem>>, %arg9: memref<1x1x8xf32, #tpu.memory_space<vmem>>, %arg10: memref<1x32xf32, #tpu.memory_space<vmem>>, %arg11: memref<1x32xf32, #tpu.memory_space<vmem>>, %arg12: memref<1x8x32xf32, #tpu.memory_space<vmem>>, %arg13: memref<8x32xf32, #tpu.memory_space<vmem>>) attributes {dimension_semantics = [#tpu.dimension_semantics<parallel>], iteration_bounds = array<i64: 2>, scalar_prefetch = 0 : i64, scratch_operands = 1 : i64, tpu.core_type = #tpu.core_type<tc>, window_params = [{transform_indices = @transform_0, window_bounds = array<i64: 1, 8, 32>}, {transform_indices = @transform_1, window_bounds = array<i64: 1, 8, 32>}, {pipeline_mode = #tpu.pipeline_mode<synchronous>, transform_indices = @transform_2, window_bounds = array<i64: 32, 32>}, {pipeline_mode = #tpu.pipeline_mode<synchronous>, transform_indices = @transform_3, window_bounds = array<i64: 1, 32>}, {pipeline_mode = #tpu.pipeline_mode<synchronous>, transform_indices = @transform_4, window_bounds = array<i64: 32, 64>}, {pipeline_mode = #tpu.pipeline_mode<synchronous>, transform_indices = @transform_5, window_bounds = array<i64: 1, 64>}, {pipeline_mode = #tpu.pipeline_mode<synchronous>, transform_indices = @transform_6, window_bounds = array<i64: 32, 32>}, {pipeline_mode = #tpu.pipeline_mode<synchronous>, transform_indices = @transform_7, window_bounds = array<i64: 1, 32>}, {transform_indices = @transform_8, window_bounds = array<i64: 1, 1, 8>}, {pipeline_mode = #tpu.pipeline_mode<synchronous>, transform_indices = @transform_9, window_bounds = array<i64: 1, 32>}, {pipeline_mode = #tpu.pipeline_mode<synchronous>, transform_indices = @transform_10, window_bounds = array<i64: 1, 32>}, {transform_indices = @transform_11, window_bounds = array<i64: 1, 8, 32>}]} {
    %c0 = arith.constant 0 : index
    %c0_0 = arith.constant 0 : index
    %c0_1 = arith.constant 0 : index
    %0 = vector.load %arg1[%c0, %c0_0, %c0_1] : memref<1x8x32xf32, #tpu.memory_space<vmem>>, vector<1x8x32xf32>
    %1 = vector.shape_cast %0 : vector<1x8x32xf32> to vector<8x32xf32>
    %c0_2 = arith.constant 0 : index
    %c0_3 = arith.constant 0 : index
    %c0_4 = arith.constant 0 : index
    %2 = vector.load %arg2[%c0_2, %c0_3, %c0_4] : memref<1x8x32xf32, #tpu.memory_space<vmem>>, vector<1x8x32xf32>
    %3 = vector.shape_cast %2 : vector<1x8x32xf32> to vector<8x32xf32>
    %4 = arith.truncf %1 : vector<8x32xf32> to vector<8x32xbf16>
    %c0_5 = arith.constant 0 : index
    %c0_6 = arith.constant 0 : index
    %5 = vector.load %arg3[%c0_5, %c0_6] : memref<32x32xbf16, #tpu.memory_space<vmem>>, vector<32x32xbf16>
    %cst = arith.constant dense<0.000000e+00> : vector<8x32xf32>
    %6 = tpu.matmul %4, %5, %cst {dimension_numbers = #tpu.dot_dimension_numbers<[1], [0], [0], [1], [0, 0, 1, 1], [], []>} : vector<8x32xbf16>, vector<32x32xbf16>, vector<8x32xf32> -> vector<8x32xf32>
    %c0_7 = arith.constant 0 : index
    %c0_8 = arith.constant 0 : index
    %7 = vector.load %arg4[%c0_7, %c0_8] : memref<1x32xf32, #tpu.memory_space<vmem>>, vector<1x32xf32>
    %8 = vector.broadcast %7 : vector<1x32xf32> to vector<8x32xf32>
    %9 = arith.addf %6, %8 : vector<8x32xf32>
    %10 = arith.truncf %3 : vector<8x32xf32> to vector<8x32xbf16>
    %c0_9 = arith.constant 0 : index
    %c0_10 = arith.constant 0 : index
    %11 = vector.load %arg5[%c0_9, %c0_10] : memref<32x64xbf16, #tpu.memory_space<vmem>>, vector<32x64xbf16>
    %cst_11 = arith.constant dense<0.000000e+00> : vector<8x64xf32>
    %12 = tpu.matmul %10, %11, %cst_11 {dimension_numbers = #tpu.dot_dimension_numbers<[1], [0], [0], [1], [0, 0, 1, 1], [], []>} : vector<8x32xbf16>, vector<32x64xbf16>, vector<8x64xf32> -> vector<8x64xf32>
    %c0_12 = arith.constant 0 : index
    %c0_13 = arith.constant 0 : index
    %13 = vector.load %arg6[%c0_12, %c0_13] : memref<1x64xf32, #tpu.memory_space<vmem>>, vector<1x64xf32>
    %14 = vector.broadcast %13 : vector<1x64xf32> to vector<8x64xf32>
    %15 = arith.addf %12, %14 : vector<8x64xf32>
    %16 = vector.extract_strided_slice %15 {offsets = [0, 0], sizes = [8, 32], strides = [1, 1]} : vector<8x64xf32> to vector<8x32xf32>
    %17 = vector.extract_strided_slice %15 {offsets = [0, 32], sizes = [8, 32], strides = [1, 1]} : vector<8x64xf32> to vector<8x32xf32>
    %c0_14 = arith.constant 0 : index
    %c0_15 = arith.constant 0 : index
    %c0_16 = arith.constant 0 : index
    %18 = vector.load %arg9[%c0_14, %c0_15, %c0_16] : memref<1x1x8xf32, #tpu.memory_space<vmem>>, vector<1x1x8xf32>
    %19 = vector.shape_cast %18 : vector<1x1x8xf32> to vector<1x8xf32>
    %20 = vector.extract_strided_slice %9 {offsets = [0, 0], sizes = [8, 8], strides = [1, 1]} : vector<8x32xf32> to vector<8x8xf32>
    %cst_17 = arith.constant 0.353553385 : f32
    %21 = vector.broadcast %cst_17 : f32 to vector<8x8xf32>
    %22 = arith.mulf %20, %21 : vector<8x8xf32>
    %23 = vector.extract_strided_slice %16 {offsets = [0, 0], sizes = [8, 8], strides = [1, 1]} : vector<8x32xf32> to vector<8x8xf32>
    %24 = vector.extract_strided_slice %17 {offsets = [0, 0], sizes = [8, 8], strides = [1, 1]} : vector<8x32xf32> to vector<8x8xf32>
    %25 = arith.truncf %22 : vector<8x8xf32> to vector<8x8xbf16>
    %26 = arith.truncf %23 : vector<8x8xf32> to vector<8x8xbf16>
    %cst_18 = arith.constant dense<0.000000e+00> : vector<8x8xf32>
    %27 = tpu.matmul %25, %26, %cst_18 {dimension_numbers = #tpu.dot_dimension_numbers<[1], [1], [0], [0], [0, 0, 1, 0], [], []>} : vector<8x8xbf16>, vector<8x8xbf16>, vector<8x8xf32> -> vector<8x8xf32>
    %28 = vector.broadcast %19 : vector<1x8xf32> to vector<8x8xf32>
    %29 = arith.addf %27, %28 : vector<8x8xf32>
    %cst_19 = arith.constant dense<0xFF800000> : vector<8xf32>
    %30 = vector.multi_reduction <maximumf>, %29, %cst_19 [1] : vector<8x8xf32> to vector<8xf32>
    %31 = vector.shape_cast %30 : vector<8xf32> to vector<8x1xf32>
    %32 = vector.broadcast %31 : vector<8x1xf32> to vector<8x8xf32>
    %33 = arith.subf %29, %32 : vector<8x8xf32>
    %34 = math.exp %33 : vector<8x8xf32>
    %cst_20 = arith.constant dense<0.000000e+00> : vector<8xf32>
    %35 = vector.multi_reduction <add>, %34, %cst_20 [1] : vector<8x8xf32> to vector<8xf32>
    %36 = vector.shape_cast %35 : vector<8xf32> to vector<8x1xf32>
    %37 = tpu.reciprocal %36 {approx = true} : vector<8x1xf32> -> vector<8x1xf32>
    %38 = vector.broadcast %37 : vector<8x1xf32> to vector<8x8xf32>
    %39 = arith.mulf %34, %38 : vector<8x8xf32>
    %40 = arith.truncf %39 : vector<8x8xf32> to vector<8x8xbf16>
    %41 = arith.truncf %24 : vector<8x8xf32> to vector<8x8xbf16>
    %cst_21 = arith.constant dense<0.000000e+00> : vector<8x8xf32>
    %42 = tpu.matmul %40, %41, %cst_21 {dimension_numbers = #tpu.dot_dimension_numbers<[1], [0], [0], [1], [0, 0, 1, 1], [], []>} : vector<8x8xbf16>, vector<8x8xbf16>, vector<8x8xf32> -> vector<8x8xf32>
    %c0_22 = arith.constant 0 : index
    %c0_23 = arith.constant 0 : index
    %43 = vector.load %arg13[%c0_22, %c0_23] : memref<8x32xf32, #tpu.memory_space<vmem>>, vector<8x8xf32>
    tpu.vector_store %arg13[%c0_22, %c0_23], %42 {strides = array<i32>} : memref<8x32xf32, #tpu.memory_space<vmem>>, vector<8x8xf32>,
    %44 = vector.extract_strided_slice %9 {offsets = [0, 8], sizes = [8, 8], strides = [1, 1]} : vector<8x32xf32> to vector<8x8xf32>
    %cst_24 = arith.constant 0.353553385 : f32
    %45 = vector.broadcast %cst_24 : f32 to vector<8x8xf32>
    %46 = arith.mulf %44, %45 : vector<8x8xf32>
    %47 = vector.extract_strided_slice %16 {offsets = [0, 8], sizes = [8, 8], strides = [1, 1]} : vector<8x32xf32> to vector<8x8xf32>
    %48 = vector.extract_strided_slice %17 {offsets = [0, 8], sizes = [8, 8], strides = [1, 1]} : vector<8x32xf32> to vector<8x8xf32>
    %49 = arith.truncf %46 : vector<8x8xf32> to vector<8x8xbf16>
    %50 = arith.truncf %47 : vector<8x8xf32> to vector<8x8xbf16>
    %cst_25 = arith.constant dense<0.000000e+00> : vector<8x8xf32>
    %51 = tpu.matmul %49, %50, %cst_25 {dimension_numbers = #tpu.dot_dimension_numbers<[1], [1], [0], [0], [0, 0, 1, 0], [], []>} : vector<8x8xbf16>, vector<8x8xbf16>, vector<8x8xf32> -> vector<8x8xf32>
    %52 = vector.broadcast %19 : vector<1x8xf32> to vector<8x8xf32>
    %53 = arith.addf %51, %52 : vector<8x8xf32>
    %cst_26 = arith.constant dense<0xFF800000> : vector<8xf32>
    %54 = vector.multi_reduction <maximumf>, %53, %cst_26 [1] : vector<8x8xf32> to vector<8xf32>
    %55 = vector.shape_cast %54 : vector<8xf32> to vector<8x1xf32>
    %56 = vector.broadcast %55 : vector<8x1xf32> to vector<8x8xf32>
    %57 = arith.subf %53, %56 : vector<8x8xf32>
    %58 = math.exp %57 : vector<8x8xf32>
    %cst_27 = arith.constant dense<0.000000e+00> : vector<8xf32>
    %59 = vector.multi_reduction <add>, %58, %cst_27 [1] : vector<8x8xf32> to vector<8xf32>
    %60 = vector.shape_cast %59 : vector<8xf32> to vector<8x1xf32>
    %61 = tpu.reciprocal %60 {approx = true} : vector<8x1xf32> -> vector<8x1xf32>
    %62 = vector.broadcast %61 : vector<8x1xf32> to vector<8x8xf32>
    %63 = arith.mulf %58, %62 : vector<8x8xf32>
    %64 = arith.truncf %63 : vector<8x8xf32> to vector<8x8xbf16>
    %65 = arith.truncf %48 : vector<8x8xf32> to vector<8x8xbf16>
    %cst_28 = arith.constant dense<0.000000e+00> : vector<8x8xf32>
    %66 = tpu.matmul %64, %65, %cst_28 {dimension_numbers = #tpu.dot_dimension_numbers<[1], [0], [0], [1], [0, 0, 1, 1], [], []>} : vector<8x8xbf16>, vector<8x8xbf16>, vector<8x8xf32> -> vector<8x8xf32>
    %c0_29 = arith.constant 0 : index
    %c8 = arith.constant 8 : index
    %67 = vector.load %arg13[%c0_29, %c8] : memref<8x32xf32, #tpu.memory_space<vmem>>, vector<8x8xf32>
    tpu.vector_store %arg13[%c0_29, %c8], %66 {strides = array<i32>} : memref<8x32xf32, #tpu.memory_space<vmem>>, vector<8x8xf32>,
    %68 = vector.extract_strided_slice %9 {offsets = [0, 16], sizes = [8, 8], strides = [1, 1]} : vector<8x32xf32> to vector<8x8xf32>
    %cst_30 = arith.constant 0.353553385 : f32
    %69 = vector.broadcast %cst_30 : f32 to vector<8x8xf32>
    %70 = arith.mulf %68, %69 : vector<8x8xf32>
    %71 = vector.extract_strided_slice %16 {offsets = [0, 16], sizes = [8, 8], strides = [1, 1]} : vector<8x32xf32> to vector<8x8xf32>
    %72 = vector.extract_strided_slice %17 {offsets = [0, 16], sizes = [8, 8], strides = [1, 1]} : vector<8x32xf32> to vector<8x8xf32>
    %73 = arith.truncf %70 : vector<8x8xf32> to vector<8x8xbf16>
    %74 = arith.truncf %71 : vector<8x8xf32> to vector<8x8xbf16>
    %cst_31 = arith.constant dense<0.000000e+00> : vector<8x8xf32>
    %75 = tpu.matmul %73, %74, %cst_31 {dimension_numbers = #tpu.dot_dimension_numbers<[1], [1], [0], [0], [0, 0, 1, 0], [], []>} : vector<8x8xbf16>, vector<8x8xbf16>, vector<8x8xf32> -> vector<8x8xf32>
    %76 = vector.broadcast %19 : vector<1x8xf32> to vector<8x8xf32>
    %77 = arith.addf %75, %76 : vector<8x8xf32>
    %cst_32 = arith.constant dense<0xFF800000> : vector<8xf32>
    %78 = vector.multi_reduction <maximumf>, %77, %cst_32 [1] : vector<8x8xf32> to vector<8xf32>
    %79 = vector.shape_cast %78 : vector<8xf32> to vector<8x1xf32>
    %80 = vector.broadcast %79 : vector<8x1xf32> to vector<8x8xf32>
    %81 = arith.subf %77, %80 : vector<8x8xf32>
    %82 = math.exp %81 : vector<8x8xf32>
    %cst_33 = arith.constant dense<0.000000e+00> : vector<8xf32>
    %83 = vector.multi_reduction <add>, %82, %cst_33 [1] : vector<8x8xf32> to vector<8xf32>
    %84 = vector.shape_cast %83 : vector<8xf32> to vector<8x1xf32>
    %85 = tpu.reciprocal %84 {approx = true} : vector<8x1xf32> -> vector<8x1xf32>
    %86 = vector.broadcast %85 : vector<8x1xf32> to vector<8x8xf32>
    %87 = arith.mulf %82, %86 : vector<8x8xf32>
    %88 = arith.truncf %87 : vector<8x8xf32> to vector<8x8xbf16>
    %89 = arith.truncf %72 : vector<8x8xf32> to vector<8x8xbf16>
    %cst_34 = arith.constant dense<0.000000e+00> : vector<8x8xf32>
    %90 = tpu.matmul %88, %89, %cst_34 {dimension_numbers = #tpu.dot_dimension_numbers<[1], [0], [0], [1], [0, 0, 1, 1], [], []>} : vector<8x8xbf16>, vector<8x8xbf16>, vector<8x8xf32> -> vector<8x8xf32>
    %c0_35 = arith.constant 0 : index
    %c16 = arith.constant 16 : index
    %91 = vector.load %arg13[%c0_35, %c16] : memref<8x32xf32, #tpu.memory_space<vmem>>, vector<8x8xf32>
    tpu.vector_store %arg13[%c0_35, %c16], %90 {strides = array<i32>} : memref<8x32xf32, #tpu.memory_space<vmem>>, vector<8x8xf32>,
    %92 = vector.extract_strided_slice %9 {offsets = [0, 24], sizes = [8, 8], strides = [1, 1]} : vector<8x32xf32> to vector<8x8xf32>
    %cst_36 = arith.constant 0.353553385 : f32
    %93 = vector.broadcast %cst_36 : f32 to vector<8x8xf32>
    %94 = arith.mulf %92, %93 : vector<8x8xf32>
    %95 = vector.extract_strided_slice %16 {offsets = [0, 24], sizes = [8, 8], strides = [1, 1]} : vector<8x32xf32> to vector<8x8xf32>
    %96 = vector.extract_strided_slice %17 {offsets = [0, 24], sizes = [8, 8], strides = [1, 1]} : vector<8x32xf32> to vector<8x8xf32>
    %97 = arith.truncf %94 : vector<8x8xf32> to vector<8x8xbf16>
    %98 = arith.truncf %95 : vector<8x8xf32> to vector<8x8xbf16>
    %cst_37 = arith.constant dense<0.000000e+00> : vector<8x8xf32>
    %99 = tpu.matmul %97, %98, %cst_37 {dimension_numbers = #tpu.dot_dimension_numbers<[1], [1], [0], [0], [0, 0, 1, 0], [], []>} : vector<8x8xbf16>, vector<8x8xbf16>, vector<8x8xf32> -> vector<8x8xf32>
    %100 = vector.broadcast %19 : vector<1x8xf32> to vector<8x8xf32>
    %101 = arith.addf %99, %100 : vector<8x8xf32>
    %cst_38 = arith.constant dense<0xFF800000> : vector<8xf32>
    %102 = vector.multi_reduction <maximumf>, %101, %cst_38 [1] : vector<8x8xf32> to vector<8xf32>
    %103 = vector.shape_cast %102 : vector<8xf32> to vector<8x1xf32>
    %104 = vector.broadcast %103 : vector<8x1xf32> to vector<8x8xf32>
    %105 = arith.subf %101, %104 : vector<8x8xf32>
    %106 = math.exp %105 : vector<8x8xf32>
    %cst_39 = arith.constant dense<0.000000e+00> : vector<8xf32>
    %107 = vector.multi_reduction <add>, %106, %cst_39 [1] : vector<8x8xf32> to vector<8xf32>
    %108 = vector.shape_cast %107 : vector<8xf32> to vector<8x1xf32>
    %109 = tpu.reciprocal %108 {approx = true} : vector<8x1xf32> -> vector<8x1xf32>
    %110 = vector.broadcast %109 : vector<8x1xf32> to vector<8x8xf32>
    %111 = arith.mulf %106, %110 : vector<8x8xf32>
    %112 = arith.truncf %111 : vector<8x8xf32> to vector<8x8xbf16>
    %113 = arith.truncf %96 : vector<8x8xf32> to vector<8x8xbf16>
    %cst_40 = arith.constant dense<0.000000e+00> : vector<8x8xf32>
    %114 = tpu.matmul %112, %113, %cst_40 {dimension_numbers = #tpu.dot_dimension_numbers<[1], [0], [0], [1], [0, 0, 1, 1], [], []>} : vector<8x8xbf16>, vector<8x8xbf16>, vector<8x8xf32> -> vector<8x8xf32>
    %c0_41 = arith.constant 0 : index
    %c24 = arith.constant 24 : index
    %115 = vector.load %arg13[%c0_41, %c24] : memref<8x32xf32, #tpu.memory_space<vmem>>, vector<8x8xf32>
    tpu.vector_store %arg13[%c0_41, %c24], %114 {strides = array<i32>} : memref<8x32xf32, #tpu.memory_space<vmem>>, vector<8x8xf32>,
    %c0_42 = arith.constant 0 : index
    %c0_43 = arith.constant 0 : index
    %116 = vector.load %arg13[%c0_42, %c0_43] : memref<8x32xf32, #tpu.memory_space<vmem>>, vector<8x32xf32>
    %117 = arith.truncf %116 : vector<8x32xf32> to vector<8x32xbf16>
    %c0_44 = arith.constant 0 : index
    %c0_45 = arith.constant 0 : index
    %118 = vector.load %arg7[%c0_44, %c0_45] : memref<32x32xbf16, #tpu.memory_space<vmem>>, vector<32x32xbf16>
    %cst_46 = arith.constant dense<0.000000e+00> : vector<8x32xf32>
    %119 = tpu.matmul %117, %118, %cst_46 {dimension_numbers = #tpu.dot_dimension_numbers<[1], [0], [0], [1], [0, 0, 1, 1], [], []>} : vector<8x32xbf16>, vector<32x32xbf16>, vector<8x32xf32> -> vector<8x32xf32>
    %c0_47 = arith.constant 0 : index
    %c0_48 = arith.constant 0 : index
    %120 = vector.load %arg8[%c0_47, %c0_48] : memref<1x32xf32, #tpu.memory_space<vmem>>, vector<1x32xf32>
    %121 = vector.broadcast %120 : vector<1x32xf32> to vector<8x32xf32>
    %122 = arith.addf %119, %121 : vector<8x32xf32>
    %123 = arith.addf %122, %1 : vector<8x32xf32>
    %c0_49 = arith.constant 0 : index
    %c0_50 = arith.constant 0 : index
    %124 = vector.load %arg10[%c0_49, %c0_50] : memref<1x32xf32, #tpu.memory_space<vmem>>, vector<1x32xf32>
    %c0_51 = arith.constant 0 : index
    %c0_52 = arith.constant 0 : index
    %125 = vector.load %arg11[%c0_51, %c0_52] : memref<1x32xf32, #tpu.memory_space<vmem>>, vector<1x32xf32>
    %cst_53 = arith.constant dense<0.000000e+00> : vector<8xf32>
    %126 = vector.multi_reduction <add>, %123, %cst_53 [1] : vector<8x32xf32> to vector<8xf32>
    %127 = vector.shape_cast %126 : vector<8xf32> to vector<8x1xf32>
    %cst_54 = arith.constant 3.200000e+01 : f32
    %128 = vector.broadcast %cst_54 : f32 to vector<8x1xf32>
    %129 = arith.divf %127, %128 : vector<8x1xf32>
    %130 = vector.broadcast %129 : vector<8x1xf32> to vector<8x32xf32>
    %131 = arith.subf %123, %130 : vector<8x32xf32>
    %132 = arith.mulf %131, %131 : vector<8x32xf32>
    %cst_55 = arith.constant dense<0.000000e+00> : vector<8xf32>
    %133 = vector.multi_reduction <add>, %132, %cst_55 [1] : vector<8x32xf32> to vector<8xf32>
    %134 = vector.shape_cast %133 : vector<8xf32> to vector<8x1xf32>
    %cst_56 = arith.constant 3.200000e+01 : f32
    %135 = vector.broadcast %cst_56 : f32 to vector<8x1xf32>
    %136 = arith.divf %134, %135 : vector<8x1xf32>
    %cst_57 = arith.constant 9.99999974E-6 : f32
    %137 = vector.broadcast %cst_57 : f32 to vector<8x1xf32>
    %138 = arith.addf %136, %137 : vector<8x1xf32>
    %139 = math.rsqrt %138 : vector<8x1xf32>
    %140 = vector.broadcast %129 : vector<8x1xf32> to vector<8x32xf32>
    %141 = arith.subf %123, %140 : vector<8x32xf32>
    %142 = vector.broadcast %139 : vector<8x1xf32> to vector<8x32xf32>
    %143 = arith.mulf %141, %142 : vector<8x32xf32>
    %144 = vector.broadcast %124 : vector<1x32xf32> to vector<8x32xf32>
    %145 = arith.mulf %143, %144 : vector<8x32xf32>
    %146 = vector.broadcast %125 : vector<1x32xf32> to vector<8x32xf32>
    %147 = arith.addf %145, %146 : vector<8x32xf32>
    %c0_58 = arith.constant 0 : index
    %c0_59 = arith.constant 0 : index
    %c0_60 = arith.constant 0 : index
    %148 = vector.load %arg12[%c0_58, %c0_59, %c0_60] : memref<1x8x32xf32, #tpu.memory_space<vmem>>, vector<1x8x32xf32>
    %149 = vector.shape_cast %148 : vector<1x8x32xf32> to vector<8x32xf32>
    %150 = vector.shape_cast %147 : vector<8x32xf32> to vector<1x8x32xf32>
    tpu.vector_store %arg12[%c0_58, %c0_59, %c0_60], %150 {strides = array<i32>} : memref<1x8x32xf32, #tpu.memory_space<vmem>>, vector<1x8x32xf32>,
    return
  }
  func.func @transform_0(%arg0: i32) -> (i32, i32, i32) {
    %c0_i32 = arith.constant 0 : i32
    %c0_i32_0 = arith.constant 0 : i32
    %c0_i32_1 = arith.constant 0 : i32
    return %arg0, %c0_i32, %c0_i32_0 : i32, i32, i32
  }
  func.func @transform_1(%arg0: i32) -> (i32, i32, i32) {
    %c0_i32 = arith.constant 0 : i32
    %c0_i32_0 = arith.constant 0 : i32
    %c0_i32_1 = arith.constant 0 : i32
    return %arg0, %c0_i32, %c0_i32_0 : i32, i32, i32
  }
  func.func @transform_2(%arg0: i32) -> (i32, i32) {
    %c0_i32 = arith.constant 0 : i32
    %c0_i32_0 = arith.constant 0 : i32
    %c0_i32_1 = arith.constant 0 : i32
    return %c0_i32, %c0_i32_0 : i32, i32
  }
  func.func @transform_3(%arg0: i32) -> (i32, i32) {
    %c0_i32 = arith.constant 0 : i32
    %c0_i32_0 = arith.constant 0 : i32
    %c0_i32_1 = arith.constant 0 : i32
    return %c0_i32, %c0_i32_0 : i32, i32
  }
  func.func @transform_4(%arg0: i32) -> (i32, i32) {
    %c0_i32 = arith.constant 0 : i32
    %c0_i32_0 = arith.constant 0 : i32
    %c0_i32_1 = arith.constant 0 : i32
    return %c0_i32, %c0_i32_0 : i32, i32
  }
  func.func @transform_5(%arg0: i32) -> (i32, i32) {
    %c0_i32 = arith.constant 0 : i32
    %c0_i32_0 = arith.constant 0 : i32
    %c0_i32_1 = arith.constant 0 : i32
    return %c0_i32, %c0_i32_0 : i32, i32
  }
  func.func @transform_6(%arg0: i32) -> (i32, i32) {
    %c0_i32 = arith.constant 0 : i32
    %c0_i32_0 = arith.constant 0 : i32
    %c0_i32_1 = arith.constant 0 : i32
    return %c0_i32, %c0_i32_0 : i32, i32
  }
  func.func @transform_7(%arg0: i32) -> (i32, i32) {
    %c0_i32 = arith.constant 0 : i32
    %c0_i32_0 = arith.constant 0 : i32
    %c0_i32_1 = arith.constant 0 : i32
    return %c0_i32, %c0_i32_0 : i32, i32
  }
  func.func @transform_8(%arg0: i32) -> (i32, i32, i32) {
    %c0_i32 = arith.constant 0 : i32
    %c0_i32_0 = arith.constant 0 : i32
    %c0_i32_1 = arith.constant 0 : i32
    return %arg0, %c0_i32, %c0_i32_0 : i32, i32, i32
  }
  func.func @transform_9(%arg0: i32) -> (i32, i32) {
    %c0_i32 = arith.constant 0 : i32
    %c0_i32_0 = arith.constant 0 : i32
    %c0_i32_1 = arith.constant 0 : i32
    return %c0_i32, %c0_i32_0 : i32, i32
  }
  func.func @transform_10(%arg0: i32) -> (i32, i32) {
    %c0_i32 = arith.constant 0 : i32
    %c0_i32_0 = arith.constant 0 : i32
    %c0_i32_1 = arith.constant 0 : i32
    return %c0_i32, %c0_i32_0 : i32, i32
  }
  func.func @transform_11(%arg0: i32) -> (i32, i32, i32) {
    %c0_i32 = arith.constant 0 : i32
    %c0_i32_0 = arith.constant 0 : i32
    %c0_i32_1 = arith.constant 0 : i32
    return %arg0, %c0_i32, %c0_i32_0 : i32, i32, i32
  }
}

module attributes {stable_mosaic.version = 11 : i64} {
  func.func @_ffn_ln_kernel(%arg0: i32, %arg1: memref<8x32xf32, #tpu.memory_space<vmem>>, %arg2: memref<32x64xbf16, #tpu.memory_space<vmem>>, %arg3: memref<1x64xf32, #tpu.memory_space<vmem>>, %arg4: memref<64x32xbf16, #tpu.memory_space<vmem>>, %arg5: memref<1x32xf32, #tpu.memory_space<vmem>>, %arg6: memref<1x32xf32, #tpu.memory_space<vmem>>, %arg7: memref<1x32xf32, #tpu.memory_space<vmem>>, %arg8: memref<8x32xf32, #tpu.memory_space<vmem>>) attributes {dimension_semantics = [#tpu.dimension_semantics<parallel>], iteration_bounds = array<i64: 2>, scalar_prefetch = 0 : i64, scratch_operands = 0 : i64, tpu.core_type = #tpu.core_type<tc>, window_params = [{transform_indices = @transform_0, window_bounds = array<i64: 8, 32>}, {pipeline_mode = #tpu.pipeline_mode<synchronous>, transform_indices = @transform_1, window_bounds = array<i64: 32, 64>}, {pipeline_mode = #tpu.pipeline_mode<synchronous>, transform_indices = @transform_2, window_bounds = array<i64: 1, 64>}, {pipeline_mode = #tpu.pipeline_mode<synchronous>, transform_indices = @transform_3, window_bounds = array<i64: 64, 32>}, {pipeline_mode = #tpu.pipeline_mode<synchronous>, transform_indices = @transform_4, window_bounds = array<i64: 1, 32>}, {pipeline_mode = #tpu.pipeline_mode<synchronous>, transform_indices = @transform_5, window_bounds = array<i64: 1, 32>}, {pipeline_mode = #tpu.pipeline_mode<synchronous>, transform_indices = @transform_6, window_bounds = array<i64: 1, 32>}, {transform_indices = @transform_7, window_bounds = array<i64: 8, 32>}]} {
    %c0 = arith.constant 0 : index
    %c0_0 = arith.constant 0 : index
    %0 = vector.load %arg1[%c0, %c0_0] : memref<8x32xf32, #tpu.memory_space<vmem>>, vector<8x32xf32>
    %1 = arith.truncf %0 : vector<8x32xf32> to vector<8x32xbf16>
    %c0_1 = arith.constant 0 : index
    %c0_2 = arith.constant 0 : index
    %2 = vector.load %arg2[%c0_1, %c0_2] : memref<32x64xbf16, #tpu.memory_space<vmem>>, vector<32x64xbf16>
    %cst = arith.constant dense<0.000000e+00> : vector<8x64xf32>
    %3 = tpu.matmul %1, %2, %cst {dimension_numbers = #tpu.dot_dimension_numbers<[1], [0], [0], [1], [0, 0, 1, 1], [], []>} : vector<8x32xbf16>, vector<32x64xbf16>, vector<8x64xf32> -> vector<8x64xf32>
    %c0_3 = arith.constant 0 : index
    %c0_4 = arith.constant 0 : index
    %4 = vector.load %arg3[%c0_3, %c0_4] : memref<1x64xf32, #tpu.memory_space<vmem>>, vector<1x64xf32>
    %5 = vector.broadcast %4 : vector<1x64xf32> to vector<8x64xf32>
    %6 = arith.addf %3, %5 : vector<8x64xf32>
    %cst_5 = arith.constant 0.000000e+00 : f32
    %7 = vector.broadcast %cst_5 : f32 to vector<8x64xf32>
    %8 = arith.maximumf %6, %7 : vector<8x64xf32>
    %9 = arith.truncf %8 : vector<8x64xf32> to vector<8x64xbf16>
    %c0_6 = arith.constant 0 : index
    %c0_7 = arith.constant 0 : index
    %10 = vector.load %arg4[%c0_6, %c0_7] : memref<64x32xbf16, #tpu.memory_space<vmem>>, vector<64x32xbf16>
    %cst_8 = arith.constant dense<0.000000e+00> : vector<8x32xf32>
    %11 = tpu.matmul %9, %10, %cst_8 {dimension_numbers = #tpu.dot_dimension_numbers<[1], [0], [0], [1], [0, 0, 1, 1], [], []>} : vector<8x64xbf16>, vector<64x32xbf16>, vector<8x32xf32> -> vector<8x32xf32>
    %c0_9 = arith.constant 0 : index
    %c0_10 = arith.constant 0 : index
    %12 = vector.load %arg5[%c0_9, %c0_10] : memref<1x32xf32, #tpu.memory_space<vmem>>, vector<1x32xf32>
    %13 = vector.broadcast %12 : vector<1x32xf32> to vector<8x32xf32>
    %14 = arith.addf %11, %13 : vector<8x32xf32>
    %15 = arith.addf %14, %0 : vector<8x32xf32>
    %c0_11 = arith.constant 0 : index
    %c0_12 = arith.constant 0 : index
    %16 = vector.load %arg6[%c0_11, %c0_12] : memref<1x32xf32, #tpu.memory_space<vmem>>, vector<1x32xf32>
    %c0_13 = arith.constant 0 : index
    %c0_14 = arith.constant 0 : index
    %17 = vector.load %arg7[%c0_13, %c0_14] : memref<1x32xf32, #tpu.memory_space<vmem>>, vector<1x32xf32>
    %cst_15 = arith.constant dense<0.000000e+00> : vector<8xf32>
    %18 = vector.multi_reduction <add>, %15, %cst_15 [1] : vector<8x32xf32> to vector<8xf32>
    %19 = vector.shape_cast %18 : vector<8xf32> to vector<8x1xf32>
    %cst_16 = arith.constant 3.200000e+01 : f32
    %20 = vector.broadcast %cst_16 : f32 to vector<8x1xf32>
    %21 = arith.divf %19, %20 : vector<8x1xf32>
    %22 = vector.broadcast %21 : vector<8x1xf32> to vector<8x32xf32>
    %23 = arith.subf %15, %22 : vector<8x32xf32>
    %24 = arith.mulf %23, %23 : vector<8x32xf32>
    %cst_17 = arith.constant dense<0.000000e+00> : vector<8xf32>
    %25 = vector.multi_reduction <add>, %24, %cst_17 [1] : vector<8x32xf32> to vector<8xf32>
    %26 = vector.shape_cast %25 : vector<8xf32> to vector<8x1xf32>
    %cst_18 = arith.constant 3.200000e+01 : f32
    %27 = vector.broadcast %cst_18 : f32 to vector<8x1xf32>
    %28 = arith.divf %26, %27 : vector<8x1xf32>
    %cst_19 = arith.constant 9.99999974E-6 : f32
    %29 = vector.broadcast %cst_19 : f32 to vector<8x1xf32>
    %30 = arith.addf %28, %29 : vector<8x1xf32>
    %31 = math.rsqrt %30 : vector<8x1xf32>
    %32 = vector.broadcast %21 : vector<8x1xf32> to vector<8x32xf32>
    %33 = arith.subf %15, %32 : vector<8x32xf32>
    %34 = vector.broadcast %31 : vector<8x1xf32> to vector<8x32xf32>
    %35 = arith.mulf %33, %34 : vector<8x32xf32>
    %36 = vector.broadcast %16 : vector<1x32xf32> to vector<8x32xf32>
    %37 = arith.mulf %35, %36 : vector<8x32xf32>
    %38 = vector.broadcast %17 : vector<1x32xf32> to vector<8x32xf32>
    %39 = arith.addf %37, %38 : vector<8x32xf32>
    %c0_20 = arith.constant 0 : index
    %c0_21 = arith.constant 0 : index
    %40 = vector.load %arg8[%c0_20, %c0_21] : memref<8x32xf32, #tpu.memory_space<vmem>>, vector<8x32xf32>
    tpu.vector_store %arg8[%c0_20, %c0_21], %39 {strides = array<i32>} : memref<8x32xf32, #tpu.memory_space<vmem>>, vector<8x32xf32>,
    return
  }
  func.func @transform_0(%arg0: i32) -> (i32, i32) {
    %c0_i32 = arith.constant 0 : i32
    %c0_i32_0 = arith.constant 0 : i32
    return %arg0, %c0_i32 : i32, i32
  }
  func.func @transform_1(%arg0: i32) -> (i32, i32) {
    %c0_i32 = arith.constant 0 : i32
    %c0_i32_0 = arith.constant 0 : i32
    %c0_i32_1 = arith.constant 0 : i32
    return %c0_i32, %c0_i32_0 : i32, i32
  }
  func.func @transform_2(%arg0: i32) -> (i32, i32) {
    %c0_i32 = arith.constant 0 : i32
    %c0_i32_0 = arith.constant 0 : i32
    %c0_i32_1 = arith.constant 0 : i32
    return %c0_i32, %c0_i32_0 : i32, i32
  }
  func.func @transform_3(%arg0: i32) -> (i32, i32) {
    %c0_i32 = arith.constant 0 : i32
    %c0_i32_0 = arith.constant 0 : i32
    %c0_i32_1 = arith.constant 0 : i32
    return %c0_i32, %c0_i32_0 : i32, i32
  }
  func.func @transform_4(%arg0: i32) -> (i32, i32) {
    %c0_i32 = arith.constant 0 : i32
    %c0_i32_0 = arith.constant 0 : i32
    %c0_i32_1 = arith.constant 0 : i32
    return %c0_i32, %c0_i32_0 : i32, i32
  }
  func.func @transform_5(%arg0: i32) -> (i32, i32) {
    %c0_i32 = arith.constant 0 : i32
    %c0_i32_0 = arith.constant 0 : i32
    %c0_i32_1 = arith.constant 0 : i32
    return %c0_i32, %c0_i32_0 : i32, i32
  }
  func.func @transform_6(%arg0: i32) -> (i32, i32) {
    %c0_i32 = arith.constant 0 : i32
    %c0_i32_0 = arith.constant 0 : i32
    %c0_i32_1 = arith.constant 0 : i32
    return %c0_i32, %c0_i32_0 : i32, i32
  }
  func.func @transform_7(%arg0: i32) -> (i32, i32) {
    %c0_i32 = arith.constant 0 : i32
    %c0_i32_0 = arith.constant 0 : i32
    return %arg0, %c0_i32 : i32, i32
  }
}

module attributes {stable_mosaic.version = 11 : i64} {
  func.func @_proj_softmax_kernel(%arg0: i32, %arg1: memref<8x32xf32, #tpu.memory_space<vmem>>, %arg2: memref<32x16xbf16, #tpu.memory_space<vmem>>, %arg3: memref<1x16xf32, #tpu.memory_space<vmem>>, %arg4: memref<8x16xf32, #tpu.memory_space<vmem>>) attributes {dimension_semantics = [#tpu.dimension_semantics<parallel>], iteration_bounds = array<i64: 2>, scalar_prefetch = 0 : i64, scratch_operands = 0 : i64, tpu.core_type = #tpu.core_type<tc>, window_params = [{transform_indices = @transform_0, window_bounds = array<i64: 8, 32>}, {pipeline_mode = #tpu.pipeline_mode<synchronous>, transform_indices = @transform_1, window_bounds = array<i64: 32, 16>}, {pipeline_mode = #tpu.pipeline_mode<synchronous>, transform_indices = @transform_2, window_bounds = array<i64: 1, 16>}, {transform_indices = @transform_3, window_bounds = array<i64: 8, 16>}]} {
    %c0 = arith.constant 0 : index
    %c0_0 = arith.constant 0 : index
    %0 = vector.load %arg1[%c0, %c0_0] : memref<8x32xf32, #tpu.memory_space<vmem>>, vector<8x32xf32>
    %1 = arith.truncf %0 : vector<8x32xf32> to vector<8x32xbf16>
    %c0_1 = arith.constant 0 : index
    %c0_2 = arith.constant 0 : index
    %2 = vector.load %arg2[%c0_1, %c0_2] : memref<32x16xbf16, #tpu.memory_space<vmem>>, vector<32x16xbf16>
    %cst = arith.constant dense<0.000000e+00> : vector<8x16xf32>
    %3 = tpu.matmul %1, %2, %cst {dimension_numbers = #tpu.dot_dimension_numbers<[1], [0], [0], [1], [0, 0, 1, 1], [], []>} : vector<8x32xbf16>, vector<32x16xbf16>, vector<8x16xf32> -> vector<8x16xf32>
    %c0_3 = arith.constant 0 : index
    %c0_4 = arith.constant 0 : index
    %4 = vector.load %arg3[%c0_3, %c0_4] : memref<1x16xf32, #tpu.memory_space<vmem>>, vector<1x16xf32>
    %5 = vector.broadcast %4 : vector<1x16xf32> to vector<8x16xf32>
    %6 = arith.addf %3, %5 : vector<8x16xf32>
    %cst_5 = arith.constant dense<0xFF800000> : vector<8xf32>
    %7 = vector.multi_reduction <maximumf>, %6, %cst_5 [1] : vector<8x16xf32> to vector<8xf32>
    %8 = vector.shape_cast %7 : vector<8xf32> to vector<8x1xf32>
    %9 = vector.broadcast %8 : vector<8x1xf32> to vector<8x16xf32>
    %10 = arith.subf %6, %9 : vector<8x16xf32>
    %11 = math.exp %10 : vector<8x16xf32>
    %cst_6 = arith.constant dense<0.000000e+00> : vector<8xf32>
    %12 = vector.multi_reduction <add>, %11, %cst_6 [1] : vector<8x16xf32> to vector<8xf32>
    %13 = vector.shape_cast %12 : vector<8xf32> to vector<8x1xf32>
    %14 = vector.broadcast %13 : vector<8x1xf32> to vector<8x16xf32>
    %15 = arith.divf %11, %14 : vector<8x16xf32>
    %c0_7 = arith.constant 0 : index
    %c0_8 = arith.constant 0 : index
    %16 = vector.load %arg4[%c0_7, %c0_8] : memref<8x16xf32, #tpu.memory_space<vmem>>, vector<8x16xf32>
    tpu.vector_store %arg4[%c0_7, %c0_8], %15 {strides = array<i32>} : memref<8x16xf32, #tpu.memory_space<vmem>>, vector<8x16xf32>,
    return
  }
  func.func @transform_0(%arg0: i32) -> (i32, i32) {
    %c0_i32 = arith.constant 0 : i32
    %c0_i32_0 = arith.constant 0 : i32
    return %arg0, %c0_i32 : i32, i32
  }
  func.func @transform_1(%arg0: i32) -> (i32, i32) {
    %c0_i32 = arith.constant 0 : i32
    %c0_i32_0 = arith.constant 0 : i32
    %c0_i32_1 = arith.constant 0 : i32
    return %c0_i32, %c0_i32_0 : i32, i32
  }
  func.func @transform_2(%arg0: i32) -> (i32, i32) {
    %c0_i32 = arith.constant 0 : i32
    %c0_i32_0 = arith.constant 0 : i32
    %c0_i32_1 = arith.constant 0 : i32
    return %c0_i32, %c0_i32_0 : i32, i32
  }
  func.func @transform_3(%arg0: i32) -> (i32, i32) {
    %c0_i32 = arith.constant 0 : i32
    %c0_i32_0 = arith.constant 0 : i32
    return %arg0, %c0_i32 : i32, i32
  }
}

</mosaic_0001>

<bundles_post_ra>
// kernel: transformer_forward.16
= control target key start
LH: loop header
LB: loop body
LE: loop exit
PB: predicated region body
PF: predicated region fallthrough
CT: control target
= control target key end

     0   :  { %12 = vsyncpa [#allocation3], 0  ;;  %s867_s0 = inlined_call_operand.vmem [shape: f32[16,32], index: 0, kind: input, shape index: {}]   ;;  %s868_s1 = inlined_call_operand.hbm [shape: bf16[32,64], index: 1, kind: input, shape index: {}]   ;;  %s869_s2 = inlined_call_operand.hbm [shape: f32[1,64], index: 2, kind: input, shape index: {}]   ;;  %s870_s3 = inlined_call_operand.vmem [shape: bf16[64,32], index: 3, kind: input, shape index: {}]   ;;  %s871_s4 = inlined_call_operand.hbm [shape: f32[1,32], index: 4, kind: input, shape index: {}]   ;;  %s872_s5 = inlined_call_operand.vmem [shape: f32[1,32], index: 5, kind: input, shape index: {}]   ;;  %s873_s6 = inlined_call_operand.vmem [shape: f32[1,32], index: 6, kind: input, shape index: {}]   ;;  %s874_s7 = inlined_call_operand.vmem [shape: f32[16,32], index: 7, kind: output, shape index: {}]  }
   0x1   :  { %13 = vsyncpa [#allocation5], 0  ;;  %s789_s24 = smov 0  }
   0x2 LB: > { %s228_s27 = sshll.u32 %s869_s2, 4  ;;  %s798_s28 = sadd.s32 4294967295, %s741_s24   ;;  %s741_s24 = sphi %s789_s24, %s19_s24   ;;  %s229_s27 = int_to_ptr.hbm [resolvable:$true] %s228_s27 }
   0x3   : > { %p542_p0 = scmp.ge.s32.totalorder %s741_s24, 1  ;;  %p202_p1 = scmp.lt.s32.totalorder %s741_s24, 3 }
   0x4   : > { %p609_p2 = scmp.eq.s32.totalorder %s798_s28, 0  ;;  %s743_s30 = smov [#allocation4]  }
   0x5   : > { %p803_p3 = pnand %p542_p0, %p202_p1  ;;  %s230_s8 = sshll.u32 %s743_s30, 4  ;;  %s231_s8 = int_to_ptr.vmem [resolvable:$true] %s230_s8 }
   0x6   : > { %s213_s11 = sshll.u32 %s868_s1, 4  ;;  %s744_s12 = smov [#allocation2]   ;;  %s214_s11 = int_to_ptr.hbm [resolvable:$true] %s213_s11 }
   0x7   : > { %p599_p4 = pneg %p803_p3  ;;  %s215_s13 = sshll.u32 %s744_s12, 4  ;;  %s216_s13 = int_to_ptr.vmem [resolvable:$true] %s215_s13 }
   0x8   : > { %s243_s16 = sshll.u32 %s871_s4, 4  ;;  %s745_s17 = smov 64   ;;  %s244_s16 = int_to_ptr.hbm [resolvable:$true] %s243_s16 }
   0x9   : > { %p600_p5 = pnand %p609_p2, %p599_p4  ;;  %s746_s18 = smov 4  }
   0xa   : > { %s747_s19 = smov [#allocation6]   ;;  %271 = sbr.rel (%p803_p3) target bundleno = 557 (0x22d), region = 48 }
   0xb   : > { %605 = dma.hbm_to_vmem [thread:$0]  (!%p600_p5), %s229_s27, 16, %s231_s8, [#allocation5]  }
   0xc   : > { %602 = dma.hbm_to_vmem [thread:$0]  (!%p600_p5), %s214_s11, 256, %s216_s13, [#allocation3], %s745_s17, %s745_s17, %s746_s18  }
   0xd   : > { %s245_s20 = sshll.u32 %s747_s19, 4  ;;  %s246_s20 = int_to_ptr.vmem [resolvable:$true] %s245_s20 }
   0xe   : > { %608 = dma.hbm_to_vmem [thread:$0]  (!%p600_p5), %s244_s16, 16, %s246_s20, [#allocation5]  }
   0xf   : > { %732 = dma.done.wait (%p609_p2), [#allocation3], 256  }
  0x10   : > { %734 = vsyncadd (%p609_p2), [#allocation3], 4294967040 }
  0x11   : > { %736 = dma.done.wait (%p609_p2), [#allocation5], 32  }
  0x12   : > { %738 = vsyncadd (%p609_p2), [#allocation5], 4294967264  ;;  %p312_p6 = scmp.lt.s32.totalorder %s798_s28, 1  ;;  %v582_v0 = vld [vmem:[#allocation2 + $0x8] sm:$0xff]  ;;  %v581_v1 = vld [vmem:[#allocation2] sm:$0xff]  ;;  %vm343_vm0 = vcmask 261120  }
  0x13   : > { %v586_v2 = vld [vmem:[%s870_s3 + $0x18] sm:$0xff]  ;;  %353 = vmatpush.bf16.msra.mxu0 %v582_v0  ;;  %v585_v4 = vld [vmem:[%s870_s3 + $0x10] sm:$0xff]  ;;  %v584_v6 = vld [vmem:[%s870_s3 + $0x8] sm:$0xff]  ;;  %vm398_vm1 = vcmask 523264   ;;  %v748_v20 = vmov 32.0  }
  0x14   : > { %s877_s28 = smov (!%p312_p6, %s798_s28), 1  ;;  %406 = vmatpush.bf16.msra.mxu1 %v586_v2  ;;  %v583_v7 = vld [vmem:[%s870_s3] sm:$0xff]  ;;  %v629_v8 = vld [vmem:[#allocation4] ss:$0 sm:$0xff]  ;;  %v630_v14 = vld [vmem:[#allocation6] ss:$0 sm:$0xff]  ;;  %633 = vrcp.f32 %v748_v20 }
  0x15   : > { %s551_s21 = sshll.u32 %s877_s28, 3  ;;  %v631_v41 = vld [vmem:[%s872_s5] ss:$0 sm:$0xff] }
  0x16   : > { %s315_s25 = scalar_lea.vmem %s867_s0, %s551_s21  ;;  %v632_v43 = vld [vmem:[%s873_s6] ss:$0 sm:$0xff]  ;;  %s319_s18 = scalar_lea.vmem %s874_s7, %s551_s21 }
  0x17   : > { %v321_v3 = vld [vmem:[%s315_s25] sm:$0xff]  ;;  %354 = vmatpush.bf16.msra.mxu0 %v581_v1 }
  0x18   : > { %v322_v5 = vpack.c.bf16 %v321_v3, %v321_v3  ;;  %407 = vmatpush.bf16.msra.mxu1 %v585_v4 }
  0x1a   : > { %561 = vmatmul.msk.bf16.vlgmr.msra.gmra.mxu0 %vm343_vm0, %v322_v5  ;;  %v634_v21 = vpop.eup %633 }
  0x1b   : > { %v422_v22 = vmul.f32 32.0, %v634_v21  ;;  %vm426_vm2 = vweird.f32 %v634_v21 }
  0x1c   : > { %408 = vmatpush.bf16.msra.mxu1 %v584_v6 }
  0x1d   : > { %v423_v23 = vsub.f32 1.0, %v422_v22 }
  0x1f   : > { %v424_v24 = vmul.f32 %v634_v21, %v423_v23 }
  0x20   : > { %409 = vmatpush.bf16.msra.mxu1 %v583_v7 }
  0x21   : > { %v425_v25 = vadd.f32 %v634_v21, %v424_v24 }
  0x23   : > { %v427_v26 = vsel %vm426_vm2, %v634_v21, %v425_v25 }
  0x97   : > { %v356_v9 = vpop.f32.mrf.mxu0 }
  0x98   : > { %v357_v10 = vadd.f32 %v629_v8, %v356_v9 }
  0x9a   : > { %v360_v11 = vmax.f32 %v357_v10, 0.0 }
  0x9c   : > { %v361_v12 = vpack.c.bf16 %v360_v11, %v360_v11 }
  0x9e   : > { %578 = vmatmul.msk.bf16.vlgmr.msra.gmra.mxu1 %vm398_vm1, %v361_v12 }
  0x9f   : > { %v358_v13 = vpop.f32.mrf.mxu0 }
 0x11b   : > { %v411_v15 = vpop.f32.mrf.mxu1 }
 0x11c   : > { %v412_v16 = vadd.f32 %v630_v14, %v411_v15 }
 0x11e   : > { %v415_v17 = vadd.f32 %v412_v16, %v321_v3 }
 0x120   : > { %v418_v18 = vsel %vm343_vm0, %v415_v17, 0.0 }
 0x121   : > { %419 = vadd.xlane.f32.xlu0 %v418_v18 }
 0x123   : > { %v413_v19 = vpop.f32.mrf.mxu1 }
 0x194   : > { %v420_v27 = vpop.xlane.xlu0 %419 }
 0x195   : > { %v428_v28 = vmul.f32 %v427_v26, %v420_v27 }
 0x197   : > { %v429_v29 = vsub.f32 %v415_v17, %v428_v28 }
 0x199   : > { %v430_v30 = vmul.f32 %v429_v29, %v429_v29 }
 0x19b   : > { %v431_v31 = vsel %vm343_vm0, %v430_v30, 0.0 }
 0x19c   : > { %432 = vadd.xlane.f32.xlu0 %v431_v31 }
 0x20f   : > { %v433_v32 = vpop.xlane.xlu0 %432 }
 0x210   : > { %v434_v33 = vmul.f32 %v433_v32, %v427_v26 }
 0x212   : > { %v435_v34 = vadd.f32 1e-05, %v434_v33 }
 0x214   : > { %635 = vrsqrt.f32 %v435_v34  ;;  %vm442_vm4 = vweird.f32 %v435_v34 }
 0x21a   : > { %v636_v35 = vpop.eup %635 }
 0x21b   : > { %v437_v36 = vmul.f32 %v636_v35, %v435_v34  ;;  %vm443_vm3 = vweird.f32 %v636_v35 }
 0x21c   : > { %vm444_vm5 = vmor %vm442_vm4, %vm443_vm3 }
 0x21d   : > { %v438_v37 = vmul.f32 %v636_v35, %v437_v36 }
 0x21f   : > { %v439_v38 = vmul.f32 0.5, %v438_v37 }
 0x221   : > { %v440_v39 = vsub.f32 1.5, %v439_v38 }
 0x223   : > { %v441_v40 = vmul.f32 %v636_v35, %v440_v39 }
 0x225   : > { %v445_v42 = vsel %vm444_vm5, %v636_v35, %v441_v40 }
 0x226   : > { %v446_v44 = vmul.f32 %v445_v42, %v429_v29 }
 0x228   : > { %v450_v45 = vmul.f32 %v631_v41, %v446_v44 }
 0x22a   : > { %v454_v46 = vadd.f32 %v632_v43, %v450_v45 }
 0x22c   : > { %455 = vst.msk [vmem:[%s319_s18] sm:$0xff] %vm343_vm0, %v454_v46 }
 0x22d PF: > { %s19_s24 = sadd.s32 1, %s741_s24  }
 0x22e   : > { %p16_p7 = scmp.ge.s32.totalorder %s19_s24, 4  }
 0x230   :  { %18 = sbr.rel (!%p16_p7) target bundleno = 2 (0x2), region = 91 }
 0x235   :  { %475 = vsyncpa [#allocation3], 1 }
 0x236   :  { %477 = vsyncpa [#allocation3 + $0x1], 1 }
 0x237   :  { %478 = vsyncpa [#allocation5], 1 }

// kernel: transformer_forward.14
= control target key start
LH: loop header
LB: loop body
LE: loop exit
PB: predicated region body
PF: predicated region fallthrough
CT: control target
= control target key end

     0   :  { %9 = vsyncpa [#allocation3], 0  ;;  %s414_s15 = smov 0   ;;  %s440_s0 = inlined_call_operand.vmem [shape: f32[2,8,16], index: 0, kind: input, shape index: {}]   ;;  %s441_s1 = inlined_call_operand.vmem [shape: f32[16,16], index: 1, kind: input, shape index: {}]   ;;  %s442_s2 = inlined_call_operand.vmem [shape: bf16[16,32], index: 2, kind: input, shape index: {}]   ;;  %s443_s3 = inlined_call_operand.hbm [shape: f32[1,32], index: 3, kind: input, shape index: {}]   ;;  %s444_s4 = inlined_call_operand.vmem [shape: f32[2,8,32], index: 4, kind: output, shape index: {}]  }
   0x1 LB: > { %s309_s16 = sadd.s32 4294967295, %s386_s15   ;;  %p311_p0 = scmp.ge.s32.totalorder %s386_s15, 1  ;;  %s386_s15 = sphi %s414_s15, %s15_s15  }
   0x2   : > { %p135_p1 = scmp.lt.s32.totalorder %s386_s15, 3  ;;  %s153_s19 = sshll.u32 %s443_s3, 4  ;;  %s154_s19 = int_to_ptr.hbm [resolvable:$true] %s153_s19 }
   0x3   : > { %p334_p3 = scmp.eq.s32.totalorder %s309_s16, 0  ;;  %s388_s20 = smov [#allocation2]  }
   0x4   : > { %p136_p2 = pnand %p311_p0, %p135_p1  ;;  %s155_s21 = sshll.u32 %s388_s20, 4  ;;  %s156_s21 = int_to_ptr.vmem [resolvable:$true] %s155_s21 }
   0x6   : > { %p330_p4 = pneg %p136_p2  ;;  %175 = sbr.rel (%p136_p2) target bundleno = 156 (0x9c), region = 36 }
   0x8   : > { %p331_p5 = pnand %p334_p3, %p330_p4 }
   0xa   : > { %333 = dma.hbm_to_vmem [thread:$0]  (!%p331_p5), %s154_s19, 16, %s156_s21, [#allocation3]  }
   0xb   : > { %381 = dma.done.wait (%p334_p3), [#allocation3], 16  }
   0xc   : > { %383 = vsyncadd (%p334_p3), [#allocation3], 4294967280  ;;  %p200_p6 = scmp.lt.s32.totalorder %s309_s16, 1  ;;  %v325_v0 = vld [vmem:[%s442_s2] sm:$0xff]  ;;  %vm225_vm0 = vcmask 130048   ;;  %vm242_vm1 = vcmask 261120  }
   0xd   : > { %v210_v2 = vld [vmem:[%s441_s1] sm:$0xff]  ;;  %236 = vmatpush.bf16.msra.mxu0 %v325_v0  ;;  %v345_v5 = vld [vmem:[#allocation2] ss:$0 sm:$0xff] }
   0xe   : > { %s446_s16 = smov (!%p200_p6, %s309_s16), 1 }
   0xf   : > { %s316_s22 = sshll.u32 %s446_s16, 3 }
  0x10   : > { %s203_s25 = scalar_lea.vmem %s440_s0, %s316_s22  ;;  %s207_s6 = scalar_lea.vmem %s444_s4, %s316_s22 }
  0x11   : > { %v209_v1 = vld [vmem:[%s203_s25] sm:$0xff] }
  0x12   : > { %v211_v3 = vadd.f32 %v210_v2, %v209_v1 }
  0x14   : > { %v212_v4 = vpack.c.bf16 %v211_v3, %v211_v3 }
  0x16   : > { %322 = vmatmul.msk.bf16.vlgmr.msra.gmra.mxu0 %vm225_vm0, %v212_v4 }
  0x93   : > { %v238_v6 = vpop.f32.mrf.mxu0 }
  0x94   : > { %v239_v7 = vadd.f32 %v345_v5, %v238_v6 }
  0x96   : > { %243 = vst.msk [vmem:[%s207_s6] sm:$0xff] %vm242_vm1, %v239_v7 }
  0x9b   : > { %v240_v8 = vpop.f32.mrf.mxu0 }
  0x9c PF: > { %s15_s15 = sadd.s32 1, %s386_s15  }
  0x9d   : > { %p12_p7 = scmp.ge.s32.totalorder %s15_s15, 4  }
  0x9f   :  { %14 = sbr.rel (!%p12_p7) target bundleno = 1 (0x1), region = 71 }
  0xa4   :  { %263 = vsyncpa [#allocation3], 1 }
  0xa5   :  { %265 = vsyncpa [#allocation3 + $0x1], 1 }

// kernel: transformer_forward.15
= control target key start
LH: loop header
LB: loop body
LE: loop exit
PB: predicated region body
PF: predicated region fallthrough
CT: control target
= control target key end

     0   :  { %13 = vsyncpa [#allocation4], 0  ;;  %s1326_s0 = inlined_call_operand.vmem [shape: f32[2,8,32], index: 0, kind: input, shape index: {}]   ;;  %s1327_s1 = inlined_call_operand.hbm [shape: bf16[32,96], index: 1, kind: input, shape index: {}]   ;;  %s1328_s2 = inlined_call_operand.hbm [shape: f32[1,96], index: 2, kind: input, shape index: {}]   ;;  %s1329_s3 = inlined_call_operand.hbm [shape: bf16[32,32], index: 3, kind: input, shape index: {}]   ;;  %s1330_s4 = inlined_call_operand.hbm [shape: f32[1,32], index: 4, kind: input, shape index: {}]   ;;  %s1331_s5 = inlined_call_operand.vmem [shape: f32[2,1,8], index: 5, kind: input, shape index: {}]   ;;  %s1332_s6 = inlined_call_operand.vmem [shape: f32[1,32], index: 6, kind: input, shape index: {}]   ;;  %s1333_s7 = inlined_call_operand.vmem [shape: f32[1,32], index: 7, kind: input, shape index: {}]   ;;  %s1334_s8 = inlined_call_operand.vmem [shape: f32[2,8,32], index: 8, kind: output, shape index: {}]  }
   0x1   :  { %14 = vsyncpa [#allocation6], 0 }
   0x2   :  { %15 = vsyncpa [#allocation9], 0  ;;  %s1196_s27 = smov 0  }
   0x3 LB: > { %s256_s30 = sshll.u32 %s1328_s2, 4  ;;  %s1205_s9 = sadd.s32 4294967295, %s1128_s27   ;;  %s1128_s27 = sphi %s1196_s27, %s21_s27   ;;  %s257_s30 = int_to_ptr.hbm [resolvable:$true] %s256_s30 }
   0x4   : > { %p854_p0 = scmp.ge.s32.totalorder %s1128_s27, 1  ;;  %p230_p1 = scmp.lt.s32.totalorder %s1128_s27, 3 }
   0x5   : > { %p928_p2 = scmp.eq.s32.totalorder %s1205_s9, 0  ;;  %s1130_s11 = smov [#allocation5]  }
   0x6   : > { %p1210_p3 = pnand %p854_p0, %p230_p1  ;;  %s258_s12 = sshll.u32 %s1130_s11, 4  ;;  %s259_s12 = int_to_ptr.vmem [resolvable:$true] %s258_s12 }
   0x7   : > { %s241_s15 = sshll.u32 %s1327_s1, 4  ;;  %s1131_s17 = smov [#allocation3]   ;;  %s242_s15 = int_to_ptr.hbm [resolvable:$true] %s241_s15 }
   0x8   : > { %p915_p4 = pneg %p1210_p3  ;;  %s243_s18 = sshll.u32 %s1131_s17, 4  ;;  %s244_s18 = int_to_ptr.vmem [resolvable:$true] %s243_s18 }
   0x9   : > { %s267_s21 = sshll.u32 %s1329_s3, 4  ;;  %s1132_s22 = smov 64   ;;  %s268_s21 = int_to_ptr.hbm [resolvable:$true] %s267_s21 }
   0xa   : > { %p1221_p5 = pnand %p928_p2, %p915_p4  ;;  %s1133_s23 = smov 4  }
   0xb   : > { %s1134_s24 = smov [#allocation7]   ;;  %s282_s29 = sshll.u32 %s1330_s4, 4  ;;  %s283_s29 = int_to_ptr.hbm [resolvable:$true] %s282_s29 }
   0xc   : > { %921 = dma.hbm_to_vmem [thread:$0]  (!%p1221_p5), %s257_s30, 16, %s259_s12, [#allocation6]  }
   0xd   : > { %918 = dma.hbm_to_vmem [thread:$0]  (!%p1221_p5), %s242_s15, 256, %s244_s18, [#allocation4], %s1132_s22, %s1132_s22, %s1133_s23  }
   0xe   : > { %s269_s25 = sshll.u32 %s1134_s24, 4  ;;  %s1135_s11 = smov [#allocation8]   ;;  %s270_s25 = int_to_ptr.vmem [resolvable:$true] %s269_s25 }
   0xf   : > { %924 = dma.hbm_to_vmem [thread:$0]  (!%p1221_p5), %s268_s21, 256, %s270_s25, [#allocation6], %s1132_s22, %s1132_s22, %s1133_s23  }
  0x10   : > { %s284_s13 = sshll.u32 %s1135_s11, 4  ;;  %316 = sbr.rel (%p1210_p3) target bundleno = 1373 (0x55d), region = 52  ;;  %s285_s13 = int_to_ptr.vmem [resolvable:$true] %s284_s13 }
  0x11   : > { %927 = dma.hbm_to_vmem [thread:$0]  (!%p1221_p5), %s283_s29, 16, %s285_s13, [#allocation9]  }
  0x15   : > { %1115 = dma.done.wait (%p928_p2), [#allocation4], 256  }
  0x16   : > { %1117 = vsyncadd (%p928_p2), [#allocation4], 4294967040 }
  0x17   : > { %1119 = dma.done.wait (%p928_p2), [#allocation6], 272  }
  0x18   : > { %1121 = vsyncadd (%p928_p2), [#allocation6], 4294967024 }
  0x19   : > { %1123 = dma.done.wait (%p928_p2), [#allocation9], 16  }
  0x1a   : > { %1125 = vsyncadd (%p928_p2), [#allocation9], 4294967280  ;;  %p367_p6 = scmp.lt.s32.totalorder %s1205_s9, 1  ;;  %v896_v0 = vld [vmem:[#allocation3 + $0x8] sm:$0xff]  ;;  %v895_v1 = vld [vmem:[#allocation3] sm:$0xff]  ;;  %vm401_vm0 = vcmask 261120  }
  0x1b   : > { %411 = vmatpush.bf16.msra.mxu0 %v896_v0  ;;  %v965_v4 = vld [vmem:[#allocation5] ss:$0 sm:$0xff]  ;;  %s1136_s15 = smov 96   ;;  %s1137_s16 = smov 104   ;;  %vm428_vm1 = vcmask 64512   ;;  %vm465_vm2 = vcmask 1043456  }
  0x1c   : > { %s1338_s9 = smov (!%p367_p6, %s1205_s9), 1  ;;  %s1138_s17 = smov 120   ;;  %vm544_vm3 = vcmask 130112   ;;  %vm606_vm4 = vcmask 195712   ;;  %vm668_vm5 = vcmask 261312  }
  0x1d   : > { %s865_s30 = sshll.u32 %s1338_s9, 3  ;;  %s1139_s18 = smov 88  }
  0x1e   : > { %s370_s14 = scalar_lea.vmem %s1326_s0, %s865_s30  ;;  %s1140_s19 = smov 80  }
  0x1f   : > { %v1263_v2 = vld [vmem:[%s370_s14] sm:$0xff]  ;;  %412 = vmatpush.bf16.msra.mxu0 %v895_v1  ;;  %s1141_s20 = smov 72   ;;  %s1142_s21 = smov 112  }
  0x20   : > { %v380_v3 = vpack.c.bf16 %v1263_v2, %v1263_v2  ;;  %s373_s24 = scalar_lea.vmem %s1331_s5, %s1338_s9  ;;  %s1143_s25 = smov 64  }
  0x21   : > { %v966_v22 = vld [vmem:[%s373_s24] ss:$0 sm:$0xff]  ;;  %s1144_s26 = smov 40   ;;  %s1145_s28 = smov 56  }
  0x22   : > { %875 = vmatmul.msk.bf16.vlgmr.msra.gmra.mxu0 %vm401_vm0, %v380_v3  ;;  %s1146_s29 = smov 48   ;;  %s1147_s11 = smov 8  }
  0x23   : > { %s1148_s13 = smov 16   ;;  %s1149_s10 = smov 24  }
  0x9f   : > { %v414_v5 = vpop.f32.mrf.mxu0 }
  0xa0   : > { %v415_v6 = vadd.f32 %v965_v4, %v414_v5 }
  0xa2   : > { %v419_v7 = vmul.f32 0.35355338, %v415_v6  ;;  %v1268_v8 = vpack.c.bf16 %v415_v6, %v415_v6 }
  0xa4   : > { %v420_v9 = vpack.c.bf16 %v419_v7, %v419_v7  ;;  %426 = vrot.lane.b32.xlu0 %v1268_v8, %s1136_s15 }
  0xa6   : > { %608 = vrot.lane.b32.xlu2 %v420_v9, %s1137_s16  ;;  %484 = vrot.lane.b32.xlu1 %v420_v9, %s1138_s17 }
  0xa7   : > { %v416_v10 = vpop.f32.mrf.mxu0 }
  0xac   : > { %486 = vrot.lane.b32.xlu0 %v1268_v8, %s1139_s18 }
  0xae   : > { %548 = vrot.lane.b32.xlu2 %v1268_v8, %s1140_s19  ;;  %610 = vrot.lane.b32.xlu1 %v1268_v8, %s1141_s20  ;;  %s377_s19 = scalar_lea.vmem %s1334_s8, %s865_s30 }
  0xb4   : > { %546 = vrot.lane.b32.xlu0 %v420_v9, %s1142_s21 }
 0x100   : > { %v609_v11 = vpop.permute.xlu2 %608 }
 0x108   : > { %v549_v12 = vpop.permute.xlu2 %548 }
 0x109   : > { %v554_v13 = vsel %vm428_vm1, %v549_v12, 0 }
 0x10a   : > { %563 = vmatpush.bf16.xpose.msrb.mxu0 %v554_v13 }
 0x116   : > { %v427_v14 = vpop.permute.xlu0 %426 }
 0x117   : > { %v433_v15 = vsel %vm428_vm1, %v427_v14, 0 }
 0x118   : > { %442 = vmatpush.bf16.xpose.msra.mxu1 %v433_v15  ;;  %v485_v16 = vpop.permute.xlu1 %484 }
 0x11e   : > { %v487_v17 = vpop.permute.xlu0 %486 }
 0x11f   : > { %876 = vmatmul.msk.bf16.vlgmr.msra.gmra.mxu1 %vm428_vm1, %v420_v9  ;;  %v492_v18 = vsel %vm428_vm1, %v487_v17, 0 }
 0x120   : > { %501 = vmatpush.bf16.xpose.msra.mxu3 %v492_v18  ;;  %v611_v19 = vpop.permute.xlu1 %610 }
 0x121   : > { %v616_v20 = vsel %vm428_vm1, %v611_v19, 0 }
 0x126   : > { %v547_v21 = vpop.permute.xlu0 %546 }
 0x127   : > { %878 = vmatmul.msk.bf16.vlgmr.msra.gmra.mxu3 %vm428_vm1, %v485_v16  ;;  %880 = vmatmul.msk.bf16.vlgmr.msrb.gmra.mxu0 %vm428_vm1, %v547_v21 }
 0x128   : > { %625 = vmatpush.bf16.xpose.msrb.mxu3 %v616_v20 }
 0x137   : > { %882 = vmatmul.msk.bf16.vlgmr.msrb.gmra.mxu3 %vm428_vm1, %v609_v11 }
 0x19c   : > { %v444_v23 = vpop.f32.mrf.mxu1 }
 0x19d   : > { %v445_v24 = vadd.f32 %v966_v22, %v444_v23 }
 0x19f   : > { %v448_v25 = vsel %vm428_vm1, %v445_v24, -inf }
 0x1a0   : > { %449 = vmax.xlane.f32.xlu1 %v448_v25 }
 0x1a4   : > { %v446_v26 = vpop.f32.mrf.mxu1  ;;  %v565_v27 = vpop.f32.mrf.mxu0 }
 0x1a5   : > { %v566_v32 = vadd.f32 %v966_v22, %v565_v27 }
 0x1a7   : > { %v569_v34 = vsel %vm428_vm1, %v566_v32, -inf }
 0x1aa   : > { %v503_v28 = vpop.f32.mrf.mxu3 }
 0x1ab   : > { %v504_v29 = vadd.f32 %v966_v22, %v503_v28  ;;  %v898_v28 = vld [vmem:[#allocation7 + $0x8] sm:$0xff] }
 0x1ac   : > { %v567_v30 = vpop.f32.mrf.mxu0  ;;  %701 = vmatpush.bf16.msra.mxu0 %v898_v28 }
 0x1ad   : > { %v507_v31 = vsel %vm428_vm1, %v504_v29, -inf }
 0x1ae   : > { %508 = vmax.xlane.f32.xlu2 %v507_v31 }
 0x1b2   : > { %v505_v33 = vpop.f32.mrf.mxu3 }
 0x1b6   : > { %570 = vmax.xlane.f32.xlu2 %v569_v34 }
 0x1ba   : > { %v627_v35 = vpop.f32.mrf.mxu3 }
 0x1bb   : > { %v628_v36 = vadd.f32 %v966_v22, %v627_v35  ;;  %v967_v35 = vld [vmem:[#allocation8] ss:$0 sm:$0xff] }
 0x1bd   : > { %v631_v37 = vsel %vm428_vm1, %v628_v36, -inf }
 0x1be   : > { %632 = vmax.xlane.f32.xlu0 %v631_v37 }
 0x1c2   : > { %v629_v38 = vpop.f32.mrf.mxu3 }
 0x1ce   : > { %460 = vrot.lane.b32.xlu2 %v1268_v8, %s1143_s25 }
 0x1d6   : > { %643 = vrot.lane.b32.xlu2 %v1268_v8, %s1144_s26 }
 0x213   : > { %v450_v39 = vpop.xlane.xlu1 %449 }
 0x214   : > { %v451_v40 = vsub.f32 %v445_v24, %v450_v39 }
 0x216   : > { %v452_v41 = vmul.f32 1.442695, %v451_v40 }
 0x218   : > { %970 = vpow2.f32 %v452_v41  ;;  %v1150_v41 = vmov 32.0  }
 0x21e   : > { %v971_v42 = vpop.eup %970 }
 0x21f   : > { %v454_v43 = vsel %vm428_vm1, %v971_v42, 0.0 }
 0x220   : > { %455 = vadd.xlane.f32.xlu1 %v454_v43 }
 0x221   : > { %v509_v44 = vpop.xlane.xlu2 %508 }
 0x222   : > { %v510_v47 = vsub.f32 %v504_v29, %v509_v44  ;;  %v897_v29 = vld [vmem:[#allocation7] sm:$0xff] }
 0x223   : > { %702 = vmatpush.bf16.msra.mxu0 %v897_v29 }
 0x224   : > { %v511_v49 = vmul.f32 1.442695, %v510_v47 }
 0x229   : > { %v571_v45 = vpop.xlane.xlu2 %570 }
 0x22a   : > { %v572_v46 = vsub.f32 %v566_v32, %v571_v45 }
 0x22c   : > { %v573_v48 = vmul.f32 1.442695, %v572_v46 }
 0x22e   : > { %972 = vpow2.f32 %v573_v48 }
 0x22f   : > { %974 = vpow2.f32 %v511_v49 }
 0x231   : > { %v461_v50 = vpop.permute.xlu2 %460  ;;  %v633_v51 = vpop.xlane.xlu0 %632 }
 0x232   : > { %v467_v52 = vsel %vm465_vm2, %v461_v50, 0  ;;  %v634_v54 = vsub.f32 %v628_v36, %v633_v51 }
 0x233   : > { %476 = vmatpush.bf16.msra.mxu2 %v467_v52 }
 0x234   : > { %v973_v53 = vpop.eup %972  ;;  %v635_v56 = vmul.f32 1.442695, %v634_v54 }
 0x235   : > { %v575_v55 = vsel %vm428_vm1, %v973_v53, 0.0  ;;  %v975_v57 = vpop.eup %974 }
 0x236   : > { %576 = vadd.xlane.f32.xlu0 %v575_v55  ;;  %976 = vpow2.f32 %v635_v56  ;;  %v513_v58 = vsel %vm428_vm1, %v975_v57, 0.0 }
 0x239   : > { %519 = vrot.lane.b32.xlu1 %v1268_v8, %s1145_s28  ;;  %v644_v3 = vpop.permute.xlu2 %643 }
 0x23a   : > { %v649_v6 = vsel %vm465_vm2, %v644_v3, 0 }
 0x23c   : > { %v977_v59 = vpop.eup %976 }
 0x23d   : > { %v637_v60 = vsel %vm428_vm1, %v977_v59, 0.0 }
 0x23e   : > { %514 = vadd.xlane.f32.xlu0 %v513_v58 }
 0x246   : > { %638 = vadd.xlane.f32.xlu0 %v637_v60 }
 0x25a   : > { %581 = vrot.lane.b32.xlu0 %v1268_v8, %s1146_s29 }
 0x293   : > { %v456_v61 = vpop.xlane.xlu1 %455 }
 0x294   : > { %978 = vrcp.f32 %v456_v61  ;;  %v968_v61 = vld [vmem:[%s1332_s6] ss:$0 sm:$0xff] }
 0x29a   : > { %v979_v62 = vpop.eup %978 }
 0x29b   : > { %v458_v63 = vmul.f32 %v979_v62, %v971_v42 }
 0x29d   : > { %v459_v0 = vpack.c.bf16 %v458_v63, %v458_v63  ;;  %v969_v63 = vld [vmem:[%s1333_s7] ss:$0 sm:$0xff] }
 0x29f   : > { %877 = vmatmul.msk.bf16.vlgmr.msra.gmra.mxu2 %vm428_vm1, %v459_v0 }
 0x2a9   : > { %v577_v1 = vpop.xlane.xlu0 %576 }
 0x2ab   : > { %v520_v4 = vpop.permute.xlu1 %519 }
 0x2ac   : > { %v525_v5 = vsel %vm465_vm2, %v520_v4, 0 }
 0x2ad   : > { %534 = vmatpush.bf16.msrb.mxu2 %v525_v5 }
 0x2b1   : > { %658 = vmatpush.bf16.msra.mxu2 %v649_v6  ;;  %v515_v7 = vpop.xlane.xlu0 %514 }
 0x2b2   : > { %980 = vrcp.f32 %v515_v7 }
 0x2b8   : > { %v981_v9 = vpop.eup %980 }
 0x2b9   : > { %v517_v8 = vmul.f32 %v981_v9, %v975_v57  ;;  %v639_v10 = vpop.xlane.xlu0 %638 }
 0x2ba   : > { %982 = vrcp.f32 %v639_v10 }
 0x2bb   : > { %v518_v11 = vpack.c.bf16 %v517_v8, %v517_v8  ;;  %984 = vrcp.f32 %v577_v1 }
 0x2bc   : > { %986 = vrcp.f32 %v1150_v41 }
 0x2bd   : > { %879 = vmatmul.msk.bf16.vlgmr.msrb.gmra.mxu2 %vm428_vm1, %v518_v11 }
 0x2c0   : > { %v983_v12 = vpop.eup %982 }
 0x2c1   : > { %v641_v13 = vmul.f32 %v983_v12, %v977_v59  ;;  %v985_v14 = vpop.eup %984 }
 0x2c2   : > { %v579_v15 = vmul.f32 %v985_v14, %v973_v53  ;;  %v987_v42 = vpop.eup %986 }
 0x2c3   : > { %v642_v16 = vpack.c.bf16 %v641_v13, %v641_v13  ;;  %v715_v43 = vmul.f32 32.0, %v987_v42  ;;  %vm719_vm6 = vweird.f32 %v987_v42 }
 0x2c4   : > { %v580_v19 = vpack.c.bf16 %v579_v15, %v579_v15 }
 0x2c5   : > { %v716_v44 = vsub.f32 1.0, %v715_v43 }
 0x2c7   : > { %v717_v45 = vmul.f32 %v987_v42, %v716_v44 }
 0x2c9   : > { %v718_v46 = vadd.f32 %v987_v42, %v717_v45 }
 0x2cb   : > { %v720_v47 = vsel %vm719_vm6, %v987_v42, %v718_v46 }
 0x2cc   : > { %v582_v17 = vpop.permute.xlu0 %581 }
 0x2cd   : > { %883 = vmatmul.msk.bf16.vlgmr.msra.gmra.mxu2 %vm428_vm1, %v642_v16  ;;  %v587_v18 = vsel %vm465_vm2, %v582_v17, 0 }
 0x2ce   : > { %596 = vmatpush.bf16.msrb.mxu1 %v587_v18 }
 0x2d1   : > { %881 = vmatmul.msk.bf16.vlgmr.msrb.gmra.mxu1 %vm428_vm1, %v580_v19 }
 0x322   : > { %v478_v20 = vpop.f32.mrf.mxu2 }
 0x323   : > { %482 = vst.msk [vmem:[#allocation2] sm:$0xff] %vm428_vm1, %v478_v20 }
 0x32a   : > { %v480_v21 = vpop.f32.mrf.mxu2 }
 0x340   : > { %v536_v22 = vpop.f32.mrf.mxu2 }
 0x341   : > { %541 = vrot.lane.b32.xlu1 %v536_v22, %s1147_s11 }
 0x348   : > { %v538_v23 = vpop.f32.mrf.mxu2 }
 0x34e   : > { %v598_v24 = vpop.f32.mrf.mxu1 }
 0x34f   : > { %603 = vrot.lane.b32.xlu2 %v598_v24, %s1148_s13 }
 0x350   : > { %v660_v25 = vpop.f32.mrf.mxu2 }
 0x351   : > { %665 = vrot.lane.b32.xlu1 %v660_v25, %s1149_s10 }
 0x356   : > { %v600_v26 = vpop.f32.mrf.mxu1 }
 0x358   : > { %v662_v27 = vpop.f32.mrf.mxu2 }
 0x3a9   : > { %v604_v31 = vpop.permute.xlu2 %603 }
 0x3b3   : > { %v542_v30 = vpop.permute.xlu1 %541 }
 0x3b4   : > { %545 = vst.msk [vmem:[#allocation2] sm:$0xff] %vm544_vm3, %v542_v30 }
 0x3b5   : > { %607 = vst.msk [vmem:[#allocation2] sm:$0xff] %vm606_vm4, %v604_v31 }
 0x3c3   : > { %v666_v32 = vpop.permute.xlu1 %665 }
 0x3c4   : > { %669 = vst.msk [vmem:[#allocation2] sm:$0xff] %vm668_vm5, %v666_v32 }
 0x3cb   : > { %v670_v33 = vld [vmem:[#allocation2] sm:$0xff] }
 0x3cc   : > { %v671_v34 = vpack.c.bf16 %v670_v33, %v670_v33 }
 0x3ce   : > { %892 = vmatmul.msk.bf16.vlgmr.msra.gmra.mxu0 %vm401_vm0, %v671_v34 }
 0x44b   : > { %v704_v36 = vpop.f32.mrf.mxu0 }
 0x44c   : > { %v705_v37 = vadd.f32 %v967_v35, %v704_v36 }
 0x44e   : > { %v708_v38 = vadd.f32 %v705_v37, %v1263_v2 }
 0x450   : > { %v711_v39 = vsel %vm401_vm0, %v708_v38, 0.0 }
 0x451   : > { %712 = vadd.xlane.f32.xlu2 %v711_v39 }
 0x453   : > { %v706_v40 = vpop.f32.mrf.mxu0 }
 0x4c4   : > { %v713_v48 = vpop.xlane.xlu2 %712 }
 0x4c5   : > { %v721_v49 = vmul.f32 %v720_v47, %v713_v48 }
 0x4c7   : > { %v722_v50 = vsub.f32 %v708_v38, %v721_v49 }
 0x4c9   : > { %v723_v51 = vmul.f32 %v722_v50, %v722_v50 }
 0x4cb   : > { %v724_v52 = vsel %vm401_vm0, %v723_v51, 0.0 }
 0x4cc   : > { %725 = vadd.xlane.f32.xlu1 %v724_v52 }
 0x53f   : > { %v726_v2 = vpop.xlane.xlu1 %725 }
 0x540   : > { %v727_v53 = vmul.f32 %v726_v2, %v720_v47 }
 0x542   : > { %v728_v54 = vadd.f32 1e-05, %v727_v53 }
 0x544   : > { %988 = vrsqrt.f32 %v728_v54  ;;  %vm735_vm8 = vweird.f32 %v728_v54 }
 0x54a   : > { %v989_v55 = vpop.eup %988 }
 0x54b   : > { %v730_v56 = vmul.f32 %v989_v55, %v728_v54  ;;  %vm736_vm7 = vweird.f32 %v989_v55 }
 0x54c   : > { %vm737_vm9 = vmor %vm735_vm8, %vm736_vm7 }
 0x54d   : > { %v731_v57 = vmul.f32 %v989_v55, %v730_v56 }
 0x54f   : > { %v732_v58 = vmul.f32 0.5, %v731_v57 }
 0x551   : > { %v733_v59 = vsub.f32 1.5, %v732_v58 }
 0x553   : > { %v734_v60 = vmul.f32 %v989_v55, %v733_v59 }
 0x555   : > { %v738_v62 = vsel %vm737_vm9, %v989_v55, %v734_v60 }
 0x556   : > { %v739_v0 = vmul.f32 %v738_v62, %v722_v50 }
 0x558   : > { %v743_v1 = vmul.f32 %v968_v61, %v739_v0 }
 0x55a   : > { %v747_v3 = vadd.f32 %v969_v63, %v743_v1 }
 0x55c   : > { %748 = vst.msk [vmem:[%s377_s19] sm:$0xff] %vm401_vm0, %v747_v3 }
 0x55d PF: > { %s21_s27 = sadd.s32 1, %s1128_s27  }
 0x55e   : > { %p18_p7 = scmp.ge.s32.totalorder %s21_s27, 4  }
 0x560   :  { %20 = sbr.rel (!%p18_p7) target bundleno = 3 (0x3), region = 102 }
 0x565   :  { %768 = vsyncpa [#allocation4], 1 }
 0x566   :  { %770 = vsyncpa [#allocation4 + $0x1], 1 }
 0x567   :  { %771 = vsyncpa [#allocation6], 1 }
 0x568   :  { %772 = vsyncpa [#allocation9], 1 }

// kernel: transformer_forward.19
= control target key start
LH: loop header
LB: loop body
LE: loop exit
PB: predicated region body
PF: predicated region fallthrough
CT: control target
= control target key end

     0   :  { %13 = vsyncpa [#allocation4], 0  ;;  %s1298_s0 = inlined_call_operand.vmem [shape: f32[2,8,32], index: 0, kind: input, shape index: {}]   ;;  %s1299_s1 = inlined_call_operand.hbm [shape: bf16[32,96], index: 1, kind: input, shape index: {}]   ;;  %s1300_s2 = inlined_call_operand.hbm [shape: f32[1,96], index: 2, kind: input, shape index: {}]   ;;  %s1301_s3 = inlined_call_operand.hbm [shape: bf16[32,32], index: 3, kind: input, shape index: {}]   ;;  %s1302_s4 = inlined_call_operand.hbm [shape: f32[1,32], index: 4, kind: input, shape index: {}]   ;;  %s1303_s5 = inlined_call_operand.vmem [shape: f32[1,8,8], index: 5, kind: input, shape index: {}]   ;;  %s1304_s6 = inlined_call_operand.vmem [shape: f32[1,32], index: 6, kind: input, shape index: {}]   ;;  %s1305_s7 = inlined_call_operand.vmem [shape: f32[1,32], index: 7, kind: input, shape index: {}]   ;;  %s1306_s8 = inlined_call_operand.vmem [shape: f32[2,8,32], index: 8, kind: output, shape index: {}]  }
   0x1   :  { %14 = vsyncpa [#allocation6], 0 }
   0x2   :  { %15 = vsyncpa [#allocation9], 0  ;;  %s1169_s27 = smov 0  }
   0x3 LB: > { %s251_s30 = sshll.u32 %s1300_s2, 4  ;;  %s1178_s9 = sadd.s32 4294967295, %s1101_s27   ;;  %s1101_s27 = sphi %s1169_s27, %s21_s27   ;;  %s252_s30 = int_to_ptr.hbm [resolvable:$true] %s251_s30 }
   0x4   : > { %p828_p0 = scmp.ge.s32.totalorder %s1101_s27, 1  ;;  %p225_p1 = scmp.lt.s32.totalorder %s1101_s27, 3 }
   0x5   : > { %p902_p2 = scmp.eq.s32.totalorder %s1178_s9, 0  ;;  %s1103_s11 = smov [#allocation5]  }
   0x6   : > { %p1183_p3 = pnand %p828_p0, %p225_p1  ;;  %s253_s12 = sshll.u32 %s1103_s11, 4  ;;  %s254_s12 = int_to_ptr.vmem [resolvable:$true] %s253_s12 }
   0x7   : > { %s236_s15 = sshll.u32 %s1299_s1, 4  ;;  %s1104_s17 = smov [#allocation3]   ;;  %s237_s15 = int_to_ptr.hbm [resolvable:$true] %s236_s15 }
   0x8   : > { %p889_p4 = pneg %p1183_p3  ;;  %s238_s18 = sshll.u32 %s1104_s17, 4  ;;  %s239_s18 = int_to_ptr.vmem [resolvable:$true] %s238_s18 }
   0x9   : > { %s262_s21 = sshll.u32 %s1301_s3, 4  ;;  %s1105_s22 = smov 64   ;;  %s263_s21 = int_to_ptr.hbm [resolvable:$true] %s262_s21 }
   0xa   : > { %p1194_p5 = pnand %p902_p2, %p889_p4  ;;  %s1106_s23 = smov 4  }
   0xb   : > { %s1107_s24 = smov [#allocation7]   ;;  %s277_s29 = sshll.u32 %s1302_s4, 4  ;;  %s278_s29 = int_to_ptr.hbm [resolvable:$true] %s277_s29 }
   0xc   : > { %895 = dma.hbm_to_vmem [thread:$0]  (!%p1194_p5), %s252_s30, 16, %s254_s12, [#allocation6]  }
   0xd   : > { %892 = dma.hbm_to_vmem [thread:$0]  (!%p1194_p5), %s237_s15, 256, %s239_s18, [#allocation4], %s1105_s22, %s1105_s22, %s1106_s23  }
   0xe   : > { %s264_s25 = sshll.u32 %s1107_s24, 4  ;;  %s1108_s11 = smov [#allocation8]   ;;  %s265_s25 = int_to_ptr.vmem [resolvable:$true] %s264_s25 }
   0xf   : > { %898 = dma.hbm_to_vmem [thread:$0]  (!%p1194_p5), %s263_s21, 256, %s265_s25, [#allocation6], %s1105_s22, %s1105_s22, %s1106_s23  }
  0x10   : > { %s279_s13 = sshll.u32 %s1108_s11, 4  ;;  %308 = sbr.rel (%p1183_p3) target bundleno = 1373 (0x55d), region = 52  ;;  %s280_s13 = int_to_ptr.vmem [resolvable:$true] %s279_s13 }
  0x11   : > { %901 = dma.hbm_to_vmem [thread:$0]  (!%p1194_p5), %s278_s29, 16, %s280_s13, [#allocation9]  }
  0x15   : > { %1088 = dma.done.wait (%p902_p2), [#allocation4], 256  }
  0x16   : > { %1090 = vsyncadd (%p902_p2), [#allocation4], 4294967040 }
  0x17   : > { %1092 = dma.done.wait (%p902_p2), [#allocation6], 272  }
  0x18   : > { %1094 = vsyncadd (%p902_p2), [#allocation6], 4294967024 }
  0x19   : > { %1096 = dma.done.wait (%p902_p2), [#allocation9], 16  }
  0x1a   : > { %1098 = vsyncadd (%p902_p2), [#allocation9], 4294967280  ;;  %p356_p6 = scmp.lt.s32.totalorder %s1178_s9, 1  ;;  %v870_v0 = vld [vmem:[#allocation3 + $0x8] sm:$0xff]  ;;  %v869_v1 = vld [vmem:[#allocation3] sm:$0xff]  ;;  %vm387_vm0 = vcmask 261120  }
  0x1b   : > { %397 = vmatpush.bf16.msra.mxu0 %v870_v0  ;;  %v939_v4 = vld [vmem:[#allocation5] ss:$0 sm:$0xff]  ;;  %s1109_s15 = smov 96   ;;  %s1110_s16 = smov 104   ;;  %vm411_vm1 = vcmask 64512   ;;  %v404_v22 = vld [vmem:[%s1303_s5] sm:$0xff] }
  0x1c   : > { %s1310_s9 = smov (!%p356_p6, %s1178_s9), 1  ;;  %s1111_s17 = smov 120   ;;  %vm448_vm2 = vcmask 1043456   ;;  %vm527_vm3 = vcmask 130112   ;;  %vm589_vm4 = vcmask 195712   ;;  %vm651_vm5 = vcmask 261312  }
  0x1d   : > { %s839_s30 = sshll.u32 %s1310_s9, 3  ;;  %s1112_s18 = smov 88  }
  0x1e   : > { %s359_s14 = scalar_lea.vmem %s1298_s0, %s839_s30  ;;  %s1113_s19 = smov 80  }
  0x1f   : > { %v1236_v2 = vld [vmem:[%s359_s14] sm:$0xff]  ;;  %398 = vmatpush.bf16.msra.mxu0 %v869_v1  ;;  %s1114_s20 = smov 72   ;;  %s1115_s21 = smov 112  }
  0x20   : > { %v366_v3 = vpack.c.bf16 %v1236_v2, %v1236_v2  ;;  %s1116_s24 = smov 64   ;;  %s1117_s25 = smov 40  }
  0x21   : > { %s1118_s26 = smov 56   ;;  %s1119_s28 = smov 48  }
  0x22   : > { %849 = vmatmul.msk.bf16.vlgmr.msra.gmra.mxu0 %vm387_vm0, %v366_v3  ;;  %s1120_s29 = smov 8   ;;  %s1121_s11 = smov 16  }
  0x23   : > { %s1122_s13 = smov 24  }
  0x9f   : > { %v400_v5 = vpop.f32.mrf.mxu0 }
  0xa0   : > { %v401_v6 = vadd.f32 %v939_v4, %v400_v5 }
  0xa2   : > { %v405_v7 = vmul.f32 0.35355338, %v401_v6  ;;  %v1241_v8 = vpack.c.bf16 %v401_v6, %v401_v6 }
  0xa4   : > { %v406_v9 = vpack.c.bf16 %v405_v7, %v405_v7  ;;  %409 = vrot.lane.b32.xlu0 %v1241_v8, %s1109_s15 }
  0xa6   : > { %591 = vrot.lane.b32.xlu2 %v406_v9, %s1110_s16  ;;  %467 = vrot.lane.b32.xlu1 %v406_v9, %s1111_s17 }
  0xa7   : > { %v402_v10 = vpop.f32.mrf.mxu0 }
  0xac   : > { %469 = vrot.lane.b32.xlu0 %v1241_v8, %s1112_s18  ;;  %s363_s18 = scalar_lea.vmem %s1306_s8, %s839_s30 }
  0xae   : > { %531 = vrot.lane.b32.xlu2 %v1241_v8, %s1113_s19  ;;  %593 = vrot.lane.b32.xlu1 %v1241_v8, %s1114_s20 }
  0xb4   : > { %529 = vrot.lane.b32.xlu0 %v406_v9, %s1115_s21 }
 0x100   : > { %v592_v11 = vpop.permute.xlu2 %591 }
 0x108   : > { %v532_v12 = vpop.permute.xlu2 %531 }
 0x109   : > { %v537_v13 = vsel %vm411_vm1, %v532_v12, 0 }
 0x10a   : > { %546 = vmatpush.bf16.xpose.msrb.mxu0 %v537_v13 }
 0x116   : > { %v410_v14 = vpop.permute.xlu0 %409 }
 0x117   : > { %v416_v15 = vsel %vm411_vm1, %v410_v14, 0 }
 0x118   : > { %425 = vmatpush.bf16.xpose.msra.mxu1 %v416_v15  ;;  %v468_v16 = vpop.permute.xlu1 %467 }
 0x11e   : > { %v470_v17 = vpop.permute.xlu0 %469 }
 0x11f   : > { %850 = vmatmul.msk.bf16.vlgmr.msra.gmra.mxu1 %vm411_vm1, %v406_v9  ;;  %v475_v18 = vsel %vm411_vm1, %v470_v17, 0 }
 0x120   : > { %484 = vmatpush.bf16.xpose.msra.mxu3 %v475_v18  ;;  %v594_v19 = vpop.permute.xlu1 %593 }
 0x121   : > { %v599_v20 = vsel %vm411_vm1, %v594_v19, 0 }
 0x126   : > { %v530_v21 = vpop.permute.xlu0 %529 }
 0x127   : > { %852 = vmatmul.msk.bf16.vlgmr.msra.gmra.mxu3 %vm411_vm1, %v468_v16  ;;  %854 = vmatmul.msk.bf16.vlgmr.msrb.gmra.mxu0 %vm411_vm1, %v530_v21 }
 0x128   : > { %608 = vmatpush.bf16.xpose.msrb.mxu3 %v599_v20 }
 0x137   : > { %856 = vmatmul.msk.bf16.vlgmr.msrb.gmra.mxu3 %vm411_vm1, %v592_v11 }
 0x19c   : > { %v427_v23 = vpop.f32.mrf.mxu1 }
 0x19d   : > { %v428_v24 = vadd.f32 %v427_v23, %v404_v22 }
 0x19f   : > { %v431_v25 = vsel %vm411_vm1, %v428_v24, -inf }
 0x1a0   : > { %432 = vmax.xlane.f32.xlu1 %v431_v25 }
 0x1a4   : > { %v429_v26 = vpop.f32.mrf.mxu1  ;;  %v548_v27 = vpop.f32.mrf.mxu0 }
 0x1a5   : > { %v549_v32 = vadd.f32 %v548_v27, %v404_v22 }
 0x1a7   : > { %v552_v34 = vsel %vm411_vm1, %v549_v32, -inf }
 0x1aa   : > { %v486_v28 = vpop.f32.mrf.mxu3 }
 0x1ab   : > { %v487_v29 = vadd.f32 %v486_v28, %v404_v22  ;;  %v872_v28 = vld [vmem:[#allocation7 + $0x8] sm:$0xff] }
 0x1ac   : > { %v550_v30 = vpop.f32.mrf.mxu0  ;;  %684 = vmatpush.bf16.msra.mxu0 %v872_v28 }
 0x1ad   : > { %v490_v31 = vsel %vm411_vm1, %v487_v29, -inf }
 0x1ae   : > { %491 = vmax.xlane.f32.xlu2 %v490_v31 }
 0x1b2   : > { %v488_v33 = vpop.f32.mrf.mxu3 }
 0x1b6   : > { %553 = vmax.xlane.f32.xlu2 %v552_v34 }
 0x1ba   : > { %v610_v35 = vpop.f32.mrf.mxu3 }
 0x1bb   : > { %v611_v36 = vadd.f32 %v610_v35, %v404_v22  ;;  %v940_v35 = vld [vmem:[#allocation8] ss:$0 sm:$0xff] }
 0x1bd   : > { %v614_v37 = vsel %vm411_vm1, %v611_v36, -inf }
 0x1be   : > { %615 = vmax.xlane.f32.xlu0 %v614_v37 }
 0x1c2   : > { %v612_v38 = vpop.f32.mrf.mxu3 }
 0x1ce   : > { %443 = vrot.lane.b32.xlu2 %v1241_v8, %s1116_s24 }
 0x1d6   : > { %626 = vrot.lane.b32.xlu2 %v1241_v8, %s1117_s25 }
 0x213   : > { %v433_v39 = vpop.xlane.xlu1 %432 }
 0x214   : > { %v434_v40 = vsub.f32 %v428_v24, %v433_v39 }
 0x216   : > { %v435_v41 = vmul.f32 1.442695, %v434_v40 }
 0x218   : > { %943 = vpow2.f32 %v435_v41  ;;  %v1123_v41 = vmov 32.0  }
 0x21e   : > { %v944_v42 = vpop.eup %943 }
 0x21f   : > { %v437_v43 = vsel %vm411_vm1, %v944_v42, 0.0 }
 0x220   : > { %438 = vadd.xlane.f32.xlu1 %v437_v43 }
 0x221   : > { %v492_v44 = vpop.xlane.xlu2 %491 }
 0x222   : > { %v493_v47 = vsub.f32 %v487_v29, %v492_v44  ;;  %v871_v29 = vld [vmem:[#allocation7] sm:$0xff] }
 0x223   : > { %685 = vmatpush.bf16.msra.mxu0 %v871_v29 }
 0x224   : > { %v494_v49 = vmul.f32 1.442695, %v493_v47 }
 0x229   : > { %v554_v45 = vpop.xlane.xlu2 %553 }
 0x22a   : > { %v555_v46 = vsub.f32 %v549_v32, %v554_v45 }
 0x22c   : > { %v556_v48 = vmul.f32 1.442695, %v555_v46 }
 0x22e   : > { %945 = vpow2.f32 %v556_v48 }
 0x22f   : > { %947 = vpow2.f32 %v494_v49 }
 0x231   : > { %v444_v50 = vpop.permute.xlu2 %443  ;;  %v616_v51 = vpop.xlane.xlu0 %615 }
 0x232   : > { %v450_v52 = vsel %vm448_vm2, %v444_v50, 0  ;;  %v617_v54 = vsub.f32 %v611_v36, %v616_v51 }
 0x233   : > { %459 = vmatpush.bf16.msra.mxu2 %v450_v52 }
 0x234   : > { %v946_v53 = vpop.eup %945  ;;  %v618_v56 = vmul.f32 1.442695, %v617_v54 }
 0x235   : > { %v558_v55 = vsel %vm411_vm1, %v946_v53, 0.0  ;;  %v948_v57 = vpop.eup %947 }
 0x236   : > { %559 = vadd.xlane.f32.xlu0 %v558_v55  ;;  %949 = vpow2.f32 %v618_v56  ;;  %v496_v58 = vsel %vm411_vm1, %v948_v57, 0.0 }
 0x239   : > { %502 = vrot.lane.b32.xlu1 %v1241_v8, %s1118_s26  ;;  %v627_v3 = vpop.permute.xlu2 %626 }
 0x23a   : > { %v632_v6 = vsel %vm448_vm2, %v627_v3, 0 }
 0x23c   : > { %v950_v59 = vpop.eup %949 }
 0x23d   : > { %v620_v60 = vsel %vm411_vm1, %v950_v59, 0.0 }
 0x23e   : > { %497 = vadd.xlane.f32.xlu0 %v496_v58 }
 0x246   : > { %621 = vadd.xlane.f32.xlu0 %v620_v60 }
 0x25a   : > { %564 = vrot.lane.b32.xlu0 %v1241_v8, %s1119_s28 }
 0x293   : > { %v439_v61 = vpop.xlane.xlu1 %438 }
 0x294   : > { %951 = vrcp.f32 %v439_v61  ;;  %v941_v61 = vld [vmem:[%s1304_s6] ss:$0 sm:$0xff] }
 0x29a   : > { %v952_v62 = vpop.eup %951 }
 0x29b   : > { %v441_v63 = vmul.f32 %v952_v62, %v944_v42 }
 0x29d   : > { %v442_v0 = vpack.c.bf16 %v441_v63, %v441_v63  ;;  %v942_v63 = vld [vmem:[%s1305_s7] ss:$0 sm:$0xff] }
 0x29f   : > { %851 = vmatmul.msk.bf16.vlgmr.msra.gmra.mxu2 %vm411_vm1, %v442_v0 }
 0x2a9   : > { %v560_v1 = vpop.xlane.xlu0 %559 }
 0x2ab   : > { %v503_v4 = vpop.permute.xlu1 %502 }
 0x2ac   : > { %v508_v5 = vsel %vm448_vm2, %v503_v4, 0 }
 0x2ad   : > { %517 = vmatpush.bf16.msrb.mxu2 %v508_v5 }
 0x2b1   : > { %641 = vmatpush.bf16.msra.mxu2 %v632_v6  ;;  %v498_v7 = vpop.xlane.xlu0 %497 }
 0x2b2   : > { %953 = vrcp.f32 %v498_v7 }
 0x2b8   : > { %v954_v9 = vpop.eup %953 }
 0x2b9   : > { %v500_v8 = vmul.f32 %v954_v9, %v948_v57  ;;  %v622_v10 = vpop.xlane.xlu0 %621 }
 0x2ba   : > { %955 = vrcp.f32 %v622_v10 }
 0x2bb   : > { %v501_v11 = vpack.c.bf16 %v500_v8, %v500_v8  ;;  %957 = vrcp.f32 %v560_v1 }
 0x2bc   : > { %959 = vrcp.f32 %v1123_v41 }
 0x2bd   : > { %853 = vmatmul.msk.bf16.vlgmr.msrb.gmra.mxu2 %vm411_vm1, %v501_v11 }
 0x2c0   : > { %v956_v12 = vpop.eup %955 }
 0x2c1   : > { %v624_v13 = vmul.f32 %v956_v12, %v950_v59  ;;  %v958_v14 = vpop.eup %957 }
 0x2c2   : > { %v562_v15 = vmul.f32 %v958_v14, %v946_v53  ;;  %v960_v42 = vpop.eup %959 }
 0x2c3   : > { %v625_v16 = vpack.c.bf16 %v624_v13, %v624_v13  ;;  %v698_v43 = vmul.f32 32.0, %v960_v42  ;;  %vm702_vm6 = vweird.f32 %v960_v42 }
 0x2c4   : > { %v563_v19 = vpack.c.bf16 %v562_v15, %v562_v15 }
 0x2c5   : > { %v699_v44 = vsub.f32 1.0, %v698_v43 }
 0x2c7   : > { %v700_v45 = vmul.f32 %v960_v42, %v699_v44 }
 0x2c9   : > { %v701_v46 = vadd.f32 %v960_v42, %v700_v45 }
 0x2cb   : > { %v703_v47 = vsel %vm702_vm6, %v960_v42, %v701_v46 }
 0x2cc   : > { %v565_v17 = vpop.permute.xlu0 %564 }
 0x2cd   : > { %857 = vmatmul.msk.bf16.vlgmr.msra.gmra.mxu2 %vm411_vm1, %v625_v16  ;;  %v570_v18 = vsel %vm448_vm2, %v565_v17, 0 }
 0x2ce   : > { %579 = vmatpush.bf16.msrb.mxu1 %v570_v18 }
 0x2d1   : > { %855 = vmatmul.msk.bf16.vlgmr.msrb.gmra.mxu1 %vm411_vm1, %v563_v19 }
 0x322   : > { %v461_v20 = vpop.f32.mrf.mxu2 }
 0x323   : > { %465 = vst.msk [vmem:[#allocation2] sm:$0xff] %vm411_vm1, %v461_v20 }
 0x32a   : > { %v463_v21 = vpop.f32.mrf.mxu2 }
 0x340   : > { %v519_v22 = vpop.f32.mrf.mxu2 }
 0x341   : > { %524 = vrot.lane.b32.xlu1 %v519_v22, %s1120_s29 }
 0x348   : > { %v521_v23 = vpop.f32.mrf.mxu2 }
 0x34e   : > { %v581_v24 = vpop.f32.mrf.mxu1 }
 0x34f   : > { %586 = vrot.lane.b32.xlu2 %v581_v24, %s1121_s11 }
 0x350   : > { %v643_v25 = vpop.f32.mrf.mxu2 }
 0x351   : > { %648 = vrot.lane.b32.xlu1 %v643_v25, %s1122_s13 }
 0x356   : > { %v583_v26 = vpop.f32.mrf.mxu1 }
 0x358   : > { %v645_v27 = vpop.f32.mrf.mxu2 }
 0x3a9   : > { %v587_v31 = vpop.permute.xlu2 %586 }
 0x3b3   : > { %v525_v30 = vpop.permute.xlu1 %524 }
 0x3b4   : > { %528 = vst.msk [vmem:[#allocation2] sm:$0xff] %vm527_vm3, %v525_v30 }
 0x3b5   : > { %590 = vst.msk [vmem:[#allocation2] sm:$0xff] %vm589_vm4, %v587_v31 }
 0x3c3   : > { %v649_v32 = vpop.permute.xlu1 %648 }
 0x3c4   : > { %652 = vst.msk [vmem:[#allocation2] sm:$0xff] %vm651_vm5, %v649_v32 }
 0x3cb   : > { %v653_v33 = vld [vmem:[#allocation2] sm:$0xff] }
 0x3cc   : > { %v654_v34 = vpack.c.bf16 %v653_v33, %v653_v33 }
 0x3ce   : > { %866 = vmatmul.msk.bf16.vlgmr.msra.gmra.mxu0 %vm387_vm0, %v654_v34 }
 0x44b   : > { %v687_v36 = vpop.f32.mrf.mxu0 }
 0x44c   : > { %v688_v37 = vadd.f32 %v940_v35, %v687_v36 }
 0x44e   : > { %v691_v38 = vadd.f32 %v688_v37, %v1236_v2 }
 0x450   : > { %v694_v39 = vsel %vm387_vm0, %v691_v38, 0.0 }
 0x451   : > { %695 = vadd.xlane.f32.xlu2 %v694_v39 }
 0x453   : > { %v689_v40 = vpop.f32.mrf.mxu0 }
 0x4c4   : > { %v696_v48 = vpop.xlane.xlu2 %695 }
 0x4c5   : > { %v704_v49 = vmul.f32 %v703_v47, %v696_v48 }
 0x4c7   : > { %v705_v50 = vsub.f32 %v691_v38, %v704_v49 }
 0x4c9   : > { %v706_v51 = vmul.f32 %v705_v50, %v705_v50 }
 0x4cb   : > { %v707_v52 = vsel %vm387_vm0, %v706_v51, 0.0 }
 0x4cc   : > { %708 = vadd.xlane.f32.xlu1 %v707_v52 }
 0x53f   : > { %v709_v2 = vpop.xlane.xlu1 %708 }
 0x540   : > { %v710_v53 = vmul.f32 %v709_v2, %v703_v47 }
 0x542   : > { %v711_v54 = vadd.f32 1e-05, %v710_v53 }
 0x544   : > { %961 = vrsqrt.f32 %v711_v54  ;;  %vm718_vm8 = vweird.f32 %v711_v54 }
 0x54a   : > { %v962_v55 = vpop.eup %961 }
 0x54b   : > { %v713_v56 = vmul.f32 %v962_v55, %v711_v54  ;;  %vm719_vm7 = vweird.f32 %v962_v55 }
 0x54c   : > { %vm720_vm9 = vmor %vm718_vm8, %vm719_vm7 }
 0x54d   : > { %v714_v57 = vmul.f32 %v962_v55, %v713_v56 }
 0x54f   : > { %v715_v58 = vmul.f32 0.5, %v714_v57 }
 0x551   : > { %v716_v59 = vsub.f32 1.5, %v715_v58 }
 0x553   : > { %v717_v60 = vmul.f32 %v962_v55, %v716_v59 }
 0x555   : > { %v721_v62 = vsel %vm720_vm9, %v962_v55, %v717_v60 }
 0x556   : > { %v722_v0 = vmul.f32 %v721_v62, %v705_v50 }
 0x558   : > { %v726_v1 = vmul.f32 %v941_v61, %v722_v0 }
 0x55a   : > { %v730_v3 = vadd.f32 %v942_v63, %v726_v1 }
 0x55c   : > { %731 = vst.msk [vmem:[%s363_s18] sm:$0xff] %vm387_vm0, %v730_v3 }
 0x55d PF: > { %s21_s27 = sadd.s32 1, %s1101_s27  }
 0x55e   : > { %p18_p7 = scmp.ge.s32.totalorder %s21_s27, 4  }
 0x560   :  { %20 = sbr.rel (!%p18_p7) target bundleno = 3 (0x3), region = 99 }
 0x565   :  { %751 = vsyncpa [#allocation4], 1 }
 0x566   :  { %753 = vsyncpa [#allocation4 + $0x1], 1 }
 0x567   :  { %754 = vsyncpa [#allocation6], 1 }
 0x568   :  { %755 = vsyncpa [#allocation9], 1 }

// kernel: transformer_forward.21
= control target key start
LH: loop header
LB: loop body
LE: loop exit
PB: predicated region body
PF: predicated region fallthrough
CT: control target
= control target key end

     0   :  { %12 = vsyncpa [#allocation3], 0  ;;  %s645_s24 = smov 0   ;;  %s703_s0 = inlined_call_operand.vmem [shape: f32[16,32], index: 0, kind: input, shape index: {}]   ;;  %s704_s1 = inlined_call_operand.vmem [shape: bf16[32,64], index: 1, kind: input, shape index: {}]   ;;  %s705_s2 = inlined_call_operand.hbm [shape: f32[1,64], index: 2, kind: input, shape index: {}]   ;;  %s706_s3 = inlined_call_operand.vmem [shape: bf16[64,32], index: 3, kind: input, shape index: {}]   ;;  %s707_s4 = inlined_call_operand.vmem [shape: f32[1,32], index: 4, kind: input, shape index: {}]   ;;  %s708_s5 = inlined_call_operand.vmem [shape: f32[1,32], index: 5, kind: input, shape index: {}]   ;;  %s709_s6 = inlined_call_operand.vmem [shape: f32[1,32], index: 6, kind: input, shape index: {}]   ;;  %s710_s7 = inlined_call_operand.vmem [shape: f32[16,32], index: 7, kind: output, shape index: {}]  }
   0x1 LB: > { %s490_s25 = sadd.s32 4294967295, %s601_s24   ;;  %p492_p0 = scmp.ge.s32.totalorder %s601_s24, 1  ;;  %s601_s24 = sphi %s645_s24, %s18_s24  }
   0x2   : > { %p201_p1 = scmp.lt.s32.totalorder %s601_s24, 3  ;;  %s216_s28 = sshll.u32 %s705_s2, 4  ;;  %s217_s28 = int_to_ptr.hbm [resolvable:$true] %s216_s28 }
   0x3   : > { %p541_p3 = scmp.eq.s32.totalorder %s490_s25, 0  ;;  %s603_s29 = smov [#allocation2]  }
   0x4   : > { %p202_p2 = pnand %p492_p0, %p201_p1  ;;  %s218_s30 = sshll.u32 %s603_s29, 4  ;;  %s219_s30 = int_to_ptr.vmem [resolvable:$true] %s218_s30 }
   0x6   : > { %p537_p4 = pneg %p202_p2  ;;  %250 = sbr.rel (%p202_p2) target bundleno = 551 (0x227), region = 48 }
   0x8   : > { %p538_p5 = pnand %p541_p3, %p537_p4 }
   0xa   : > { %540 = dma.hbm_to_vmem [thread:$0]  (!%p538_p5), %s217_s28, 16, %s219_s30, [#allocation3]  }
   0xb   : > { %596 = dma.done.wait (%p541_p3), [#allocation3], 16  }
   0xc   : > { %598 = vsyncadd (%p541_p3), [#allocation3], 4294967280  ;;  %p281_p6 = scmp.lt.s32.totalorder %s490_s25, 1  ;;  %v528_v0 = vld [vmem:[%s704_s1 + $0x8] sm:$0xff]  ;;  %v527_v1 = vld [vmem:[%s704_s1] sm:$0xff]  ;;  %vm312_vm0 = vcmask 261120  }
   0xd   : > { %v532_v2 = vld [vmem:[%s706_s3 + $0x18] sm:$0xff]  ;;  %322 = vmatpush.bf16.msra.mxu0 %v528_v0  ;;  %v531_v4 = vld [vmem:[%s706_s3 + $0x10] sm:$0xff]  ;;  %v530_v6 = vld [vmem:[%s706_s3 + $0x8] sm:$0xff]  ;;  %vm367_vm1 = vcmask 523264   ;;  %v604_v20 = vmov 32.0  }
   0xe   : > { %s712_s25 = smov (!%p281_p6, %s490_s25), 1  ;;  %375 = vmatpush.bf16.msra.mxu1 %v532_v2  ;;  %v529_v7 = vld [vmem:[%s706_s3] sm:$0xff]  ;;  %v553_v8 = vld [vmem:[#allocation2] ss:$0 sm:$0xff]  ;;  %557 = vrcp.f32 %v604_v20 }
   0xf   : > { %s497_s8 = sshll.u32 %s712_s25, 3  ;;  %v554_v14 = vld [vmem:[%s707_s4] ss:$0 sm:$0xff] }
  0x10   : > { %s284_s11 = scalar_lea.vmem %s703_s0, %s497_s8  ;;  %v555_v41 = vld [vmem:[%s708_s5] ss:$0 sm:$0xff]  ;;  %s288_s12 = scalar_lea.vmem %s710_s7, %s497_s8 }
  0x11   : > { %v290_v3 = vld [vmem:[%s284_s11] sm:$0xff]  ;;  %323 = vmatpush.bf16.msra.mxu0 %v527_v1 }
  0x12   : > { %v291_v5 = vpack.c.bf16 %v290_v3, %v290_v3  ;;  %376 = vmatpush.bf16.msra.mxu1 %v531_v4  ;;  %v556_v43 = vld [vmem:[%s709_s6] ss:$0 sm:$0xff] }
  0x14   : > { %507 = vmatmul.msk.bf16.vlgmr.msra.gmra.mxu0 %vm312_vm0, %v291_v5  ;;  %v558_v21 = vpop.eup %557 }
  0x15   : > { %v391_v22 = vmul.f32 32.0, %v558_v21  ;;  %vm395_vm2 = vweird.f32 %v558_v21 }
  0x16   : > { %377 = vmatpush.bf16.msra.mxu1 %v530_v6 }
  0x17   : > { %v392_v23 = vsub.f32 1.0, %v391_v22 }
  0x19   : > { %v393_v24 = vmul.f32 %v558_v21, %v392_v23 }
  0x1a   : > { %378 = vmatpush.bf16.msra.mxu1 %v529_v7 }
  0x1b   : > { %v394_v25 = vadd.f32 %v558_v21, %v393_v24 }
  0x1d   : > { %v396_v26 = vsel %vm395_vm2, %v558_v21, %v394_v25 }
  0x91   : > { %v325_v9 = vpop.f32.mrf.mxu0 }
  0x92   : > { %v326_v10 = vadd.f32 %v553_v8, %v325_v9 }
  0x94   : > { %v329_v11 = vmax.f32 %v326_v10, 0.0 }
  0x96   : > { %v330_v12 = vpack.c.bf16 %v329_v11, %v329_v11 }
  0x98   : > { %524 = vmatmul.msk.bf16.vlgmr.msra.gmra.mxu1 %vm367_vm1, %v330_v12 }
  0x99   : > { %v327_v13 = vpop.f32.mrf.mxu0 }
 0x115   : > { %v380_v15 = vpop.f32.mrf.mxu1 }
 0x116   : > { %v381_v16 = vadd.f32 %v554_v14, %v380_v15 }
 0x118   : > { %v384_v17 = vadd.f32 %v381_v16, %v290_v3 }
 0x11a   : > { %v387_v18 = vsel %vm312_vm0, %v384_v17, 0.0 }
 0x11b   : > { %388 = vadd.xlane.f32.xlu0 %v387_v18 }
 0x11d   : > { %v382_v19 = vpop.f32.mrf.mxu1 }
 0x18e   : > { %v389_v27 = vpop.xlane.xlu0 %388 }
 0x18f   : > { %v397_v28 = vmul.f32 %v396_v26, %v389_v27 }
 0x191   : > { %v398_v29 = vsub.f32 %v384_v17, %v397_v28 }
 0x193   : > { %v399_v30 = vmul.f32 %v398_v29, %v398_v29 }
 0x195   : > { %v400_v31 = vsel %vm312_vm0, %v399_v30, 0.0 }
 0x196   : > { %401 = vadd.xlane.f32.xlu0 %v400_v31 }
 0x209   : > { %v402_v32 = vpop.xlane.xlu0 %401 }
 0x20a   : > { %v403_v33 = vmul.f32 %v402_v32, %v396_v26 }
 0x20c   : > { %v404_v34 = vadd.f32 1e-05, %v403_v33 }
 0x20e   : > { %559 = vrsqrt.f32 %v404_v34  ;;  %vm411_vm4 = vweird.f32 %v404_v34 }
 0x214   : > { %v560_v35 = vpop.eup %559 }
 0x215   : > { %v406_v36 = vmul.f32 %v560_v35, %v404_v34  ;;  %vm412_vm3 = vweird.f32 %v560_v35 }
 0x216   : > { %vm413_vm5 = vmor %vm411_vm4, %vm412_vm3 }
 0x217   : > { %v407_v37 = vmul.f32 %v560_v35, %v406_v36 }
 0x219   : > { %v408_v38 = vmul.f32 0.5, %v407_v37 }
 0x21b   : > { %v409_v39 = vsub.f32 1.5, %v408_v38 }
 0x21d   : > { %v410_v40 = vmul.f32 %v560_v35, %v409_v39 }
 0x21f   : > { %v414_v42 = vsel %vm413_vm5, %v560_v35, %v410_v40 }
 0x220   : > { %v415_v44 = vmul.f32 %v414_v42, %v398_v29 }
 0x222   : > { %v419_v45 = vmul.f32 %v555_v41, %v415_v44 }
 0x224   : > { %v423_v46 = vadd.f32 %v556_v43, %v419_v45 }
 0x226   : > { %424 = vst.msk [vmem:[%s288_s12] sm:$0xff] %vm312_vm0, %v423_v46 }
 0x227 PF: > { %s18_s24 = sadd.s32 1, %s601_s24  }
 0x228   : > { %p15_p7 = scmp.ge.s32.totalorder %s18_s24, 4  }
 0x22a   :  { %17 = sbr.rel (!%p15_p7) target bundleno = 1 (0x1), region = 83 }
 0x22f   :  { %444 = vsyncpa [#allocation3], 1 }
 0x230   :  { %446 = vsyncpa [#allocation3 + $0x1], 1 }

// kernel: transformer_forward.22
= control target key start
LH: loop header
LB: loop body
LE: loop exit
PB: predicated region body
PF: predicated region fallthrough
CT: control target
= control target key end

     0   :  { %s876_s27 = smov 0   ;;  %s972_s0 = inlined_call_operand.vmem [shape: f32[2,8,32], index: 0, kind: input, shape index: {}]   ;;  %s973_s1 = inlined_call_operand.vmem [shape: bf16[32,96], index: 1, kind: input, shape index: {}]   ;;  %s974_s2 = inlined_call_operand.vmem [shape: f32[1,96], index: 2, kind: input, shape index: {}]   ;;  %s975_s3 = inlined_call_operand.vmem [shape: bf16[32,32], index: 3, kind: input, shape index: {}]   ;;  %s976_s4 = inlined_call_operand.vmem [shape: f32[1,32], index: 4, kind: input, shape index: {}]   ;;  %s977_s5 = inlined_call_operand.vmem [shape: f32[1,8,8], index: 5, kind: input, shape index: {}]   ;;  %s978_s6 = inlined_call_operand.vmem [shape: f32[1,32], index: 6, kind: input, shape index: {}]   ;;  %s979_s7 = inlined_call_operand.vmem [shape: f32[1,32], index: 7, kind: input, shape index: {}]   ;;  %s980_s8 = inlined_call_operand.vmem [shape: f32[2,8,32], index: 8, kind: output, shape index: {}]  }
   0x1 LB: > { %s722_s28 = sadd.s32 4294967295, %s814_s27   ;;  %p726_p0 = scmp.ge.s32.totalorder %s814_s27, 1  ;;  %s814_s27 = sphi %s876_s27, %s18_s27  }
   0x2   : > { %p261_p1 = scmp.lt.s32.totalorder %s814_s27, 3 }
   0x4   : > { %p262_p2 = pnand %p726_p0, %p261_p1 }
   0x5   : > { %p293_p3 = scmp.lt.s32.totalorder (!%p262_p2), %s722_s28, 1  ;;  %s816_s17 = smov (!%p262_p2), 96  }
   0x6   : > { %265 = sbr.rel (%p262_p2) target bundleno = 1358 (0x54e), region = 52  ;;  %s817_s18 = smov (!%p262_p2), 104  }
   0x7   : > { %s818_s19 = smov (!%p262_p2), 120   ;;  %s819_s20 = smov (!%p262_p2), 88  }
   0x8   : > { %s820_s21 = smov (!%p262_p2), 80   ;;  %s821_s22 = smov (!%p262_p2), 72  }
   0x9   : > { %s822_s23 = smov (!%p262_p2), 112   ;;  %s823_s26 = smov (!%p262_p2), 64  }
   0xa   : > { %s824_s29 = smov (!%p262_p2), 40   ;;  %s825_s30 = smov (!%p262_p2), 56  }
   0xb   : > { %v758_v0 = vld [vmem:[%s973_s1 + $0x8] sm:$0xff]  ;;  %v757_v1 = vld [vmem:[%s973_s1] sm:$0xff]  ;;  %s982_s28 = smov (!%p293_p3, %s722_s28), 1  ;;  %vm324_vm0 = vcmask 261120   ;;  %vm348_vm1 = vcmask 64512   ;;  %vm385_vm2 = vcmask 1043456  }
   0xc   : > { %334 = vmatpush.bf16.msra.mxu0 %v758_v0  ;;  %s727_s11 = sshll.u32 %s982_s28, 3  ;;  %v784_v4 = vld [vmem:[%s974_s2] ss:$0 sm:$0xff]  ;;  %s826_s9 = smov 48   ;;  %vm464_vm3 = vcmask 130112   ;;  %vm526_vm4 = vcmask 195712  }
   0xd   : > { %s296_s14 = scalar_lea.vmem %s972_s0, %s727_s11  ;;  %v341_v22 = vld [vmem:[%s977_s5] sm:$0xff]  ;;  %s827_s10 = smov 8   ;;  %vm588_vm5 = vcmask 261312  }
   0xe   : > { %v898_v2 = vld [vmem:[%s296_s14] sm:$0xff]  ;;  %s828_s12 = smov 16   ;;  %s829_s13 = smov 24  }
   0xf   : > { %v303_v3 = vpack.c.bf16 %v898_v2, %v898_v2 }
  0x10   : > { %335 = vmatpush.bf16.msra.mxu0 %v757_v1 }
  0x13   : > { %737 = vmatmul.msk.bf16.vlgmr.msra.gmra.mxu0 %vm324_vm0, %v303_v3 }
  0x90   : > { %v337_v5 = vpop.f32.mrf.mxu0 }
  0x91   : > { %v338_v6 = vadd.f32 %v784_v4, %v337_v5 }
  0x93   : > { %v342_v7 = vmul.f32 0.35355338, %v338_v6  ;;  %v906_v8 = vpack.c.bf16 %v338_v6, %v338_v6 }
  0x95   : > { %v343_v9 = vpack.c.bf16 %v342_v7, %v342_v7  ;;  %346 = vrot.lane.b32.xlu0 %v906_v8, %s816_s17 }
  0x97   : > { %528 = vrot.lane.b32.xlu2 %v343_v9, %s817_s18  ;;  %404 = vrot.lane.b32.xlu1 %v343_v9, %s818_s19 }
  0x98   : > { %v339_v10 = vpop.f32.mrf.mxu0 }
  0x9d   : > { %406 = vrot.lane.b32.xlu0 %v906_v8, %s819_s20 }
  0x9f   : > { %468 = vrot.lane.b32.xlu2 %v906_v8, %s820_s21  ;;  %530 = vrot.lane.b32.xlu1 %v906_v8, %s821_s22 }
  0xa5   : > { %466 = vrot.lane.b32.xlu0 %v343_v9, %s822_s23 }
  0xf1   : > { %v529_v11 = vpop.permute.xlu2 %528 }
  0xf9   : > { %v469_v12 = vpop.permute.xlu2 %468 }
  0xfa   : > { %v474_v13 = vsel %vm348_vm1, %v469_v12, 0 }
  0xfb   : > { %483 = vmatpush.bf16.xpose.msrb.mxu0 %v474_v13 }
 0x107   : > { %v347_v14 = vpop.permute.xlu0 %346 }
 0x108   : > { %v353_v15 = vsel %vm348_vm1, %v347_v14, 0 }
 0x109   : > { %362 = vmatpush.bf16.xpose.msra.mxu1 %v353_v15  ;;  %v405_v16 = vpop.permute.xlu1 %404 }
 0x10f   : > { %v407_v17 = vpop.permute.xlu0 %406 }
 0x110   : > { %738 = vmatmul.msk.bf16.vlgmr.msra.gmra.mxu1 %vm348_vm1, %v343_v9  ;;  %v412_v18 = vsel %vm348_vm1, %v407_v17, 0 }
 0x111   : > { %421 = vmatpush.bf16.xpose.msra.mxu3 %v412_v18  ;;  %v531_v19 = vpop.permute.xlu1 %530 }
 0x112   : > { %v536_v20 = vsel %vm348_vm1, %v531_v19, 0 }
 0x117   : > { %v467_v21 = vpop.permute.xlu0 %466 }
 0x118   : > { %740 = vmatmul.msk.bf16.vlgmr.msra.gmra.mxu3 %vm348_vm1, %v405_v16  ;;  %742 = vmatmul.msk.bf16.vlgmr.msrb.gmra.mxu0 %vm348_vm1, %v467_v21 }
 0x119   : > { %545 = vmatpush.bf16.xpose.msrb.mxu3 %v536_v20 }
 0x128   : > { %744 = vmatmul.msk.bf16.vlgmr.msrb.gmra.mxu3 %vm348_vm1, %v529_v11 }
 0x18d   : > { %v364_v23 = vpop.f32.mrf.mxu1 }
 0x18e   : > { %v365_v24 = vadd.f32 %v364_v23, %v341_v22 }
 0x190   : > { %v368_v25 = vsel %vm348_vm1, %v365_v24, -inf }
 0x191   : > { %369 = vmax.xlane.f32.xlu1 %v368_v25 }
 0x195   : > { %v366_v26 = vpop.f32.mrf.mxu1  ;;  %v485_v27 = vpop.f32.mrf.mxu0 }
 0x196   : > { %v486_v32 = vadd.f32 %v485_v27, %v341_v22 }
 0x198   : > { %v489_v34 = vsel %vm348_vm1, %v486_v32, -inf }
 0x19b   : > { %v423_v28 = vpop.f32.mrf.mxu3 }
 0x19c   : > { %v424_v29 = vadd.f32 %v423_v28, %v341_v22  ;;  %v760_v28 = vld [vmem:[%s975_s3 + $0x8] sm:$0xff] }
 0x19d   : > { %v487_v30 = vpop.f32.mrf.mxu0  ;;  %621 = vmatpush.bf16.msra.mxu0 %v760_v28 }
 0x19e   : > { %v427_v31 = vsel %vm348_vm1, %v424_v29, -inf }
 0x19f   : > { %428 = vmax.xlane.f32.xlu2 %v427_v31 }
 0x1a3   : > { %v425_v33 = vpop.f32.mrf.mxu3 }
 0x1a7   : > { %490 = vmax.xlane.f32.xlu2 %v489_v34 }
 0x1ab   : > { %v547_v35 = vpop.f32.mrf.mxu3 }
 0x1ac   : > { %v548_v36 = vadd.f32 %v547_v35, %v341_v22  ;;  %v785_v35 = vld [vmem:[%s976_s4] ss:$0 sm:$0xff] }
 0x1ae   : > { %v551_v37 = vsel %vm348_vm1, %v548_v36, -inf }
 0x1af   : > { %552 = vmax.xlane.f32.xlu0 %v551_v37 }
 0x1b3   : > { %v549_v38 = vpop.f32.mrf.mxu3 }
 0x1bf   : > { %380 = vrot.lane.b32.xlu2 %v906_v8, %s823_s26  ;;  %s300_s26 = scalar_lea.vmem %s980_s8, %s727_s11 }
 0x1c7   : > { %563 = vrot.lane.b32.xlu2 %v906_v8, %s824_s29 }
 0x204   : > { %v370_v39 = vpop.xlane.xlu1 %369 }
 0x205   : > { %v371_v40 = vsub.f32 %v365_v24, %v370_v39 }
 0x207   : > { %v372_v41 = vmul.f32 1.442695, %v371_v40 }
 0x209   : > { %788 = vpow2.f32 %v372_v41  ;;  %v830_v41 = vmov 32.0  }
 0x20f   : > { %v789_v42 = vpop.eup %788 }
 0x210   : > { %v374_v43 = vsel %vm348_vm1, %v789_v42, 0.0 }
 0x211   : > { %375 = vadd.xlane.f32.xlu1 %v374_v43 }
 0x212   : > { %v429_v44 = vpop.xlane.xlu2 %428 }
 0x213   : > { %v430_v47 = vsub.f32 %v424_v29, %v429_v44  ;;  %v759_v29 = vld [vmem:[%s975_s3] sm:$0xff] }
 0x214   : > { %622 = vmatpush.bf16.msra.mxu0 %v759_v29 }
 0x215   : > { %v431_v49 = vmul.f32 1.442695, %v430_v47 }
 0x21a   : > { %v491_v45 = vpop.xlane.xlu2 %490 }
 0x21b   : > { %v492_v46 = vsub.f32 %v486_v32, %v491_v45 }
 0x21d   : > { %v493_v48 = vmul.f32 1.442695, %v492_v46 }
 0x21f   : > { %790 = vpow2.f32 %v493_v48 }
 0x220   : > { %792 = vpow2.f32 %v431_v49 }
 0x222   : > { %v381_v50 = vpop.permute.xlu2 %380  ;;  %v553_v51 = vpop.xlane.xlu0 %552 }
 0x223   : > { %v387_v52 = vsel %vm385_vm2, %v381_v50, 0  ;;  %v554_v54 = vsub.f32 %v548_v36, %v553_v51 }
 0x224   : > { %396 = vmatpush.bf16.msra.mxu2 %v387_v52 }
 0x225   : > { %v791_v53 = vpop.eup %790  ;;  %v555_v56 = vmul.f32 1.442695, %v554_v54 }
 0x226   : > { %v495_v55 = vsel %vm348_vm1, %v791_v53, 0.0  ;;  %v793_v57 = vpop.eup %792 }
 0x227   : > { %496 = vadd.xlane.f32.xlu0 %v495_v55  ;;  %794 = vpow2.f32 %v555_v56  ;;  %v433_v58 = vsel %vm348_vm1, %v793_v57, 0.0 }
 0x22a   : > { %439 = vrot.lane.b32.xlu1 %v906_v8, %s825_s30  ;;  %v564_v3 = vpop.permute.xlu2 %563 }
 0x22b   : > { %v569_v6 = vsel %vm385_vm2, %v564_v3, 0 }
 0x22d   : > { %v795_v59 = vpop.eup %794 }
 0x22e   : > { %v557_v60 = vsel %vm348_vm1, %v795_v59, 0.0 }
 0x22f   : > { %434 = vadd.xlane.f32.xlu0 %v433_v58 }
 0x237   : > { %558 = vadd.xlane.f32.xlu0 %v557_v60 }
 0x24b   : > { %501 = vrot.lane.b32.xlu0 %v906_v8, %s826_s9 }
 0x284   : > { %v376_v61 = vpop.xlane.xlu1 %375 }
 0x285   : > { %796 = vrcp.f32 %v376_v61  ;;  %v786_v61 = vld [vmem:[%s978_s6] ss:$0 sm:$0xff] }
 0x28b   : > { %v797_v62 = vpop.eup %796 }
 0x28c   : > { %v378_v63 = vmul.f32 %v797_v62, %v789_v42 }
 0x28e   : > { %v379_v0 = vpack.c.bf16 %v378_v63, %v378_v63  ;;  %v787_v63 = vld [vmem:[%s979_s7] ss:$0 sm:$0xff] }
 0x290   : > { %739 = vmatmul.msk.bf16.vlgmr.msra.gmra.mxu2 %vm348_vm1, %v379_v0 }
 0x29a   : > { %v497_v1 = vpop.xlane.xlu0 %496 }
 0x29c   : > { %v440_v4 = vpop.permute.xlu1 %439 }
 0x29d   : > { %v445_v5 = vsel %vm385_vm2, %v440_v4, 0 }
 0x29e   : > { %454 = vmatpush.bf16.msrb.mxu2 %v445_v5 }
 0x2a2   : > { %578 = vmatpush.bf16.msra.mxu2 %v569_v6  ;;  %v435_v7 = vpop.xlane.xlu0 %434 }
 0x2a3   : > { %798 = vrcp.f32 %v435_v7 }
 0x2a9   : > { %v799_v9 = vpop.eup %798 }
 0x2aa   : > { %v437_v8 = vmul.f32 %v799_v9, %v793_v57  ;;  %v559_v10 = vpop.xlane.xlu0 %558 }
 0x2ab   : > { %800 = vrcp.f32 %v559_v10 }
 0x2ac   : > { %v438_v11 = vpack.c.bf16 %v437_v8, %v437_v8  ;;  %802 = vrcp.f32 %v497_v1 }
 0x2ad   : > { %804 = vrcp.f32 %v830_v41 }
 0x2ae   : > { %741 = vmatmul.msk.bf16.vlgmr.msrb.gmra.mxu2 %vm348_vm1, %v438_v11 }
 0x2b1   : > { %v801_v12 = vpop.eup %800 }
 0x2b2   : > { %v561_v13 = vmul.f32 %v801_v12, %v795_v59  ;;  %v803_v14 = vpop.eup %802 }
 0x2b3   : > { %v499_v15 = vmul.f32 %v803_v14, %v791_v53  ;;  %v805_v42 = vpop.eup %804 }
 0x2b4   : > { %v562_v16 = vpack.c.bf16 %v561_v13, %v561_v13  ;;  %v635_v43 = vmul.f32 32.0, %v805_v42  ;;  %vm639_vm6 = vweird.f32 %v805_v42 }
 0x2b5   : > { %v500_v19 = vpack.c.bf16 %v499_v15, %v499_v15 }
 0x2b6   : > { %v636_v44 = vsub.f32 1.0, %v635_v43 }
 0x2b8   : > { %v637_v45 = vmul.f32 %v805_v42, %v636_v44 }
 0x2ba   : > { %v638_v46 = vadd.f32 %v805_v42, %v637_v45 }
 0x2bc   : > { %v640_v47 = vsel %vm639_vm6, %v805_v42, %v638_v46 }
 0x2bd   : > { %v502_v17 = vpop.permute.xlu0 %501 }
 0x2be   : > { %745 = vmatmul.msk.bf16.vlgmr.msra.gmra.mxu2 %vm348_vm1, %v562_v16  ;;  %v507_v18 = vsel %vm385_vm2, %v502_v17, 0 }
 0x2bf   : > { %516 = vmatpush.bf16.msrb.mxu1 %v507_v18 }
 0x2c2   : > { %743 = vmatmul.msk.bf16.vlgmr.msrb.gmra.mxu1 %vm348_vm1, %v500_v19 }
 0x313   : > { %v398_v20 = vpop.f32.mrf.mxu2 }
 0x314   : > { %402 = vst.msk [vmem:[#allocation2] sm:$0xff] %vm348_vm1, %v398_v20 }
 0x31b   : > { %v400_v21 = vpop.f32.mrf.mxu2 }
 0x331   : > { %v456_v22 = vpop.f32.mrf.mxu2 }
 0x332   : > { %461 = vrot.lane.b32.xlu1 %v456_v22, %s827_s10 }
 0x339   : > { %v458_v23 = vpop.f32.mrf.mxu2 }
 0x33f   : > { %v518_v24 = vpop.f32.mrf.mxu1 }
 0x340   : > { %523 = vrot.lane.b32.xlu2 %v518_v24, %s828_s12 }
 0x341   : > { %v580_v25 = vpop.f32.mrf.mxu2 }
 0x342   : > { %585 = vrot.lane.b32.xlu1 %v580_v25, %s829_s13 }
 0x347   : > { %v520_v26 = vpop.f32.mrf.mxu1 }
 0x349   : > { %v582_v27 = vpop.f32.mrf.mxu2 }
 0x39a   : > { %v524_v31 = vpop.permute.xlu2 %523 }
 0x3a4   : > { %v462_v30 = vpop.permute.xlu1 %461 }
 0x3a5   : > { %465 = vst.msk [vmem:[#allocation2] sm:$0xff] %vm464_vm3, %v462_v30 }
 0x3a6   : > { %527 = vst.msk [vmem:[#allocation2] sm:$0xff] %vm526_vm4, %v524_v31 }
 0x3b4   : > { %v586_v32 = vpop.permute.xlu1 %585 }
 0x3b5   : > { %589 = vst.msk [vmem:[#allocation2] sm:$0xff] %vm588_vm5, %v586_v32 }
 0x3bc   : > { %v590_v33 = vld [vmem:[#allocation2] sm:$0xff] }
 0x3bd   : > { %v591_v34 = vpack.c.bf16 %v590_v33, %v590_v33 }
 0x3bf   : > { %754 = vmatmul.msk.bf16.vlgmr.msra.gmra.mxu0 %vm324_vm0, %v591_v34 }
 0x43c   : > { %v624_v36 = vpop.f32.mrf.mxu0 }
 0x43d   : > { %v625_v37 = vadd.f32 %v785_v35, %v624_v36 }
 0x43f   : > { %v628_v38 = vadd.f32 %v625_v37, %v898_v2 }
 0x441   : > { %v631_v39 = vsel %vm324_vm0, %v628_v38, 0.0 }
 0x442   : > { %632 = vadd.xlane.f32.xlu2 %v631_v39 }
 0x444   : > { %v626_v40 = vpop.f32.mrf.mxu0 }
 0x4b5   : > { %v633_v48 = vpop.xlane.xlu2 %632 }
 0x4b6   : > { %v641_v49 = vmul.f32 %v640_v47, %v633_v48 }
 0x4b8   : > { %v642_v50 = vsub.f32 %v628_v38, %v641_v49 }
 0x4ba   : > { %v643_v51 = vmul.f32 %v642_v50, %v642_v50 }
 0x4bc   : > { %v644_v52 = vsel %vm324_vm0, %v643_v51, 0.0 }
 0x4bd   : > { %645 = vadd.xlane.f32.xlu1 %v644_v52 }
 0x530   : > { %v646_v2 = vpop.xlane.xlu1 %645 }
 0x531   : > { %v647_v53 = vmul.f32 %v646_v2, %v640_v47 }
 0x533   : > { %v648_v54 = vadd.f32 1e-05, %v647_v53 }
 0x535   : > { %806 = vrsqrt.f32 %v648_v54  ;;  %vm655_vm8 = vweird.f32 %v648_v54 }
 0x53b   : > { %v807_v55 = vpop.eup %806 }
 0x53c   : > { %v650_v56 = vmul.f32 %v807_v55, %v648_v54  ;;  %vm656_vm7 = vweird.f32 %v807_v55 }
 0x53d   : > { %vm657_vm9 = vmor %vm655_vm8, %vm656_vm7 }
 0x53e   : > { %v651_v57 = vmul.f32 %v807_v55, %v650_v56 }
 0x540   : > { %v652_v58 = vmul.f32 0.5, %v651_v57 }
 0x542   : > { %v653_v59 = vsub.f32 1.5, %v652_v58 }
 0x544   : > { %v654_v60 = vmul.f32 %v807_v55, %v653_v59 }
 0x546   : > { %v658_v62 = vsel %vm657_vm9, %v807_v55, %v654_v60 }
 0x547   : > { %v659_v0 = vmul.f32 %v658_v62, %v642_v50 }
 0x549   : > { %v663_v1 = vmul.f32 %v786_v61, %v659_v0 }
 0x54b   : > { %v667_v3 = vadd.f32 %v787_v63, %v663_v1 }
 0x54d   : > { %668 = vst.msk [vmem:[%s300_s26] sm:$0xff] %vm324_vm0, %v667_v3 }
 0x54e PF: > { %s18_s27 = sadd.s32 1, %s814_s27  }
 0x54f   : > { %p15_p4 = scmp.ge.s32.totalorder %s18_s27, 4  }
 0x551   :  { %17 = sbr.rel (!%p15_p4) target bundleno = 1 (0x1), region = 82 }

// kernel: transformer_forward.20
= control target key start
LH: loop header
LB: loop body
LE: loop exit
PB: predicated region body
PF: predicated region fallthrough
CT: control target
= control target key end

     0   :  { %16 = vsyncpa [#allocation4], 0  ;;  %s1408_s0 = inlined_call_operand.vmem [shape: f32[2,8,32], index: 0, kind: input, shape index: {}]   ;;  %s1409_s1 = inlined_call_operand.vmem [shape: f32[2,8,32], index: 1, kind: input, shape index: {}]   ;;  %s1410_s2 = inlined_call_operand.vmem [shape: bf16[32,32], index: 2, kind: input, shape index: {}]   ;;  %s1411_s3 = inlined_call_operand.hbm [shape: f32[1,32], index: 3, kind: input, shape index: {}]   ;;  %s1412_s4 = inlined_call_operand.vmem [shape: bf16[32,64], index: 4, kind: input, shape index: {}]   ;;  %s1413_s5 = inlined_call_operand.hbm [shape: f32[1,64], index: 5, kind: input, shape index: {}]   ;;  %s1414_s6 = inlined_call_operand.vmem [shape: bf16[32,32], index: 6, kind: input, shape index: {}]   ;;  %s1415_s7 = inlined_call_operand.hbm [shape: f32[1,32], index: 7, kind: input, shape index: {}]   ;;  %s1416_s8 = inlined_call_operand.vmem [shape: f32[2,1,8], index: 8, kind: input, shape index: {}]   ;;  %s1417_s9 = inlined_call_operand.vmem [shape: f32[1,32], index: 9, kind: input, shape index: {}]   ;;  %s1418_s10 = inlined_call_operand.vmem [shape: f32[1,32], index: 10, kind: input, shape index: {}]   ;;  %s1419_s11 = inlined_call_operand.vmem [shape: f32[2,8,32], index: 11, kind: output, shape index: {}]  }
   0x1   :  { %17 = vsyncpa [#allocation6], 0  ;;  %s1282_s17 = smov 0  }
   0x2 LB: > { %s330_s20 = sshll.u32 %s1413_s5, 4  ;;  %s969_s21 = sadd.s32 4294967295, %s1206_s17   ;;  %s1206_s17 = sphi %s1282_s17, %s23_s17   ;;  %s331_s20 = int_to_ptr.hbm [resolvable:$true] %s330_s20 }
   0x3   : > { %p971_p0 = scmp.ge.s32.totalorder %s1206_s17, 1  ;;  %p300_p1 = scmp.lt.s32.totalorder %s1206_s17, 3 }
   0x4   : > { %p1048_p2 = scmp.eq.s32.totalorder %s969_s21, 0  ;;  %s1208_s23 = smov [#allocation5]  }
   0x5   : > { %p1293_p3 = pnand %p971_p0, %p300_p1  ;;  %s332_s24 = sshll.u32 %s1208_s23, 4  ;;  %s333_s24 = int_to_ptr.vmem [resolvable:$true] %s332_s24 }
   0x6   : > { %s315_s27 = sshll.u32 %s1411_s3, 4  ;;  %s345_s30 = sshll.u32 %s1415_s7, 4  ;;  %s316_s27 = int_to_ptr.hbm [resolvable:$true] %s315_s27  ;;  %s346_s30 = int_to_ptr.hbm [resolvable:$true] %s345_s30 }
   0x7   : > { %p1038_p4 = pneg %p1293_p3  ;;  %s1209_s12 = smov [#allocation3]  }
   0x8   : > { %s317_s13 = sshll.u32 %s1209_s12, 4  ;;  %s1210_s14 = smov [#allocation7]   ;;  %s318_s13 = int_to_ptr.vmem [resolvable:$true] %s317_s13 }
   0x9   : > { %p1039_p5 = pnand %p1048_p2, %p1038_p4  ;;  %s347_s15 = sshll.u32 %s1210_s14, 4  ;;  %s348_s15 = int_to_ptr.vmem [resolvable:$true] %s347_s15 }
   0xa   : > { %386 = sbr.rel (%p1293_p3) target bundleno = 1620 (0x654), region = 64 }
   0xb   : > { %1044 = dma.hbm_to_vmem [thread:$0]  (!%p1039_p5), %s331_s20, 16, %s333_s24, [#allocation6]  }
   0xc   : > { %1041 = dma.hbm_to_vmem [thread:$0]  (!%p1039_p5), %s316_s27, 16, %s318_s13, [#allocation4]  }
   0xd   : > { %1047 = dma.hbm_to_vmem [thread:$0]  (!%p1039_p5), %s346_s30, 16, %s348_s15, [#allocation6]  }
   0xf   : > { %1197 = dma.done.wait (%p1048_p2), [#allocation4], 16  }
  0x10   : > { %1199 = vsyncadd (%p1048_p2), [#allocation4], 4294967280 }
  0x11   : > { %1201 = dma.done.wait (%p1048_p2), [#allocation6], 32  }
  0x12   : > { %1203 = vsyncadd (%p1048_p2), [#allocation6], 4294967264  ;;  %p442_p6 = scmp.lt.s32.totalorder %s969_s21, 1  ;;  %v1021_v0 = vld [vmem:[%s1410_s2 + $0x8] sm:$0xff]  ;;  %v1020_v2 = vld [vmem:[%s1410_s2] sm:$0xff]  ;;  %vm481_vm0 = vcmask 261120  }
  0x13   : > { %v1023_v1 = vld [vmem:[%s1412_s4 + $0x8] sm:$0xff]  ;;  %v1022_v3 = vld [vmem:[%s1412_s4] sm:$0xff]  ;;  %491 = vmatpush.bf16.msra.mxu0 %v1021_v0  ;;  %vm542_vm1 = vcmask 64512   ;;  %s1211_s14 = smov 96   ;;  %s1212_s15 = smov 120   ;;  %vm580_vm2 = vcmask 1043456  }
  0x14   : > { %s1422_s21 = smov (!%p442_p6, %s969_s21), 1  ;;  %528 = vmatpush.bf16.msra.mxu1 %v1023_v1  ;;  %v1076_v8 = vld [vmem:[#allocation3] ss:$0 sm:$0xff]  ;;  %v1077_v9 = vld [vmem:[#allocation5] ss:$0 sm:$0xff]  ;;  %s1213_s22 = smov 112  }
  0x15   : > { %s1315_s16 = sshll.u32 %s1422_s21, 3  ;;  %s1214_s23 = smov 104   ;;  %vm659_vm3 = vcmask 130112   ;;  %vm721_vm4 = vcmask 195712   ;;  %vm783_vm5 = vcmask 261312  }
  0x16   : > { %s445_s20 = scalar_lea.vmem %s1408_s0, %s1315_s16  ;;  %s449_s24 = scalar_lea.vmem %s1409_s1, %s1315_s16 }
  0x17   : > { %v1337_v4 = vld [vmem:[%s445_s20] sm:$0xff]  ;;  %492 = vmatpush.bf16.msra.mxu0 %v1020_v2  ;;  %s452_s20 = scalar_lea.vmem %s1416_s8, %s1422_s21  ;;  %s1215_s21 = smov 88  }
  0x18   : > { %v459_v5 = vld [vmem:[%s449_s24] sm:$0xff]  ;;  %v460_v6 = vpack.c.bf16 %v1337_v4, %v1337_v4  ;;  %529 = vmatpush.bf16.msra.mxu1 %v1022_v3  ;;  %s1216_s24 = smov 80   ;;  %s1217_s25 = smov 72  }
  0x19   : > { %v498_v7 = vpack.c.bf16 %v459_v5, %v459_v5  ;;  %v1078_v28 = vld [vmem:[%s452_s20] ss:$0 sm:$0xff]  ;;  %s1218_s26 = smov 8   ;;  %s1219_s27 = smov 16  }
  0x1a   : > { %991 = vmatmul.msk.bf16.vlgmr.msra.gmra.mxu0 %vm481_vm0, %v460_v6  ;;  %s1220_s28 = smov 24  }
  0x1b   : > { %1000 = vmatmul.msk.bf16.vlgmr.msra.gmra.mxu1 %vm481_vm0, %v498_v7 }
  0x97   : > { %v494_v10 = vpop.f32.mrf.mxu0 }
  0x98   : > { %v531_v11 = vpop.f32.mrf.mxu1  ;;  %v495_v12 = vadd.f32 %v1076_v8, %v494_v10 }
  0x99   : > { %v532_v13 = vadd.f32 %v1077_v9, %v531_v11 }
  0x9a   : > { %v536_v14 = vmul.f32 0.35355338, %v495_v12 }
  0x9b   : > { %v1343_v15 = vpack.c.bf16 %v532_v13, %v532_v13 }
  0x9c   : > { %v537_v16 = vpack.c.bf16 %v536_v14, %v536_v14 }
  0x9d   : > { %575 = vrot.lane.b32.xlu1 %v1343_v15, %s1211_s14  ;;  %v547_v17 = vsel %vm542_vm1, %v1343_v15, 0 }
  0x9e   : > { %556 = vmatpush.bf16.xpose.msra.mxu2 %v547_v17  ;;  %599 = vrot.lane.b32.xlu2 %v537_v16, %s1212_s15 }
  0x9f   : > { %v496_v18 = vpop.f32.mrf.mxu0 }
  0xa0   : > { %v533_v19 = vpop.f32.mrf.mxu1 }
  0xa5   : > { %601 = vrot.lane.b32.xlu1 %v1343_v15, %s1212_s15  ;;  %1001 = vmatmul.msk.bf16.vlgmr.msra.gmra.mxu2 %vm542_vm1, %v537_v16 }
  0xa6   : > { %663 = vrot.lane.b32.xlu2 %v1343_v15, %s1213_s22 }
  0xad   : > { %661 = vrot.lane.b32.xlu1 %v537_v16, %s1213_s22 }
  0xae   : > { %723 = vrot.lane.b32.xlu2 %v537_v16, %s1214_s23 }
  0xf8   : > { %v600_v20 = vpop.permute.xlu2 %599 }
 0x100   : > { %v664_v21 = vpop.permute.xlu2 %663 }
 0x101   : > { %v669_v22 = vsel %vm542_vm1, %v664_v21, 0 }
 0x102   : > { %678 = vmatpush.bf16.xpose.msrb.mxu1 %v669_v22 }
 0x108   : > { %v724_v42 = vpop.permute.xlu2 %723 }
 0x10f   : > { %v576_v23 = vpop.permute.xlu1 %575 }
 0x110   : > { %v582_v24 = vsel %vm580_vm2, %v576_v23, 0 }
 0x111   : > { %591 = vmatpush.bf16.msra.mxu3 %v582_v24 }
 0x117   : > { %v602_v25 = vpop.permute.xlu1 %601 }
 0x118   : > { %v607_v26 = vsel %vm542_vm1, %v602_v25, 0 }
 0x119   : > { %616 = vmatpush.bf16.xpose.msrb.mxu3 %v607_v26 }
 0x11f   : > { %v662_v27 = vpop.permute.xlu1 %661 }
 0x120   : > { %1005 = vmatmul.msk.bf16.vlgmr.msrb.gmra.mxu1 %vm542_vm1, %v662_v27 }
 0x128   : > { %v558_v29 = vpop.f32.mrf.mxu2 }
 0x129   : > { %v559_v30 = vadd.f32 %v1078_v28, %v558_v29 }
 0x12b   : > { %v562_v31 = vsel %vm542_vm1, %v559_v30, -inf }
 0x12c   : > { %563 = vmax.xlane.f32.xlu0 %v562_v31 }
 0x130   : > { %v560_v32 = vpop.f32.mrf.mxu2 }
 0x19d   : > { %v680_v33 = vpop.f32.mrf.mxu1 }
 0x19e   : > { %v681_v34 = vadd.f32 %v1078_v28, %v680_v33 }
 0x19f   : > { %v564_v35 = vpop.xlane.xlu0 %563 }
 0x1a0   : > { %v565_v36 = vsub.f32 %v559_v30, %v564_v35  ;;  %v684_v37 = vsel %vm542_vm1, %v681_v34, -inf  ;;  %v1025_v35 = vld [vmem:[%s1414_s6 + $0x8] sm:$0xff] }
 0x1a1   : > { %685 = vmax.xlane.f32.xlu2 %v684_v37  ;;  %816 = vmatpush.bf16.msra.mxu1 %v1025_v35 }
 0x1a2   : > { %v566_v38 = vmul.f32 1.442695, %v565_v36  ;;  %v1024_v36 = vld [vmem:[%s1414_s6] sm:$0xff] }
 0x1a4   : > { %1082 = vpow2.f32 %v566_v38 }
 0x1a5   : > { %v682_v39 = vpop.f32.mrf.mxu1  ;;  %817 = vmatpush.bf16.msra.mxu1 %v1024_v36 }
 0x1aa   : > { %v1083_v40 = vpop.eup %1082 }
 0x1ab   : > { %v568_v41 = vsel %vm542_vm1, %v1083_v40, 0.0 }
 0x1ac   : > { %569 = vadd.xlane.f32.xlu0 %v568_v41 }
 0x1c0   : > { %725 = vrot.lane.b32.xlu0 %v1343_v15, %s1214_s23  ;;  %s456_s23 = scalar_lea.vmem %s1419_s11, %s1315_s16 }
 0x214   : > { %v686_v43 = vpop.xlane.xlu2 %685 }
 0x215   : > { %v687_v44 = vsub.f32 %v681_v34, %v686_v43 }
 0x217   : > { %v688_v45 = vmul.f32 1.442695, %v687_v44 }
 0x219   : > { %1084 = vpow2.f32 %v688_v45 }
 0x21f   : > { %v1085_v46 = vpop.eup %1084  ;;  %v570_v47 = vpop.xlane.xlu0 %569 }
 0x220   : > { %1086 = vrcp.f32 %v570_v47  ;;  %v690_v48 = vsel %vm542_vm1, %v1085_v46, 0.0 }
 0x221   : > { %691 = vadd.xlane.f32.xlu2 %v690_v48  ;;  %v1221_v48 = vmov 32.0  }
 0x226   : > { %v1087_v49 = vpop.eup %1086 }
 0x227   : > { %v572_v50 = vmul.f32 %v1087_v49, %v1083_v40 }
 0x229   : > { %v573_v51 = vpack.c.bf16 %v572_v50, %v572_v50 }
 0x22b   : > { %1002 = vmatmul.msk.bf16.vlgmr.msra.gmra.mxu3 %vm542_vm1, %v573_v51 }
 0x232   : > { %v726_v52 = vpop.permute.xlu0 %725 }
 0x233   : > { %v731_v53 = vsel %vm542_vm1, %v726_v52, 0 }
 0x234   : > { %740 = vmatpush.bf16.xpose.msra.mxu3 %v731_v53 }
 0x23b   : > { %1003 = vmatmul.msk.bf16.vlgmr.msrb.gmra.mxu3 %vm542_vm1, %v600_v20 }
 0x24b   : > { %1007 = vmatmul.msk.bf16.vlgmr.msra.gmra.mxu3 %vm542_vm1, %v724_v42  ;;  %v1079_v42 = vld [vmem:[#allocation7] ss:$0 sm:$0xff] }
 0x294   : > { %v692_v13 = vpop.xlane.xlu2 %691 }
 0x2ae   : > { %v593_v54 = vpop.f32.mrf.mxu3 }
 0x2af   : > { %597 = vst.msk [vmem:[#allocation2] sm:$0xff] %vm542_vm1, %v593_v54 }
 0x2b6   : > { %v595_v55 = vpop.f32.mrf.mxu3 }
 0x2be   : > { %v618_v56 = vpop.f32.mrf.mxu3 }
 0x2bf   : > { %v619_v57 = vadd.f32 %v1078_v28, %v618_v56 }
 0x2c1   : > { %v622_v58 = vsel %vm542_vm1, %v619_v57, -inf }
 0x2c2   : > { %623 = vmax.xlane.f32.xlu1 %v622_v58 }
 0x2c6   : > { %v620_v59 = vpop.f32.mrf.mxu3 }
 0x2ce   : > { %v742_v60 = vpop.f32.mrf.mxu3 }
 0x2cf   : > { %v743_v61 = vadd.f32 %v1078_v28, %v742_v60 }
 0x2d1   : > { %v746_v62 = vsel %vm542_vm1, %v743_v61, -inf }
 0x2d2   : > { %747 = vmax.xlane.f32.xlu0 %v746_v62 }
 0x2d6   : > { %v744_v63 = vpop.f32.mrf.mxu3 }
 0x2db   : > { %634 = vrot.lane.b32.xlu1 %v1343_v15, %s1215_s21 }
 0x335   : > { %v624_v0 = vpop.xlane.xlu1 %623 }
 0x336   : > { %v625_v1 = vsub.f32 %v619_v57, %v624_v0 }
 0x338   : > { %v626_v2 = vmul.f32 1.442695, %v625_v1 }
 0x33a   : > { %1088 = vpow2.f32 %v626_v2 }
 0x340   : > { %v1089_v3 = vpop.eup %1088 }
 0x341   : > { %v628_v5 = vsel %vm542_vm1, %v1089_v3, 0.0 }
 0x342   : > { %629 = vadd.xlane.f32.xlu2 %v628_v5  ;;  %v1080_v5 = vld [vmem:[%s1417_s9] ss:$0 sm:$0xff] }
 0x345   : > { %v748_v6 = vpop.xlane.xlu0 %747 }
 0x346   : > { %v749_v7 = vsub.f32 %v743_v61, %v748_v6 }
 0x348   : > { %v750_v8 = vmul.f32 1.442695, %v749_v7  ;;  %v1081_v7 = vld [vmem:[%s1418_s10] ss:$0 sm:$0xff] }
 0x34a   : > { %1090 = vpow2.f32 %v750_v8 }
 0x34b   : > { %1092 = vrcp.f32 %v692_v13 }
 0x34d   : > { %v635_v9 = vpop.permute.xlu1 %634 }
 0x34e   : > { %v640_v10 = vsel %vm580_vm2, %v635_v9, 0 }
 0x34f   : > { %649 = vmatpush.bf16.msrb.mxu0 %v640_v10 }
 0x350   : > { %v1091_v11 = vpop.eup %1090 }
 0x351   : > { %v752_v12 = vsel %vm542_vm1, %v1091_v11, 0.0  ;;  %v1093_v16 = vpop.eup %1092 }
 0x352   : > { %753 = vadd.xlane.f32.xlu0 %v752_v12  ;;  %v694_v18 = vmul.f32 %v1093_v16, %v1085_v46 }
 0x354   : > { %v695_v23 = vpack.c.bf16 %v694_v18, %v694_v18 }
 0x35a   : > { %696 = vrot.lane.b32.xlu2 %v1343_v15, %s1216_s24 }
 0x366   : > { %758 = vrot.lane.b32.xlu0 %v1343_v15, %s1217_s25 }
 0x3b5   : > { %v630_v14 = vpop.xlane.xlu2 %629 }
 0x3b6   : > { %1094 = vrcp.f32 %v630_v14 }
 0x3bc   : > { %v1095_v17 = vpop.eup %1094 }
 0x3bd   : > { %v632_v19 = vmul.f32 %v1095_v17, %v1089_v3  ;;  %v697_v20 = vpop.permute.xlu2 %696 }
 0x3be   : > { %v702_v21 = vsel %vm580_vm2, %v697_v20, 0 }
 0x3bf   : > { %711 = vmatpush.bf16.msrb.mxu2 %v702_v21  ;;  %v633_v22 = vpack.c.bf16 %v632_v19, %v632_v19 }
 0x3c1   : > { %1004 = vmatmul.msk.bf16.vlgmr.msrb.gmra.mxu0 %vm542_vm1, %v633_v22 }
 0x3c2   : > { %1006 = vmatmul.msk.bf16.vlgmr.msrb.gmra.mxu2 %vm542_vm1, %v695_v23 }
 0x3c5   : > { %v754_v24 = vpop.xlane.xlu0 %753 }
 0x3c6   : > { %1096 = vrcp.f32 %v754_v24 }
 0x3c7   : > { %1098 = vrcp.f32 %v1221_v48 }
 0x3cc   : > { %v1097_v15 = vpop.eup %1096 }
 0x3cd   : > { %v756_v25 = vmul.f32 %v1097_v15, %v1091_v11  ;;  %v1099_v49 = vpop.eup %1098 }
 0x3ce   : > { %v830_v50 = vmul.f32 32.0, %v1099_v49  ;;  %vm834_vm6 = vweird.f32 %v1099_v49 }
 0x3cf   : > { %v757_v28 = vpack.c.bf16 %v756_v25, %v756_v25 }
 0x3d0   : > { %v831_v51 = vsub.f32 1.0, %v830_v50 }
 0x3d2   : > { %v832_v52 = vmul.f32 %v1099_v49, %v831_v51 }
 0x3d4   : > { %v833_v53 = vadd.f32 %v1099_v49, %v832_v52 }
 0x3d6   : > { %v835_v54 = vsel %vm834_vm6, %v1099_v49, %v833_v53 }
 0x3d8   : > { %v759_v26 = vpop.permute.xlu0 %758 }
 0x3d9   : > { %v764_v27 = vsel %vm580_vm2, %v759_v26, 0 }
 0x3da   : > { %773 = vmatpush.bf16.msra.mxu0 %v764_v27 }
 0x3dd   : > { %1008 = vmatmul.msk.bf16.vlgmr.msra.gmra.mxu0 %vm542_vm1, %v757_v28 }
 0x43e   : > { %v651_v29 = vpop.f32.mrf.mxu0 }
 0x43f   : > { %656 = vrot.lane.b32.xlu1 %v651_v29, %s1218_s26 }
 0x445   : > { %v713_v30 = vpop.f32.mrf.mxu2 }
 0x446   : > { %v653_v31 = vpop.f32.mrf.mxu0 }
 0x447   : > { %718 = vrot.lane.b32.xlu1 %v713_v30, %s1219_s27 }
 0x44d   : > { %v715_v32 = vpop.f32.mrf.mxu2 }
 0x45a   : > { %v775_v33 = vpop.f32.mrf.mxu0 }
 0x45b   : > { %780 = vrot.lane.b32.xlu2 %v775_v33, %s1220_s28 }
 0x462   : > { %v777_v34 = vpop.f32.mrf.mxu0 }
 0x4b1   : > { %v657_v37 = vpop.permute.xlu1 %656 }
 0x4b2   : > { %660 = vst.msk [vmem:[#allocation2] sm:$0xff] %vm659_vm3, %v657_v37 }
 0x4b5   : > { %v781_v39 = vpop.permute.xlu2 %780 }
 0x4b9   : > { %v719_v38 = vpop.permute.xlu1 %718 }
 0x4ba   : > { %722 = vst.msk [vmem:[#allocation2] sm:$0xff] %vm721_vm4, %v719_v38 }
 0x4bb   : > { %784 = vst.msk [vmem:[#allocation2] sm:$0xff] %vm783_vm5, %v781_v39 }
 0x4c2   : > { %v785_v40 = vld [vmem:[#allocation2] sm:$0xff] }
 0x4c3   : > { %v786_v41 = vpack.c.bf16 %v785_v40, %v785_v40 }
 0x4c5   : > { %1017 = vmatmul.msk.bf16.vlgmr.msra.gmra.mxu1 %vm481_vm0, %v786_v41 }
 0x542   : > { %v819_v43 = vpop.f32.mrf.mxu1 }
 0x543   : > { %v820_v44 = vadd.f32 %v1079_v42, %v819_v43 }
 0x545   : > { %v823_v45 = vadd.f32 %v820_v44, %v1337_v4 }
 0x547   : > { %v826_v46 = vsel %vm481_vm0, %v823_v45, 0.0 }
 0x548   : > { %827 = vadd.xlane.f32.xlu0 %v826_v46 }
 0x54a   : > { %v821_v47 = vpop.f32.mrf.mxu1 }
 0x5bb   : > { %v828_v55 = vpop.xlane.xlu0 %827 }
 0x5bc   : > { %v836_v56 = vmul.f32 %v835_v54, %v828_v55 }
 0x5be   : > { %v837_v57 = vsub.f32 %v823_v45, %v836_v56 }
 0x5c0   : > { %v838_v58 = vmul.f32 %v837_v57, %v837_v57 }
 0x5c2   : > { %v839_v59 = vsel %vm481_vm0, %v838_v58, 0.0 }
 0x5c3   : > { %840 = vadd.xlane.f32.xlu1 %v839_v59 }
 0x636   : > { %v841_v4 = vpop.xlane.xlu1 %840 }
 0x637   : > { %v842_v60 = vmul.f32 %v841_v4, %v835_v54 }
 0x639   : > { %v843_v61 = vadd.f32 1e-05, %v842_v60 }
 0x63b   : > { %1100 = vrsqrt.f32 %v843_v61  ;;  %vm850_vm8 = vweird.f32 %v843_v61 }
 0x641   : > { %v1101_v62 = vpop.eup %1100 }
 0x642   : > { %v845_v63 = vmul.f32 %v1101_v62, %v843_v61  ;;  %vm851_vm7 = vweird.f32 %v1101_v62 }
 0x643   : > { %vm852_vm9 = vmor %vm850_vm8, %vm851_vm7 }
 0x644   : > { %v846_v0 = vmul.f32 %v1101_v62, %v845_v63 }
 0x646   : > { %v847_v1 = vmul.f32 0.5, %v846_v0 }
 0x648   : > { %v848_v2 = vsub.f32 1.5, %v847_v1 }
 0x64a   : > { %v849_v3 = vmul.f32 %v1101_v62, %v848_v2 }
 0x64c   : > { %v853_v6 = vsel %vm852_vm9, %v1101_v62, %v849_v3 }
 0x64d   : > { %v854_v8 = vmul.f32 %v853_v6, %v837_v57 }
 0x64f   : > { %v858_v9 = vmul.f32 %v1080_v5, %v854_v8 }
 0x651   : > { %v862_v10 = vadd.f32 %v1081_v7, %v858_v9 }
 0x653   : > { %863 = vst.msk [vmem:[%s456_s23] sm:$0xff] %vm481_vm0, %v862_v10 }
 0x654 PF: > { %s23_s17 = sadd.s32 1, %s1206_s17  }
 0x655   : > { %p20_p7 = scmp.ge.s32.totalorder %s23_s17, 4  }
 0x657   :  { %22 = sbr.rel (!%p20_p7) target bundleno = 2 (0x2), region = 113 }
 0x65c   :  { %883 = vsyncpa [#allocation4], 1 }
 0x65d   :  { %885 = vsyncpa [#allocation4 + $0x1], 1 }
 0x65e   :  { %886 = vsyncpa [#allocation6], 1 }

// kernel: transformer_forward.18
= control target key start
LH: loop header
LB: loop body
LE: loop exit
PB: predicated region body
PF: predicated region fallthrough
CT: control target
= control target key end

     0   :  { %12 = vsyncpa [#allocation3], 0  ;;  %s788_s0 = inlined_call_operand.vmem [shape: f32[16,32], index: 0, kind: input, shape index: {}]   ;;  %s789_s1 = inlined_call_operand.vmem [shape: bf16[32,64], index: 1, kind: input, shape index: {}]   ;;  %s790_s2 = inlined_call_operand.hbm [shape: f32[1,64], index: 2, kind: input, shape index: {}]   ;;  %s791_s3 = inlined_call_operand.vmem [shape: bf16[64,32], index: 3, kind: input, shape index: {}]   ;;  %s792_s4 = inlined_call_operand.hbm [shape: f32[1,32], index: 4, kind: input, shape index: {}]   ;;  %s793_s5 = inlined_call_operand.vmem [shape: f32[1,32], index: 5, kind: input, shape index: {}]   ;;  %s794_s6 = inlined_call_operand.vmem [shape: f32[1,32], index: 6, kind: input, shape index: {}]   ;;  %s795_s7 = inlined_call_operand.vmem [shape: f32[16,32], index: 7, kind: output, shape index: {}]  }
   0x1   :  { %13 = vsyncpa [#allocation5], 0  ;;  %s717_s24 = smov 0  }
   0x2 LB: > { %s217_s27 = sshll.u32 %s790_s2, 4  ;;  %s515_s28 = sadd.s32 4294967295, %s672_s24   ;;  %s672_s24 = sphi %s717_s24, %s19_s24   ;;  %s218_s27 = int_to_ptr.hbm [resolvable:$true] %s217_s27 }
   0x3   : > { %p517_p0 = scmp.ge.s32.totalorder %s672_s24, 1  ;;  %p202_p1 = scmp.lt.s32.totalorder %s672_s24, 3 }
   0x4   : > { %p575_p2 = scmp.eq.s32.totalorder %s515_s28, 0  ;;  %s674_s30 = smov [#allocation2]  }
   0x5   : > { %p728_p3 = pnand %p517_p0, %p202_p1  ;;  %s219_s8 = sshll.u32 %s674_s30, 4  ;;  %s220_s8 = int_to_ptr.vmem [resolvable:$true] %s219_s8 }
   0x6   : > { %s232_s11 = sshll.u32 %s792_s4, 4  ;;  %s675_s12 = smov [#allocation4]   ;;  %s233_s11 = int_to_ptr.hbm [resolvable:$true] %s232_s11 }
   0x7   : > { %p568_p4 = pneg %p728_p3  ;;  %s234_s13 = sshll.u32 %s675_s12, 4  ;;  %s235_s13 = int_to_ptr.vmem [resolvable:$true] %s234_s13 }
   0x8   : > { %260 = sbr.rel (%p728_p3) target bundleno = 555 (0x22b), region = 48 }
   0x9   : > { %p569_p5 = pnand %p575_p2, %p568_p4 }
   0xb   : > { %571 = dma.hbm_to_vmem [thread:$0]  (!%p569_p5), %s218_s27, 16, %s220_s8, [#allocation3]  }
   0xc   : > { %574 = dma.hbm_to_vmem [thread:$0]  (!%p569_p5), %s233_s11, 16, %s235_s13, [#allocation5]  }
   0xd   : > { %663 = dma.done.wait (%p575_p2), [#allocation3], 16  }
   0xe   : > { %665 = vsyncadd (%p575_p2), [#allocation3], 4294967280 }
   0xf   : > { %667 = dma.done.wait (%p575_p2), [#allocation5], 16  }
  0x10   : > { %669 = vsyncadd (%p575_p2), [#allocation5], 4294967280  ;;  %p296_p6 = scmp.lt.s32.totalorder %s515_s28, 1  ;;  %v555_v0 = vld [vmem:[%s789_s1 + $0x8] sm:$0xff]  ;;  %v554_v1 = vld [vmem:[%s789_s1] sm:$0xff]  ;;  %vm327_vm0 = vcmask 261120  }
  0x11   : > { %v559_v2 = vld [vmem:[%s791_s3 + $0x18] sm:$0xff]  ;;  %337 = vmatpush.bf16.msra.mxu0 %v555_v0  ;;  %v558_v4 = vld [vmem:[%s791_s3 + $0x10] sm:$0xff]  ;;  %v557_v6 = vld [vmem:[%s791_s3 + $0x8] sm:$0xff]  ;;  %vm382_vm1 = vcmask 523264   ;;  %v676_v20 = vmov 32.0  }
  0x12   : > { %s798_s28 = smov (!%p296_p6, %s515_s28), 1  ;;  %390 = vmatpush.bf16.msra.mxu1 %v559_v2  ;;  %v556_v7 = vld [vmem:[%s791_s3] sm:$0xff]  ;;  %v590_v8 = vld [vmem:[#allocation2] ss:$0 sm:$0xff]  ;;  %v591_v14 = vld [vmem:[#allocation4] ss:$0 sm:$0xff]  ;;  %594 = vrcp.f32 %v676_v20 }
  0x13   : > { %s524_s14 = sshll.u32 %s798_s28, 3  ;;  %v592_v41 = vld [vmem:[%s793_s5] ss:$0 sm:$0xff] }
  0x14   : > { %s299_s17 = scalar_lea.vmem %s788_s0, %s524_s14  ;;  %v593_v43 = vld [vmem:[%s794_s6] ss:$0 sm:$0xff]  ;;  %s303_s16 = scalar_lea.vmem %s795_s7, %s524_s14 }
  0x15   : > { %v305_v3 = vld [vmem:[%s299_s17] sm:$0xff]  ;;  %338 = vmatpush.bf16.msra.mxu0 %v554_v1 }
  0x16   : > { %v306_v5 = vpack.c.bf16 %v305_v3, %v305_v3  ;;  %391 = vmatpush.bf16.msra.mxu1 %v558_v4 }
  0x18   : > { %534 = vmatmul.msk.bf16.vlgmr.msra.gmra.mxu0 %vm327_vm0, %v306_v5  ;;  %v595_v21 = vpop.eup %594 }
  0x19   : > { %v406_v22 = vmul.f32 32.0, %v595_v21  ;;  %vm410_vm2 = vweird.f32 %v595_v21 }
  0x1a   : > { %392 = vmatpush.bf16.msra.mxu1 %v557_v6 }
  0x1b   : > { %v407_v23 = vsub.f32 1.0, %v406_v22 }
  0x1d   : > { %v408_v24 = vmul.f32 %v595_v21, %v407_v23 }
  0x1e   : > { %393 = vmatpush.bf16.msra.mxu1 %v556_v7 }
  0x1f   : > { %v409_v25 = vadd.f32 %v595_v21, %v408_v24 }
  0x21   : > { %v411_v26 = vsel %vm410_vm2, %v595_v21, %v409_v25 }
  0x95   : > { %v340_v9 = vpop.f32.mrf.mxu0 }
  0x96   : > { %v341_v10 = vadd.f32 %v590_v8, %v340_v9 }
  0x98   : > { %v344_v11 = vmax.f32 %v341_v10, 0.0 }
  0x9a   : > { %v345_v12 = vpack.c.bf16 %v344_v11, %v344_v11 }
  0x9c   : > { %551 = vmatmul.msk.bf16.vlgmr.msra.gmra.mxu1 %vm382_vm1, %v345_v12 }
  0x9d   : > { %v342_v13 = vpop.f32.mrf.mxu0 }
 0x119   : > { %v395_v15 = vpop.f32.mrf.mxu1 }
 0x11a   : > { %v396_v16 = vadd.f32 %v591_v14, %v395_v15 }
 0x11c   : > { %v399_v17 = vadd.f32 %v396_v16, %v305_v3 }
 0x11e   : > { %v402_v18 = vsel %vm327_vm0, %v399_v17, 0.0 }
 0x11f   : > { %403 = vadd.xlane.f32.xlu0 %v402_v18 }
 0x121   : > { %v397_v19 = vpop.f32.mrf.mxu1 }
 0x192   : > { %v404_v27 = vpop.xlane.xlu0 %403 }
 0x193   : > { %v412_v28 = vmul.f32 %v411_v26, %v404_v27 }
 0x195   : > { %v413_v29 = vsub.f32 %v399_v17, %v412_v28 }
 0x197   : > { %v414_v30 = vmul.f32 %v413_v29, %v413_v29 }
 0x199   : > { %v415_v31 = vsel %vm327_vm0, %v414_v30, 0.0 }
 0x19a   : > { %416 = vadd.xlane.f32.xlu0 %v415_v31 }
 0x20d   : > { %v417_v32 = vpop.xlane.xlu0 %416 }
 0x20e   : > { %v418_v33 = vmul.f32 %v417_v32, %v411_v26 }
 0x210   : > { %v419_v34 = vadd.f32 1e-05, %v418_v33 }
 0x212   : > { %596 = vrsqrt.f32 %v419_v34  ;;  %vm426_vm4 = vweird.f32 %v419_v34 }
 0x218   : > { %v597_v35 = vpop.eup %596 }
 0x219   : > { %v421_v36 = vmul.f32 %v597_v35, %v419_v34  ;;  %vm427_vm3 = vweird.f32 %v597_v35 }
 0x21a   : > { %vm428_vm5 = vmor %vm426_vm4, %vm427_vm3 }
 0x21b   : > { %v422_v37 = vmul.f32 %v597_v35, %v421_v36 }
 0x21d   : > { %v423_v38 = vmul.f32 0.5, %v422_v37 }
 0x21f   : > { %v424_v39 = vsub.f32 1.5, %v423_v38 }
 0x221   : > { %v425_v40 = vmul.f32 %v597_v35, %v424_v39 }
 0x223   : > { %v429_v42 = vsel %vm428_vm5, %v597_v35, %v425_v40 }
 0x224   : > { %v430_v44 = vmul.f32 %v429_v42, %v413_v29 }
 0x226   : > { %v434_v45 = vmul.f32 %v592_v41, %v430_v44 }
 0x228   : > { %v438_v46 = vadd.f32 %v593_v43, %v434_v45 }
 0x22a   : > { %439 = vst.msk [vmem:[%s303_s16] sm:$0xff] %vm327_vm0, %v438_v46 }
 0x22b PF: > { %s19_s24 = sadd.s32 1, %s672_s24  }
 0x22c   : > { %p16_p7 = scmp.ge.s32.totalorder %s19_s24, 4  }
 0x22e   :  { %18 = sbr.rel (!%p16_p7) target bundleno = 2 (0x2), region = 87 }
 0x233   :  { %459 = vsyncpa [#allocation3], 1 }
 0x234   :  { %461 = vsyncpa [#allocation3 + $0x1], 1 }
 0x235   :  { %462 = vsyncpa [#allocation5], 1 }

// kernel: transformer_forward.24
= control target key start
LH: loop header
LB: loop body
LE: loop exit
PB: predicated region body
PF: predicated region fallthrough
CT: control target
= control target key end

     0   :  { %s570_s24 = smov 0   ;;  %s628_s0 = inlined_call_operand.vmem [shape: f32[16,32], index: 0, kind: input, shape index: {}]   ;;  %s629_s1 = inlined_call_operand.vmem [shape: bf16[32,64], index: 1, kind: input, shape index: {}]   ;;  %s630_s2 = inlined_call_operand.vmem [shape: f32[1,64], index: 2, kind: input, shape index: {}]   ;;  %s631_s3 = inlined_call_operand.vmem [shape: bf16[64,32], index: 3, kind: input, shape index: {}]   ;;  %s632_s4 = inlined_call_operand.vmem [shape: f32[1,32], index: 4, kind: input, shape index: {}]   ;;  %s633_s5 = inlined_call_operand.vmem [shape: f32[1,32], index: 5, kind: input, shape index: {}]   ;;  %s634_s6 = inlined_call_operand.vmem [shape: f32[1,32], index: 6, kind: input, shape index: {}]   ;;  %s635_s7 = inlined_call_operand.vmem [shape: f32[16,32], index: 7, kind: output, shape index: {}]  }
   0x1 LB: > { %s463_s25 = sadd.s32 4294967295, %s527_s24   ;;  %p467_p0 = scmp.ge.s32.totalorder %s527_s24, 1  ;;  %s527_s24 = sphi %s570_s24, %s17_s24  }
   0x2   : > { %p236_p1 = scmp.lt.s32.totalorder %s527_s24, 3 }
   0x4   : > { %p237_p2 = pnand %p467_p0, %p236_p1 }
   0x5   : > { %p266_p3 = scmp.lt.s32.totalorder (!%p237_p2), %s463_s25, 1 }
   0x6   : > { %240 = sbr.rel (%p237_p2) target bundleno = 550 (0x226), region = 48 }
   0xb   : > { %v499_v0 = vld [vmem:[%s629_s1 + $0x8] sm:$0xff]  ;;  %v503_v1 = vld [vmem:[%s631_s3 + $0x18] sm:$0xff]  ;;  %v498_v2 = vld [vmem:[%s629_s1] sm:$0xff]  ;;  %s637_s25 = smov (!%p266_p3, %s463_s25), 1  ;;  %vm297_vm0 = vcmask 261120   ;;  %vm352_vm1 = vcmask 523264  }
   0xc   : > { %307 = vmatpush.bf16.msra.mxu0 %v499_v0  ;;  %360 = vmatpush.bf16.msra.mxu1 %v503_v1  ;;  %v502_v3 = vld [vmem:[%s631_s3 + $0x10] sm:$0xff]  ;;  %s468_s11 = sshll.u32 %s637_s25, 3  ;;  %v501_v6 = vld [vmem:[%s631_s3 + $0x8] sm:$0xff]  ;;  %v500_v7 = vld [vmem:[%s631_s3] sm:$0xff]  ;;  %v529_v20 = vmov 32.0  }
   0xd   : > { %s269_s14 = scalar_lea.vmem %s628_s0, %s468_s11  ;;  %v513_v8 = vld [vmem:[%s630_s2] ss:$0 sm:$0xff]  ;;  %517 = vrcp.f32 %v529_v20  ;;  %s273_s8 = scalar_lea.vmem %s635_s7, %s468_s11 }
   0xe   : > { %v275_v4 = vld [vmem:[%s269_s14] sm:$0xff] }
   0xf   : > { %v276_v5 = vpack.c.bf16 %v275_v4, %v275_v4  ;;  %v514_v14 = vld [vmem:[%s632_s4] ss:$0 sm:$0xff] }
  0x10   : > { %308 = vmatpush.bf16.msra.mxu0 %v498_v2  ;;  %361 = vmatpush.bf16.msra.mxu1 %v502_v3  ;;  %v515_v41 = vld [vmem:[%s633_s5] ss:$0 sm:$0xff] }
  0x11   : > { %v516_v43 = vld [vmem:[%s634_s6] ss:$0 sm:$0xff] }
  0x13   : > { %478 = vmatmul.msk.bf16.vlgmr.msra.gmra.mxu0 %vm297_vm0, %v276_v5  ;;  %v518_v21 = vpop.eup %517 }
  0x14   : > { %362 = vmatpush.bf16.msra.mxu1 %v501_v6  ;;  %v376_v22 = vmul.f32 32.0, %v518_v21  ;;  %vm380_vm2 = vweird.f32 %v518_v21 }
  0x16   : > { %v377_v23 = vsub.f32 1.0, %v376_v22 }
  0x18   : > { %363 = vmatpush.bf16.msra.mxu1 %v500_v7  ;;  %v378_v24 = vmul.f32 %v518_v21, %v377_v23 }
  0x1a   : > { %v379_v25 = vadd.f32 %v518_v21, %v378_v24 }
  0x1c   : > { %v381_v26 = vsel %vm380_vm2, %v518_v21, %v379_v25 }
  0x90   : > { %v310_v9 = vpop.f32.mrf.mxu0 }
  0x91   : > { %v311_v10 = vadd.f32 %v513_v8, %v310_v9 }
  0x93   : > { %v314_v11 = vmax.f32 %v311_v10, 0.0 }
  0x95   : > { %v315_v12 = vpack.c.bf16 %v314_v11, %v314_v11 }
  0x97   : > { %495 = vmatmul.msk.bf16.vlgmr.msra.gmra.mxu1 %vm352_vm1, %v315_v12 }
  0x98   : > { %v312_v13 = vpop.f32.mrf.mxu0 }
 0x114   : > { %v365_v15 = vpop.f32.mrf.mxu1 }
 0x115   : > { %v366_v16 = vadd.f32 %v514_v14, %v365_v15 }
 0x117   : > { %v369_v17 = vadd.f32 %v366_v16, %v275_v4 }
 0x119   : > { %v372_v18 = vsel %vm297_vm0, %v369_v17, 0.0 }
 0x11a   : > { %373 = vadd.xlane.f32.xlu0 %v372_v18 }
 0x11c   : > { %v367_v19 = vpop.f32.mrf.mxu1 }
 0x18d   : > { %v374_v27 = vpop.xlane.xlu0 %373 }
 0x18e   : > { %v382_v28 = vmul.f32 %v381_v26, %v374_v27 }
 0x190   : > { %v383_v29 = vsub.f32 %v369_v17, %v382_v28 }
 0x192   : > { %v384_v30 = vmul.f32 %v383_v29, %v383_v29 }
 0x194   : > { %v385_v31 = vsel %vm297_vm0, %v384_v30, 0.0 }
 0x195   : > { %386 = vadd.xlane.f32.xlu0 %v385_v31 }
 0x208   : > { %v387_v32 = vpop.xlane.xlu0 %386 }
 0x209   : > { %v388_v33 = vmul.f32 %v387_v32, %v381_v26 }
 0x20b   : > { %v389_v34 = vadd.f32 1e-05, %v388_v33 }
 0x20d   : > { %519 = vrsqrt.f32 %v389_v34  ;;  %vm396_vm4 = vweird.f32 %v389_v34 }
 0x213   : > { %v520_v35 = vpop.eup %519 }
 0x214   : > { %v391_v36 = vmul.f32 %v520_v35, %v389_v34  ;;  %vm397_vm3 = vweird.f32 %v520_v35 }
 0x215   : > { %vm398_vm5 = vmor %vm396_vm4, %vm397_vm3 }
 0x216   : > { %v392_v37 = vmul.f32 %v520_v35, %v391_v36 }
 0x218   : > { %v393_v38 = vmul.f32 0.5, %v392_v37 }
 0x21a   : > { %v394_v39 = vsub.f32 1.5, %v393_v38 }
 0x21c   : > { %v395_v40 = vmul.f32 %v520_v35, %v394_v39 }
 0x21e   : > { %v399_v42 = vsel %vm398_vm5, %v520_v35, %v395_v40 }
 0x21f   : > { %v400_v44 = vmul.f32 %v399_v42, %v383_v29 }
 0x221   : > { %v404_v45 = vmul.f32 %v515_v41, %v400_v44 }
 0x223   : > { %v408_v46 = vadd.f32 %v516_v43, %v404_v45 }
 0x225   : > { %409 = vst.msk [vmem:[%s273_s8] sm:$0xff] %vm297_vm0, %v408_v46 }
 0x226 PF: > { %s17_s24 = sadd.s32 1, %s527_s24  }
 0x227   : > { %p14_p4 = scmp.ge.s32.totalorder %s17_s24, 4  }
 0x229   :  { %16 = sbr.rel (!%p14_p4) target bundleno = 1 (0x1), region = 78 }

// kernel: transformer_forward.23
= control target key start
LH: loop header
LB: loop body
LE: loop exit
PB: predicated region body
PF: predicated region fallthrough
CT: control target
= control target key end

     0   :  { %s1069_s17 = smov 0   ;;  %s1182_s0 = inlined_call_operand.vmem [shape: f32[2,8,32], index: 0, kind: input, shape index: {}]   ;;  %s1183_s1 = inlined_call_operand.vmem [shape: f32[2,8,32], index: 1, kind: input, shape index: {}]   ;;  %s1184_s2 = inlined_call_operand.vmem [shape: bf16[32,32], index: 2, kind: input, shape index: {}]   ;;  %s1185_s3 = inlined_call_operand.vmem [shape: f32[1,32], index: 3, kind: input, shape index: {}]   ;;  %s1186_s4 = inlined_call_operand.vmem [shape: bf16[32,64], index: 4, kind: input, shape index: {}]   ;;  %s1187_s5 = inlined_call_operand.vmem [shape: f32[1,64], index: 5, kind: input, shape index: {}]   ;;  %s1188_s6 = inlined_call_operand.vmem [shape: bf16[32,32], index: 6, kind: input, shape index: {}]   ;;  %s1189_s7 = inlined_call_operand.vmem [shape: f32[1,32], index: 7, kind: input, shape index: {}]   ;;  %s1190_s8 = inlined_call_operand.vmem [shape: f32[2,1,8], index: 8, kind: input, shape index: {}]   ;;  %s1191_s9 = inlined_call_operand.vmem [shape: f32[1,32], index: 9, kind: input, shape index: {}]   ;;  %s1192_s10 = inlined_call_operand.vmem [shape: f32[1,32], index: 10, kind: input, shape index: {}]   ;;  %s1193_s11 = inlined_call_operand.vmem [shape: f32[2,8,32], index: 11, kind: output, shape index: {}]  }
   0x1 LB: > { %s894_s18 = sadd.s32 4294967295, %s996_s17   ;;  %p898_p0 = scmp.ge.s32.totalorder %s996_s17, 1  ;;  %s996_s17 = sphi %s1069_s17, %s21_s17  }
   0x2   : > { %p353_p1 = scmp.lt.s32.totalorder %s996_s17, 3 }
   0x4   : > { %p354_p2 = pnand %p898_p0, %p353_p1 }
   0x5   : > { %p398_p3 = scmp.lt.s32.totalorder (!%p354_p2), %s894_s18, 1  ;;  %s998_s21 = smov (!%p354_p2), 96  }
   0x6   : > { %357 = sbr.rel (%p354_p2) target bundleno = 1613 (0x64d), region = 64  ;;  %s999_s22 = smov (!%p354_p2), 120  }
   0x7   : > { %s1000_s26 = smov (!%p354_p2), 112   ;;  %s1001_s28 = smov (!%p354_p2), 104  }
   0x8   : > { %s1003_s29 = smov (!%p354_p2), 80   ;;  %s1005_s12 = smov (!%p354_p2), 8  }
   0x9   : > { %s1006_s13 = smov (!%p354_p2), 16  }
   0xb   : > { %v940_v0 = vld [vmem:[%s1184_s2 + $0x8] sm:$0xff]  ;;  %v939_v2 = vld [vmem:[%s1184_s2] sm:$0xff]  ;;  %s1195_s18 = smov (!%p398_p3, %s894_s18), 1  ;;  %vm437_vm0 = vcmask 261120   ;;  %vm498_vm1 = vcmask 64512   ;;  %vm536_vm2 = vcmask 1043456  }
   0xc   : > { %v942_v1 = vld [vmem:[%s1186_s4 + $0x8] sm:$0xff]  ;;  %447 = vmatpush.bf16.msra.mxu0 %v940_v0  ;;  %v941_v3 = vld [vmem:[%s1186_s4] sm:$0xff]  ;;  %s1092_s27 = sshll.u32 %s1195_s18, 3  ;;  %s408_s25 = scalar_lea.vmem %s1190_s8, %s1195_s18  ;;  %vm615_vm3 = vcmask 130112   ;;  %vm677_vm4 = vcmask 195712   ;;  %vm739_vm5 = vcmask 261312  }
   0xd   : > { %484 = vmatpush.bf16.msra.mxu1 %v942_v1  ;;  %s401_s30 = scalar_lea.vmem %s1182_s0, %s1092_s27  ;;  %s405_s14 = scalar_lea.vmem %s1183_s1, %s1092_s27  ;;  %v964_v8 = vld [vmem:[%s1185_s3] ss:$0 sm:$0xff] }
   0xe   : > { %v1098_v4 = vld [vmem:[%s401_s30] sm:$0xff]  ;;  %s1002_s18 = smov 88   ;;  %s1004_s30 = smov 72  }
   0xf   : > { %v416_v5 = vpack.c.bf16 %v1098_v4, %v1098_v4  ;;  %v415_v6 = vld [vmem:[%s405_s14] sm:$0xff]  ;;  %s1007_s14 = smov 24  }
  0x10   : > { %448 = vmatpush.bf16.msra.mxu0 %v939_v2  ;;  %v454_v7 = vpack.c.bf16 %v415_v6, %v415_v6  ;;  %v965_v9 = vld [vmem:[%s1187_s5] ss:$0 sm:$0xff] }
  0x11   : > { %485 = vmatpush.bf16.msra.mxu1 %v941_v3  ;;  %v966_v28 = vld [vmem:[%s408_s25] ss:$0 sm:$0xff] }
  0x13   : > { %910 = vmatmul.msk.bf16.vlgmr.msra.gmra.mxu0 %vm437_vm0, %v416_v5 }
  0x14   : > { %919 = vmatmul.msk.bf16.vlgmr.msra.gmra.mxu1 %vm437_vm0, %v454_v7 }
  0x90   : > { %v450_v10 = vpop.f32.mrf.mxu0 }
  0x91   : > { %v451_v11 = vadd.f32 %v964_v8, %v450_v10  ;;  %v487_v12 = vpop.f32.mrf.mxu1 }
  0x92   : > { %v488_v13 = vadd.f32 %v965_v9, %v487_v12 }
  0x93   : > { %v492_v14 = vmul.f32 0.35355338, %v451_v11 }
  0x94   : > { %v1114_v15 = vpack.c.bf16 %v488_v13, %v488_v13 }
  0x95   : > { %v493_v16 = vpack.c.bf16 %v492_v14, %v492_v14 }
  0x96   : > { %531 = vrot.lane.b32.xlu1 %v1114_v15, %s998_s21  ;;  %v503_v17 = vsel %vm498_vm1, %v1114_v15, 0 }
  0x97   : > { %512 = vmatpush.bf16.xpose.msra.mxu2 %v503_v17  ;;  %555 = vrot.lane.b32.xlu2 %v493_v16, %s999_s22 }
  0x98   : > { %v452_v18 = vpop.f32.mrf.mxu0 }
  0x99   : > { %v489_v19 = vpop.f32.mrf.mxu1 }
  0x9e   : > { %557 = vrot.lane.b32.xlu1 %v1114_v15, %s999_s22  ;;  %920 = vmatmul.msk.bf16.vlgmr.msra.gmra.mxu2 %vm498_vm1, %v493_v16 }
  0x9f   : > { %619 = vrot.lane.b32.xlu2 %v1114_v15, %s1000_s26 }
  0xa6   : > { %617 = vrot.lane.b32.xlu1 %v493_v16, %s1000_s26 }
  0xa7   : > { %679 = vrot.lane.b32.xlu2 %v493_v16, %s1001_s28 }
  0xf1   : > { %v556_v20 = vpop.permute.xlu2 %555 }
  0xf9   : > { %v620_v21 = vpop.permute.xlu2 %619 }
  0xfa   : > { %v625_v22 = vsel %vm498_vm1, %v620_v21, 0 }
  0xfb   : > { %634 = vmatpush.bf16.xpose.msrb.mxu1 %v625_v22 }
 0x101   : > { %v680_v42 = vpop.permute.xlu2 %679 }
 0x108   : > { %v532_v23 = vpop.permute.xlu1 %531 }
 0x109   : > { %v538_v24 = vsel %vm536_vm2, %v532_v23, 0 }
 0x10a   : > { %547 = vmatpush.bf16.msra.mxu3 %v538_v24 }
 0x110   : > { %v558_v25 = vpop.permute.xlu1 %557 }
 0x111   : > { %v563_v26 = vsel %vm498_vm1, %v558_v25, 0 }
 0x112   : > { %572 = vmatpush.bf16.xpose.msrb.mxu3 %v563_v26 }
 0x118   : > { %v618_v27 = vpop.permute.xlu1 %617 }
 0x119   : > { %924 = vmatmul.msk.bf16.vlgmr.msrb.gmra.mxu1 %vm498_vm1, %v618_v27 }
 0x121   : > { %v514_v29 = vpop.f32.mrf.mxu2 }
 0x122   : > { %v515_v30 = vadd.f32 %v966_v28, %v514_v29 }
 0x124   : > { %v518_v31 = vsel %vm498_vm1, %v515_v30, -inf }
 0x125   : > { %519 = vmax.xlane.f32.xlu0 %v518_v31 }
 0x129   : > { %v516_v32 = vpop.f32.mrf.mxu2 }
 0x196   : > { %v636_v33 = vpop.f32.mrf.mxu1 }
 0x197   : > { %v637_v34 = vadd.f32 %v966_v28, %v636_v33 }
 0x198   : > { %v520_v35 = vpop.xlane.xlu0 %519 }
 0x199   : > { %v521_v36 = vsub.f32 %v515_v30, %v520_v35  ;;  %v640_v37 = vsel %vm498_vm1, %v637_v34, -inf  ;;  %v944_v35 = vld [vmem:[%s1188_s6 + $0x8] sm:$0xff] }
 0x19a   : > { %641 = vmax.xlane.f32.xlu2 %v640_v37  ;;  %772 = vmatpush.bf16.msra.mxu1 %v944_v35 }
 0x19b   : > { %v522_v38 = vmul.f32 1.442695, %v521_v36  ;;  %v943_v36 = vld [vmem:[%s1188_s6] sm:$0xff] }
 0x19d   : > { %970 = vpow2.f32 %v522_v38 }
 0x19e   : > { %v638_v39 = vpop.f32.mrf.mxu1  ;;  %773 = vmatpush.bf16.msra.mxu1 %v943_v36 }
 0x1a3   : > { %v971_v40 = vpop.eup %970 }
 0x1a4   : > { %v524_v41 = vsel %vm498_vm1, %v971_v40, 0.0 }
 0x1a5   : > { %525 = vadd.xlane.f32.xlu0 %v524_v41 }
 0x1b9   : > { %681 = vrot.lane.b32.xlu0 %v1114_v15, %s1001_s28 }
 0x20d   : > { %v642_v43 = vpop.xlane.xlu2 %641 }
 0x20e   : > { %v643_v44 = vsub.f32 %v637_v34, %v642_v43 }
 0x210   : > { %v644_v45 = vmul.f32 1.442695, %v643_v44 }
 0x212   : > { %972 = vpow2.f32 %v644_v45 }
 0x218   : > { %v973_v46 = vpop.eup %972  ;;  %v526_v47 = vpop.xlane.xlu0 %525 }
 0x219   : > { %974 = vrcp.f32 %v526_v47  ;;  %v646_v48 = vsel %vm498_vm1, %v973_v46, 0.0 }
 0x21a   : > { %647 = vadd.xlane.f32.xlu2 %v646_v48  ;;  %v1008_v48 = vmov 32.0  }
 0x21f   : > { %v975_v49 = vpop.eup %974 }
 0x220   : > { %v528_v50 = vmul.f32 %v975_v49, %v971_v40 }
 0x222   : > { %v529_v51 = vpack.c.bf16 %v528_v50, %v528_v50 }
 0x224   : > { %921 = vmatmul.msk.bf16.vlgmr.msra.gmra.mxu3 %vm498_vm1, %v529_v51 }
 0x22b   : > { %v682_v52 = vpop.permute.xlu0 %681 }
 0x22c   : > { %v687_v53 = vsel %vm498_vm1, %v682_v52, 0 }
 0x22d   : > { %696 = vmatpush.bf16.xpose.msra.mxu3 %v687_v53 }
 0x234   : > { %922 = vmatmul.msk.bf16.vlgmr.msrb.gmra.mxu3 %vm498_vm1, %v556_v20 }
 0x244   : > { %926 = vmatmul.msk.bf16.vlgmr.msra.gmra.mxu3 %vm498_vm1, %v680_v42  ;;  %v967_v42 = vld [vmem:[%s1189_s7] ss:$0 sm:$0xff] }
 0x28d   : > { %v648_v13 = vpop.xlane.xlu2 %647 }
 0x2a7   : > { %v549_v54 = vpop.f32.mrf.mxu3 }
 0x2a8   : > { %553 = vst.msk [vmem:[#allocation2] sm:$0xff] %vm498_vm1, %v549_v54 }
 0x2af   : > { %v551_v55 = vpop.f32.mrf.mxu3 }
 0x2b7   : > { %v574_v56 = vpop.f32.mrf.mxu3 }
 0x2b8   : > { %v575_v57 = vadd.f32 %v966_v28, %v574_v56 }
 0x2ba   : > { %v578_v58 = vsel %vm498_vm1, %v575_v57, -inf }
 0x2bb   : > { %579 = vmax.xlane.f32.xlu1 %v578_v58 }
 0x2bf   : > { %v576_v59 = vpop.f32.mrf.mxu3 }
 0x2c7   : > { %v698_v60 = vpop.f32.mrf.mxu3 }
 0x2c8   : > { %v699_v61 = vadd.f32 %v966_v28, %v698_v60 }
 0x2ca   : > { %v702_v62 = vsel %vm498_vm1, %v699_v61, -inf }
 0x2cb   : > { %703 = vmax.xlane.f32.xlu0 %v702_v62 }
 0x2cf   : > { %v700_v63 = vpop.f32.mrf.mxu3 }
 0x2d4   : > { %590 = vrot.lane.b32.xlu1 %v1114_v15, %s1002_s18 }
 0x32e   : > { %v580_v0 = vpop.xlane.xlu1 %579 }
 0x32f   : > { %v581_v1 = vsub.f32 %v575_v57, %v580_v0 }
 0x331   : > { %v582_v2 = vmul.f32 1.442695, %v581_v1 }
 0x333   : > { %976 = vpow2.f32 %v582_v2 }
 0x339   : > { %v977_v3 = vpop.eup %976 }
 0x33a   : > { %v584_v5 = vsel %vm498_vm1, %v977_v3, 0.0 }
 0x33b   : > { %585 = vadd.xlane.f32.xlu2 %v584_v5  ;;  %v968_v5 = vld [vmem:[%s1191_s9] ss:$0 sm:$0xff] }
 0x33e   : > { %v704_v6 = vpop.xlane.xlu0 %703 }
 0x33f   : > { %v705_v7 = vsub.f32 %v699_v61, %v704_v6 }
 0x341   : > { %v706_v8 = vmul.f32 1.442695, %v705_v7  ;;  %v969_v7 = vld [vmem:[%s1192_s10] ss:$0 sm:$0xff] }
 0x343   : > { %978 = vpow2.f32 %v706_v8 }
 0x344   : > { %980 = vrcp.f32 %v648_v13 }
 0x346   : > { %v591_v9 = vpop.permute.xlu1 %590 }
 0x347   : > { %v596_v10 = vsel %vm536_vm2, %v591_v9, 0 }
 0x348   : > { %605 = vmatpush.bf16.msrb.mxu0 %v596_v10 }
 0x349   : > { %v979_v11 = vpop.eup %978 }
 0x34a   : > { %v708_v12 = vsel %vm498_vm1, %v979_v11, 0.0  ;;  %v981_v16 = vpop.eup %980 }
 0x34b   : > { %709 = vadd.xlane.f32.xlu0 %v708_v12  ;;  %v650_v18 = vmul.f32 %v981_v16, %v973_v46 }
 0x34d   : > { %v651_v23 = vpack.c.bf16 %v650_v18, %v650_v18 }
 0x353   : > { %652 = vrot.lane.b32.xlu2 %v1114_v15, %s1003_s29  ;;  %s412_s29 = scalar_lea.vmem %s1193_s11, %s1092_s27 }
 0x35f   : > { %714 = vrot.lane.b32.xlu0 %v1114_v15, %s1004_s30 }
 0x3ae   : > { %v586_v14 = vpop.xlane.xlu2 %585 }
 0x3af   : > { %982 = vrcp.f32 %v586_v14 }
 0x3b5   : > { %v983_v17 = vpop.eup %982 }
 0x3b6   : > { %v588_v19 = vmul.f32 %v983_v17, %v977_v3  ;;  %v653_v20 = vpop.permute.xlu2 %652 }
 0x3b7   : > { %v658_v21 = vsel %vm536_vm2, %v653_v20, 0 }
 0x3b8   : > { %667 = vmatpush.bf16.msrb.mxu2 %v658_v21  ;;  %v589_v22 = vpack.c.bf16 %v588_v19, %v588_v19 }
 0x3ba   : > { %923 = vmatmul.msk.bf16.vlgmr.msrb.gmra.mxu0 %vm498_vm1, %v589_v22 }
 0x3bb   : > { %925 = vmatmul.msk.bf16.vlgmr.msrb.gmra.mxu2 %vm498_vm1, %v651_v23 }
 0x3be   : > { %v710_v24 = vpop.xlane.xlu0 %709 }
 0x3bf   : > { %984 = vrcp.f32 %v710_v24 }
 0x3c0   : > { %986 = vrcp.f32 %v1008_v48 }
 0x3c5   : > { %v985_v15 = vpop.eup %984 }
 0x3c6   : > { %v712_v25 = vmul.f32 %v985_v15, %v979_v11  ;;  %v987_v49 = vpop.eup %986 }
 0x3c7   : > { %v786_v50 = vmul.f32 32.0, %v987_v49  ;;  %vm790_vm6 = vweird.f32 %v987_v49 }
 0x3c8   : > { %v713_v28 = vpack.c.bf16 %v712_v25, %v712_v25 }
 0x3c9   : > { %v787_v51 = vsub.f32 1.0, %v786_v50 }
 0x3cb   : > { %v788_v52 = vmul.f32 %v987_v49, %v787_v51 }
 0x3cd   : > { %v789_v53 = vadd.f32 %v987_v49, %v788_v52 }
 0x3cf   : > { %v791_v54 = vsel %vm790_vm6, %v987_v49, %v789_v53 }
 0x3d1   : > { %v715_v26 = vpop.permute.xlu0 %714 }
 0x3d2   : > { %v720_v27 = vsel %vm536_vm2, %v715_v26, 0 }
 0x3d3   : > { %729 = vmatpush.bf16.msra.mxu0 %v720_v27 }
 0x3d6   : > { %927 = vmatmul.msk.bf16.vlgmr.msra.gmra.mxu0 %vm498_vm1, %v713_v28 }
 0x437   : > { %v607_v29 = vpop.f32.mrf.mxu0 }
 0x438   : > { %612 = vrot.lane.b32.xlu1 %v607_v29, %s1005_s12 }
 0x43e   : > { %v669_v30 = vpop.f32.mrf.mxu2 }
 0x43f   : > { %v609_v31 = vpop.f32.mrf.mxu0 }
 0x440   : > { %674 = vrot.lane.b32.xlu1 %v669_v30, %s1006_s13 }
 0x446   : > { %v671_v32 = vpop.f32.mrf.mxu2 }
 0x453   : > { %v731_v33 = vpop.f32.mrf.mxu0 }
 0x454   : > { %736 = vrot.lane.b32.xlu2 %v731_v33, %s1007_s14 }
 0x45b   : > { %v733_v34 = vpop.f32.mrf.mxu0 }
 0x4aa   : > { %v613_v37 = vpop.permute.xlu1 %612 }
 0x4ab   : > { %616 = vst.msk [vmem:[#allocation2] sm:$0xff] %vm615_vm3, %v613_v37 }
 0x4ae   : > { %v737_v39 = vpop.permute.xlu2 %736 }
 0x4b2   : > { %v675_v38 = vpop.permute.xlu1 %674 }
 0x4b3   : > { %678 = vst.msk [vmem:[#allocation2] sm:$0xff] %vm677_vm4, %v675_v38 }
 0x4b4   : > { %740 = vst.msk [vmem:[#allocation2] sm:$0xff] %vm739_vm5, %v737_v39 }
 0x4bb   : > { %v741_v40 = vld [vmem:[#allocation2] sm:$0xff] }
 0x4bc   : > { %v742_v41 = vpack.c.bf16 %v741_v40, %v741_v40 }
 0x4be   : > { %936 = vmatmul.msk.bf16.vlgmr.msra.gmra.mxu1 %vm437_vm0, %v742_v41 }
 0x53b   : > { %v775_v43 = vpop.f32.mrf.mxu1 }
 0x53c   : > { %v776_v44 = vadd.f32 %v967_v42, %v775_v43 }
 0x53e   : > { %v779_v45 = vadd.f32 %v776_v44, %v1098_v4 }
 0x540   : > { %v782_v46 = vsel %vm437_vm0, %v779_v45, 0.0 }
 0x541   : > { %783 = vadd.xlane.f32.xlu0 %v782_v46 }
 0x543   : > { %v777_v47 = vpop.f32.mrf.mxu1 }
 0x5b4   : > { %v784_v55 = vpop.xlane.xlu0 %783 }
 0x5b5   : > { %v792_v56 = vmul.f32 %v791_v54, %v784_v55 }
 0x5b7   : > { %v793_v57 = vsub.f32 %v779_v45, %v792_v56 }
 0x5b9   : > { %v794_v58 = vmul.f32 %v793_v57, %v793_v57 }
 0x5bb   : > { %v795_v59 = vsel %vm437_vm0, %v794_v58, 0.0 }
 0x5bc   : > { %796 = vadd.xlane.f32.xlu1 %v795_v59 }
 0x62f   : > { %v797_v4 = vpop.xlane.xlu1 %796 }
 0x630   : > { %v798_v60 = vmul.f32 %v797_v4, %v791_v54 }
 0x632   : > { %v799_v61 = vadd.f32 1e-05, %v798_v60 }
 0x634   : > { %988 = vrsqrt.f32 %v799_v61  ;;  %vm806_vm8 = vweird.f32 %v799_v61 }
 0x63a   : > { %v989_v62 = vpop.eup %988 }
 0x63b   : > { %v801_v63 = vmul.f32 %v989_v62, %v799_v61  ;;  %vm807_vm7 = vweird.f32 %v989_v62 }
 0x63c   : > { %vm808_vm9 = vmor %vm806_vm8, %vm807_vm7 }
 0x63d   : > { %v802_v0 = vmul.f32 %v989_v62, %v801_v63 }
 0x63f   : > { %v803_v1 = vmul.f32 0.5, %v802_v0 }
 0x641   : > { %v804_v2 = vsub.f32 1.5, %v803_v1 }
 0x643   : > { %v805_v3 = vmul.f32 %v989_v62, %v804_v2 }
 0x645   : > { %v809_v6 = vsel %vm808_vm9, %v989_v62, %v805_v3 }
 0x646   : > { %v810_v8 = vmul.f32 %v809_v6, %v793_v57 }
 0x648   : > { %v814_v9 = vmul.f32 %v968_v5, %v810_v8 }
 0x64a   : > { %v818_v10 = vadd.f32 %v969_v7, %v814_v9 }
 0x64c   : > { %819 = vst.msk [vmem:[%s412_s29] sm:$0xff] %vm437_vm0, %v818_v10 }
 0x64d PF: > { %s21_s17 = sadd.s32 1, %s996_s17  }
 0x64e   : > { %p18_p4 = scmp.ge.s32.totalorder %s21_s17, 4  }
 0x650   :  { %20 = sbr.rel (!%p18_p4) target bundleno = 1 (0x1), region = 100 }

// kernel: transformer_forward.25
= control target key start
LH: loop header
LB: loop body
LE: loop exit
PB: predicated region body
PF: predicated region fallthrough
CT: control target
= control target key end

     0   :  { %8 = vsyncpa [#allocation3], 0  ;;  %s553_s0 = inlined_call_operand.vmem [shape: f32[16,32], index: 0, kind: input, shape index: {}]   ;;  %s554_s1 = inlined_call_operand.vmem [shape: bf16[32,16], index: 1, kind: input, shape index: {}]   ;;  %s555_s2 = inlined_call_operand.vmem [shape: f32[1,16], index: 2, kind: input, shape index: {}]   ;;  %s556_s3 = inlined_call_operand.hbm [shape: f32[16,16], index: 3, kind: output, shape index: {}]  }
   0x1   :  { %10 = vsyncpa [#allocation3 + $0x1], 0  ;;  %s456_s12 = smov 0   ;;  %s458_s13 = smov 0  }
   0x2   :  { %s460_s14 = smov 0   ;;  %s462_s15 = smov 0  }
   0x3 LB: > { %s477_s16 = sadd.s32 4294967295, %s434_s15   ;;  %s307_s17 = sadd.s32 4294967294, %s434_s15   ;;  %s434_s15 = sphi %s462_s15, %s562_s15   ;;  %s430_s14 = sphi %s460_s14, %s561_s14   ;;  %s426_s13 = sphi %s458_s13, %s560_s13   ;;  %s422_s12 = sphi %s456_s12, %s559_s12  }
   0x4   : > { %s481_s18 = sadd.s32 1, %s434_s15   ;;  %s91_s19 = sadd.s32 1, %s430_s14 }
   0x5   : > { %s88_s20 = ssub.s32 %s434_s15, %s481_s18  ;;  %p101_p0 = scmp.ne.s32.totalorder %s430_s14, %s426_s13 }
   0x6   : > { %p89_p1 = scmp.eq.s32.totalorder %s88_s20, 0  ;;  %p102_p2 = scmp.eq.s32.totalorder %s477_s16, 1 }
   0x7   : > { %p107_p3 = scmp.ne.s32.totalorder %s426_s13, %s422_s12  ;;  %p108_p4 = scmp.eq.s32.totalorder %s307_s17, 1 }
   0x8   : > { %s492_s21 = scalar_select %p89_p1, %s430_s14, %s91_s19  }
   0x9   : > { %p494_p5 = por %p102_p2, %p101_p0  ;;  %p498_p6 = por %p108_p4, %p107_p3 }
   0xa   : > { %p310_p7 = scmp.ge.s32.totalorder %s434_s15, 1  ;;  %p139_p8 = scmp.lt.s32.totalorder %s434_s15, 3 }
   0xc   : > { %p140_p9 = pnand %p310_p7, %p139_p8 }
   0xd   : > { %p162_p10 = scmp.lt.s32.totalorder (!%p140_p9), %s477_s16, 1  ;;  %s159_s8 = sand.u32 (!%p140_p9), 1, %s426_s13  }
   0xe   : > { %143 = sbr.rel (%p140_p9) target bundleno = 422 (0x1a6), region = 32  ;;  %s311_s9 = sshll.u32 (!%p140_p9), %s159_s8, 3 }
   0xf   : > { %s323_s10 = sshll.u32 (!%p140_p9), %s477_s16, 3  ;;  %s161_s20 = scalar_lea.vmem (!%p140_p9), [#allocation2], %s311_s9 }
  0x10   : > { %s243_s19 = scalar_lea.hbm (!%p140_p9), %s556_s3, %s323_s10  ;;  %s245_s24 = sshll.u32 (!%p140_p9), %s161_s20, 4  ;;  %s246_s24 = int_to_ptr.vmem [resolvable:$true] %s245_s24 }
  0x11   : > { %s247_s25 = sshll.u32 (!%p140_p9), %s243_s19, 4  ;;  %s392_s30 = scalar_lea.hbm (!%p140_p9), %s556_s3, 16  ;;  %s248_s25 = int_to_ptr.hbm [resolvable:$true] %s247_s25 }
  0x12   : > { %s386_s26 = sshra.s32 (!%p140_p9), %s248_s25, 4  ;;  %s387_s26 = int_to_ptr.hbm [resolvable:$true] %s386_s26 }
  0x13   : > { %v327_v0 = vld [vmem:[%s554_s1 + $0x8] sm:$0xff]  ;;  %v326_v1 = vld [vmem:[%s554_s1] sm:$0xff]  ;;  %s163_s28 = scalar_select %p162_p10, %s477_s16, 1  ;;  %vm189_vm0 = vcmask 261120   ;;  %vm206_vm1 = vcmask 130048  }
  0x14   : > { %199 = vmatpush.bf16.msra.mxu0 %v327_v0  ;;  %v367_v4 = vld [vmem:[%s555_s2] ss:$0 sm:$0xff]  ;;  %s233_s16 = scalar_lea.sflag [#allocation3], %s159_s8  ;;  %s388_s27 = scalar_lea.hbm %s387_s26, 8 }
  0x15   : > { %s312_s29 = sshll.u32 %s163_s28, 3  ;;  %p389_p11 = scmp.ne.s32.totalorder %s387_s26, %s388_s27 }
  0x16   : > { %s165_s5 = scalar_lea.vmem %s553_s0, %s312_s29  ;;  %p393_p0 = scmp.lt.s32.totalorder %s387_s26, %s556_s3 }
  0x17   : > { %v167_v2 = vld [vmem:[%s165_s5] sm:$0xff]  ;;  %p390_p12 = pnand %p389_p11, %p494_p5  ;;  %p394_p1 = scmp.lt.s32.totalorder %s392_s30, %s388_s27 }
  0x18   : > { %200 = vmatpush.bf16.msra.mxu0 %v326_v1  ;;  %v168_v3 = vpack.c.bf16 %v167_v2, %v167_v2 }
  0x19   : > { %p391_p13 = pneg %p390_p12  ;;  %p395_p2 = por %p394_p1, %p393_p0 }
  0x1b   : > { %321 = vmatmul.msk.bf16.vlgmr.msra.gmra.mxu0 %vm189_vm0, %v168_v3  ;;  %p396_p3 = pnand %p395_p2, %p391_p13 }
  0x98   : > { %v202_v5 = vpop.f32.mrf.mxu0 }
  0x99   : > { %v203_v6 = vadd.f32 %v367_v4, %v202_v5 }
  0x9b   : > { %v207_v7 = vsel %vm206_vm1, %v203_v6, -inf }
  0x9c   : > { %208 = vmax.xlane.f32.xlu0 %v207_v7 }
  0xa0   : > { %v204_v8 = vpop.f32.mrf.mxu0 }
 0x10f   : > { %v209_v9 = vpop.xlane.xlu0 %208 }
 0x110   : > { %v210_v10 = vsub.f32 %v203_v6, %v209_v9 }
 0x112   : > { %v211_v11 = vmul.f32 1.442695, %v210_v10 }
 0x114   : > { %368 = vpow2.f32 %v211_v11 }
 0x11a   : > { %v369_v12 = vpop.eup %368 }
 0x11b   : > { %v213_v13 = vsel %vm206_vm1, %v369_v12, 0.0 }
 0x11c   : > { %214 = vadd.xlane.f32.xlu0 %v213_v13 }
 0x18f   : > { %v215_v14 = vpop.xlane.xlu0 %214 }
 0x190   : > { %370 = vrcp.f32 %v215_v14  ;;  %v227_v18 = vand.u32 2147483648, %v215_v14  ;;  %v225_v20 = vand.u32 2147483647, %v215_v14  ;;  %vm221_vm3 = vweird.f32 %v215_v14 }
 0x192   : > { %v228_v22 = vor.u32 1.1754944e-38, %v227_v18  ;;  %vm226_vm5 = vcmp.eq.f32.partialorder %v225_v20, 8.507059e+37 }
 0x196   : > { %v371_v15 = vpop.eup %370 }
 0x197   : > { %v217_v16 = vmul.f32 %v371_v15, %v215_v14  ;;  %vm222_vm2 = vweird.f32 %v371_v15 }
 0x198   : > { %vm223_vm4 = vmor %vm221_vm3, %vm222_vm2 }
 0x199   : > { %v218_v17 = vsub.f32 1.0, %v217_v16 }
 0x19b   : > { %v219_v19 = vmul.f32 %v371_v15, %v218_v17 }
 0x19d   : > { %v220_v21 = vadd.f32 %v371_v15, %v219_v19 }
 0x19f   : > { %v224_v23 = vsel %vm223_vm4, %v371_v15, %v220_v21 }
 0x1a0   : > { %v229_v24 = vsel %vm226_vm5, %v228_v22, %v224_v23 }
 0x1a1   : > { %v230_v25 = vmul.f32 %v369_v12, %v229_v24 }
 0x1a3   : > { %231 = vst.msk [vmem:[%s161_s20] sm:$0xff] %vm206_vm1, %v230_v25 }
 0x1a4   : > { %399 = shalt.err (!%p396_p3)
}
 0x1a5   : > { %328 = dma.vmem_to_hbm [thread:$0]  (%p494_p5), %s246_s24, 128, %s248_s25, %s233_s16  }
 0x1a6 PF: > { %p334_p4 = scmp.ge.s32.totalorder %s434_s15, 2  ;;  %s259_s6 = sand.u32 1, %s422_s12  }
 0x1a7   : > { %s260_s7 = scalar_lea.sflag [#allocation3], %s259_s6 }
 0x1a8   : > { %p331_p7 = pnand %p334_p4, %p498_p6 }
 0x1aa   : > { %p332_p8 = pneg %p331_p7 }
 0x1ac   : > { %417 = dma.done.wait (%p332_p8), %s260_s7, 128  }
 0x1ad   : > { %419 = vsyncadd (%p332_p8), %s260_s7, 4294967168  ;;  %p13_p9 = scmp.ge.s32.totalorder %s481_s18, 4   ;;  %s559_s12 = smov %s426_s13 }
 0x1ae   : > { %s560_s13 = smov %s430_s14  ;;  %s561_s14 = smov %s492_s21 }
 0x1af   : > { %s562_s15 = smov %s481_s18  ;;  %15 = sbr.rel (!%p13_p9) target bundleno = 3 (0x3), region = 67 }
 0x1b4   :  { %266 = vsyncpa [#allocation3], 1 }
 0x1b5   :  { %268 = vsyncpa [#allocation3 + $0x1], 1 }

</bundles_post_ra>
